<compile_context>
chip_gen: v7x
topology: tpu7x:2x2x1
jax: 0.10.0
libtpu: 0.0.40
codegen_flags: <defaults>
</compile_context>

<pallas_src>
import functools

import jax
import jax.numpy as jnp
from jax import lax
from jax.experimental import pallas as pl
from jax.experimental.pallas import tpu as pltpu

# Hyperparameters (shape-consistent with the module).
BATCH = 256
INITIAL_NUM_CHANNELS = 16   # one-hot vocab size in the original model
NUM_CHANNELS = 32
NUM_CLASSES = 10
PADDED_CLASSES = 16         # classes padded to a sublane multiple; sliced in wrapper
SEQ_LEN = 17                # 17 -(k3,s1)-> 15 -(k3,s2)-> 7 -(k3,s2)-> 3 -(k3,s1)-> 1
KERNEL_SIZE = 3
CONV_STRIDES = (1, 2, 2, 1)
LANES = 128                 # batch sits on the lane axis; tiles are multiples of this


def _elu(v):
    # ELU(alpha=1): x if x > 0 else exp(x) - 1   (overflow-safe exp argument)
    return jnp.where(v > 0, v, jnp.exp(jnp.minimum(v, 0.0)) - 1.0)


def _conv_elu_layer(h_slabs, w_ref, b_ref, stride, compute_dtype, elemwise_dtype):
    """One conv+ELU layer on a list of (C_in, B_tile) time slabs.

    w_ref: (C_out, K*C_in) with column order (k, c_in).
    b_ref: (C_out, 1) float32.
    Returns a list of l_out slabs, each (C_out, B_tile) in elemwise_dtype.
    """
    k = KERNEL_SIZE
    l_out = (len(h_slabs) - k) // stride + 1
    w = w_ref[...]                                     # hoisted: one load per layer
    b = b_ref[...].astype(elemwise_dtype)              # (C_out, 1), lane-broadcast
    h_c = [s.astype(compute_dtype) for s in h_slabs]   # no-op when dtypes match
    out = []
    for t in range(l_out):
        # Sublane-axis tap stacking: aligned (C_in % 8 == 0) vreg copies only.
        cols = jnp.concatenate([h_c[t * stride + kk] for kk in range(k)], axis=0)
        y = jnp.dot(w, cols, preferred_element_type=jnp.float32)   # (C_out, B), MXU
        out.append(_elu(y.astype(elemwise_dtype) + b))
    return out


def _surname_kernel(x_ref, w1, b1, w2, b2, w3, b3, w4, b4, fcw, fcb, out_ref,
                    *, apply_softmax, compute_dtype, elemwise_dtype):
    # x_ref: (L, C_in, B_tile) -- batch on lanes, channels on sublanes.
    # conv w: (C_out, K*C_in); conv b: (C_out, 1)
    # fcw: (PADDED_CLASSES, NUM_CHANNELS); fcb: (PADDED_CLASSES, 1)
    seq_len = x_ref.shape[0]
    h = [x_ref[t] for t in range(seq_len)]             # list of (C_in, B_tile) slabs
    for w_ref, b_ref, stride in zip((w1, w2, w3, w4), (b1, b2, b3, b4), CONV_STRIDES):
        h = _conv_elu_layer(h, w_ref, b_ref, stride, compute_dtype, elemwise_dtype)
    assert len(h) == 1, "sequence length must reduce to 1 (torch .squeeze(dim=2))"
    feat = h[0].astype(compute_dtype)                   # (NUM_CHANNELS, B_tile)

    logits = jnp.dot(fcw[...], feat, preferred_element_type=jnp.float32) + fcb[...]
    if apply_softmax:
        # Mask zero-padded class rows (classes live on the sublane axis).
        valid = lax.broadcasted_iota(jnp.int32, logits.shape, 0) < NUM_CLASSES
        masked = jnp.where(valid, logits, -1e30)
        m = jnp.max(masked, axis=0, keepdims=True)
        e = jnp.where(valid, jnp.exp(masked - m), 0.0)
        logits = e * pl.reciprocal(jnp.sum(e, axis=0, keepdims=True), approx=True)
    out_ref[...] = logits.astype(out_ref.dtype)         # (PADDED_CLASSES, B_tile)


def _full_spec(arr):
    n = arr.ndim
    return pl.BlockSpec(tuple(arr.shape), lambda b, n=n: (0,) * n)


def _num_tensorcores():
    """2 on dual-TensorCore chips (v7x), else 1 (v5e/v6e)."""
    try:
        kind = jax.devices()[0].device_kind.lower()
    except Exception:
        return 1
    return 2 if "v7" in kind else 1


def prepare_params(params, compute_dtype=jnp.bfloat16):
    """One-time re-layout of PyTorch-layout params into kernel layout.

    torch conv weight (C_out, C_in, K) -> (C_out, K*C_in), columns ordered (k, c_in);
    torch conv bias (C_out,)           -> (C_out, 1) float32;
    torch fc weight (NUM_CLASSES, C)   -> (PADDED_CLASSES, C), zero-padded rows;
    torch fc bias (NUM_CLASSES,)       -> (PADDED_CLASSES, 1) float32.
    Matmul operands carry compute_dtype (bf16 on every generation -- the MXU is a
    bf16 unit, v5e included); biases stay float32.
    """
    prepped = []
    for w, b in params[:4]:
        w2 = jnp.transpose(w, (0, 2, 1)).reshape(w.shape[0], -1).astype(compute_dtype)
        prepped.append((w2, b[:, None].astype(jnp.float32)))
    fcw, fcb = params[4]
    pad = PADDED_CLASSES - NUM_CLASSES
    fcw2 = jnp.pad(fcw, ((0, pad), (0, 0))).astype(compute_dtype)
    fcb2 = jnp.pad(fcb, (0, pad))[:, None].astype(jnp.float32)
    prepped.append((fcw2, fcb2))
    return prepped


def surname_classifier_forward(x_ncl, prepared_params, apply_softmax=False,
                               batch_tile=None, elemwise_dtype=jnp.float32):
    """x_ncl: (B, C_in, L) float32 (PyTorch NCL). Returns (B, NUM_CLASSES) float32.

    elemwise_dtype: float32 is safe everywhere; pass jnp.bfloat16 on v6e/v7x to
    halve the VPU/EUP work in the bias+ELU path.
    """
    (w1, b1), (w2, b2), (w3, b3), (w4, b4), (fcw, fcb) = prepared_params
    batch, c_in, seq_len = x_ncl.shape
    compute_dtype = w1.dtype

    # Generation-aware batch tiling: one fat tile on single-TC chips (v5e/v6e),
    # one tile per TensorCore on v7x.  Batch sits on lanes -> multiples of 128.
    if batch_tile is None:
        lane_blocks = pl.cdiv(batch, LANES)
        tiles = min(_num_tensorcores(), lane_blocks)
        batch_tile = pl.cdiv(lane_blocks, tiles) * LANES
    assert batch_tile % LANES == 0, "batch_tile must be a multiple of 128 (lane axis)"
    num_tiles = pl.cdiv(batch, batch_tile)
    padded_batch = num_tiles * batch_tile

    # Glue: batch -> lanes, channels -> sublanes, time leading.  Weights were
    # re-laid-out once in prepare_params; this is the only per-call wrapper op.
    x_lcb = jnp.transpose(x_ncl, (2, 1, 0))               # (L, C_in, B)
    if padded_batch != batch:
        x_lcb = jnp.pad(x_lcb, ((0, 0), (0, 0), (0, padded_batch - batch)))

    param_args = (w1, b1, w2, b2, w3, b3, w4, b4, fcw, fcb)
    kernel = functools.partial(_surname_kernel, apply_softmax=apply_softmax,
                               compute_dtype=compute_dtype,
                               elemwise_dtype=elemwise_dtype)

    out_padded = pl.pallas_call(
        kernel,
        out_shape=jax.ShapeDtypeStruct((PADDED_CLASSES, padded_batch), jnp.float32),
        grid=(num_tiles,),
        in_specs=[pl.BlockSpec((seq_len, c_in, batch_tile), lambda b: (0, 0, b))]
                 + [_full_spec(a) for a in param_args],
        out_specs=pl.BlockSpec((PADDED_CLASSES, batch_tile), lambda b: (0, b)),
        compiler_params=pltpu.CompilerParams(
            dimension_semantics=("parallel",)),   # batch tiles are independent
    )(x_lcb, *param_args)

    # (classes, batch) -> (batch, classes); tiny transpose+slice outside the kernel.
    return jnp.transpose(out_padded)[:batch, :NUM_CLASSES]


def _reference_forward(x_ncl, params, apply_softmax=False):
    """Pure-JAX reference matching the PyTorch module (original param layout)."""
    h = x_ncl
    for (w, b), s in zip(params[:4], CONV_STRIDES):
        h = lax.conv_general_dilated(h, w, window_strides=(s,), padding="VALID",
                                     dimension_numbers=("NCH", "OIH", "NCH"))
        h = jax.nn.elu(h + b[None, :, None])
    fcw, fcb = params[4]
    logits = h[:, :, 0] @ fcw.T + fcb
    if apply_softmax:
        logits = jax.nn.softmax(logits, axis=-1)
    return logits


def _init_params(key):
    ks = jax.random.split(key, 10)

    def conv(kw, kb, cin, cout):
        w = 0.1 * jax.random.normal(kw, (cout, cin, KERNEL_SIZE), jnp.float32)
        b = 0.1 * jax.random.normal(kb, (cout,), jnp.float32)
        return w, b

    params = [
        conv(ks[0], ks[1], INITIAL_NUM_CHANNELS, NUM_CHANNELS),
        conv(ks[2], ks[3], NUM_CHANNELS, NUM_CHANNELS),
        conv(ks[4], ks[5], NUM_CHANNELS, NUM_CHANNELS),
        conv(ks[6], ks[7], NUM_CHANNELS, NUM_CHANNELS),
    ]
    fcw = 0.1 * jax.random.normal(ks[8], (NUM_CLASSES, NUM_CHANNELS), jnp.float32)
    fcb = 0.1 * jax.random.normal(ks[9], (NUM_CLASSES,), jnp.float32)
    params.append((fcw, fcb))
    return params


if __name__ == "__main__":
    key = jax.random.PRNGKey(0)
    kx, kp = jax.random.split(key)
    x = jax.random.normal(kx, (BATCH, INITIAL_NUM_CHANNELS, SEQ_LEN), jnp.float32)
    params = _init_params(kp)
    ref = _reference_forward(x, params, apply_softmax=False)

    # f32 matmul path: tight correctness check.
    prepared_f32 = prepare_params(params, compute_dtype=jnp.float32)
    out_f32 = jax.block_until_ready(
        surname_classifier_forward(x, prepared_f32, apply_softmax=False))
    assert out_f32.shape == (BATCH, NUM_CLASSES)
    err = float(jnp.max(jnp.abs(out_f32 - ref)))
    assert err < 1e-3, f"f32 kernel vs reference mismatch: {err}"

    # Softmax path (EUP approx reciprocal).
    out_sm = jax.block_until_ready(
        surname_classifier_forward(x, prepared_f32, apply_softmax=True))
    ref_sm = _reference_forward(x, params, apply_softmax=True)
    err_sm = float(jnp.max(jnp.abs(out_sm - ref_sm)))
    assert err_sm < 2e-3, f"softmax kernel vs reference mismatch: {err_sm}"

    # bf16-matmul perf config (all generations): f32 accumulation + f32
    # elementwise, so only operand-rounding error — looser tolerance.
    prepared_bf16 = prepare_params(params, compute_dtype=jnp.bfloat16)
    out_bf16 = jax.block_until_ready(
        surname_classifier_forward(x, prepared_bf16, apply_softmax=False))
    err_bf16 = float(jnp.max(jnp.abs(out_bf16 - ref)))
    assert err_bf16 < 7.5e-2, f"bf16 kernel vs reference mismatch: {err_bf16}"

    # Optional bf16-elementwise path (v6e/v7x have bf16 VPU/EUP).
    kind = jax.devices()[0].device_kind.lower()
    if "v6" in kind or "v7" in kind:
        out_b16e = jax.block_until_ready(
            surname_classifier_forward(x, prepared_bf16, apply_softmax=False,
                                       elemwise_dtype=jnp.bfloat16))
        assert out_b16e.shape == (BATCH, NUM_CLASSES)
        err_b16e = float(jnp.max(jnp.abs(out_b16e - ref)))
        assert err_b16e < 2.5e-1, f"bf16-elementwise kernel mismatch: {err_b16e}"

    print("KERNEL_OK")
</pallas_src>

<mosaic_0001>
module attributes {stable_mosaic.version = 11 : i64} {
  func.func @_surname_kernel(%arg0: i32, %arg1: memref<17x16x256xf32, #tpu.memory_space<vmem>>, %arg2: memref<32x48xf32, #tpu.memory_space<vmem>>, %arg3: memref<32x1xf32, #tpu.memory_space<vmem>>, %arg4: memref<32x96xf32, #tpu.memory_space<vmem>>, %arg5: memref<32x1xf32, #tpu.memory_space<vmem>>, %arg6: memref<32x96xf32, #tpu.memory_space<vmem>>, %arg7: memref<32x1xf32, #tpu.memory_space<vmem>>, %arg8: memref<32x96xf32, #tpu.memory_space<vmem>>, %arg9: memref<32x1xf32, #tpu.memory_space<vmem>>, %arg10: memref<16x32xf32, #tpu.memory_space<vmem>>, %arg11: memref<16x1xf32, #tpu.memory_space<vmem>>, %arg12: memref<16x256xf32, #tpu.memory_space<vmem>>) attributes {dimension_semantics = [#tpu.dimension_semantics<parallel>], iteration_bounds = array<i64: 1>, scalar_prefetch = 0 : i64, scratch_operands = 0 : i64, tpu.core_type = #tpu.core_type<tc>, window_params = [{transform_indices = @transform_0, window_bounds = array<i64: 17, 16, 256>}, {pipeline_mode = #tpu.pipeline_mode<synchronous>, transform_indices = @transform_1, window_bounds = array<i64: 32, 48>}, {pipeline_mode = #tpu.pipeline_mode<synchronous>, transform_indices = @transform_2, window_bounds = array<i64: 32, 1>}, {pipeline_mode = #tpu.pipeline_mode<synchronous>, transform_indices = @transform_3, window_bounds = array<i64: 32, 96>}, {pipeline_mode = #tpu.pipeline_mode<synchronous>, transform_indices = @transform_4, window_bounds = array<i64: 32, 1>}, {pipeline_mode = #tpu.pipeline_mode<synchronous>, transform_indices = @transform_5, window_bounds = array<i64: 32, 96>}, {pipeline_mode = #tpu.pipeline_mode<synchronous>, transform_indices = @transform_6, window_bounds = array<i64: 32, 1>}, {pipeline_mode = #tpu.pipeline_mode<synchronous>, transform_indices = @transform_7, window_bounds = array<i64: 32, 96>}, {pipeline_mode = #tpu.pipeline_mode<synchronous>, transform_indices = @transform_8, window_bounds = array<i64: 32, 1>}, {pipeline_mode = #tpu.pipeline_mode<synchronous>, transform_indices = @transform_9, window_bounds = array<i64: 16, 32>}, {pipeline_mode = #tpu.pipeline_mode<synchronous>, transform_indices = @transform_10, window_bounds = array<i64: 16, 1>}, {transform_indices = @transform_11, window_bounds = array<i64: 16, 256>}]} {
    %c0 = arith.constant 0 : index
    %c0_0 = arith.constant 0 : index
    %c0_1 = arith.constant 0 : index
    %0 = vector.load %arg1[%c0, %c0_0, %c0_1] : memref<17x16x256xf32, #tpu.memory_space<vmem>>, vector<1x16x256xf32>
    %1 = vector.shape_cast %0 : vector<1x16x256xf32> to vector<16x256xf32>
    %c1 = arith.constant 1 : index
    %c0_2 = arith.constant 0 : index
    %c0_3 = arith.constant 0 : index
    %2 = vector.load %arg1[%c1, %c0_2, %c0_3] : memref<17x16x256xf32, #tpu.memory_space<vmem>>, vector<1x16x256xf32>
    %3 = vector.shape_cast %2 : vector<1x16x256xf32> to vector<16x256xf32>
    %c2 = arith.constant 2 : index
    %c0_4 = arith.constant 0 : index
    %c0_5 = arith.constant 0 : index
    %4 = vector.load %arg1[%c2, %c0_4, %c0_5] : memref<17x16x256xf32, #tpu.memory_space<vmem>>, vector<1x16x256xf32>
    %5 = vector.shape_cast %4 : vector<1x16x256xf32> to vector<16x256xf32>
    %c3 = arith.constant 3 : index
    %c0_6 = arith.constant 0 : index
    %c0_7 = arith.constant 0 : index
    %6 = vector.load %arg1[%c3, %c0_6, %c0_7] : memref<17x16x256xf32, #tpu.memory_space<vmem>>, vector<1x16x256xf32>
    %7 = vector.shape_cast %6 : vector<1x16x256xf32> to vector<16x256xf32>
    %c4 = arith.constant 4 : index
    %c0_8 = arith.constant 0 : index
    %c0_9 = arith.constant 0 : index
    %8 = vector.load %arg1[%c4, %c0_8, %c0_9] : memref<17x16x256xf32, #tpu.memory_space<vmem>>, vector<1x16x256xf32>
    %9 = vector.shape_cast %8 : vector<1x16x256xf32> to vector<16x256xf32>
    %c5 = arith.constant 5 : index
    %c0_10 = arith.constant 0 : index
    %c0_11 = arith.constant 0 : index
    %10 = vector.load %arg1[%c5, %c0_10, %c0_11] : memref<17x16x256xf32, #tpu.memory_space<vmem>>, vector<1x16x256xf32>
    %11 = vector.shape_cast %10 : vector<1x16x256xf32> to vector<16x256xf32>
    %c6 = arith.constant 6 : index
    %c0_12 = arith.constant 0 : index
    %c0_13 = arith.constant 0 : index
    %12 = vector.load %arg1[%c6, %c0_12, %c0_13] : memref<17x16x256xf32, #tpu.memory_space<vmem>>, vector<1x16x256xf32>
    %13 = vector.shape_cast %12 : vector<1x16x256xf32> to vector<16x256xf32>
    %c7 = arith.constant 7 : index
    %c0_14 = arith.constant 0 : index
    %c0_15 = arith.constant 0 : index
    %14 = vector.load %arg1[%c7, %c0_14, %c0_15] : memref<17x16x256xf32, #tpu.memory_space<vmem>>, vector<1x16x256xf32>
    %15 = vector.shape_cast %14 : vector<1x16x256xf32> to vector<16x256xf32>
    %c8 = arith.constant 8 : index
    %c0_16 = arith.constant 0 : index
    %c0_17 = arith.constant 0 : index
    %16 = vector.load %arg1[%c8, %c0_16, %c0_17] : memref<17x16x256xf32, #tpu.memory_space<vmem>>, vector<1x16x256xf32>
    %17 = vector.shape_cast %16 : vector<1x16x256xf32> to vector<16x256xf32>
    %c9 = arith.constant 9 : index
    %c0_18 = arith.constant 0 : index
    %c0_19 = arith.constant 0 : index
    %18 = vector.load %arg1[%c9, %c0_18, %c0_19] : memref<17x16x256xf32, #tpu.memory_space<vmem>>, vector<1x16x256xf32>
    %19 = vector.shape_cast %18 : vector<1x16x256xf32> to vector<16x256xf32>
    %c10 = arith.constant 10 : index
    %c0_20 = arith.constant 0 : index
    %c0_21 = arith.constant 0 : index
    %20 = vector.load %arg1[%c10, %c0_20, %c0_21] : memref<17x16x256xf32, #tpu.memory_space<vmem>>, vector<1x16x256xf32>
    %21 = vector.shape_cast %20 : vector<1x16x256xf32> to vector<16x256xf32>
    %c11 = arith.constant 11 : index
    %c0_22 = arith.constant 0 : index
    %c0_23 = arith.constant 0 : index
    %22 = vector.load %arg1[%c11, %c0_22, %c0_23] : memref<17x16x256xf32, #tpu.memory_space<vmem>>, vector<1x16x256xf32>
    %23 = vector.shape_cast %22 : vector<1x16x256xf32> to vector<16x256xf32>
    %c12 = arith.constant 12 : index
    %c0_24 = arith.constant 0 : index
    %c0_25 = arith.constant 0 : index
    %24 = vector.load %arg1[%c12, %c0_24, %c0_25] : memref<17x16x256xf32, #tpu.memory_space<vmem>>, vector<1x16x256xf32>
    %25 = vector.shape_cast %24 : vector<1x16x256xf32> to vector<16x256xf32>
    %c13 = arith.constant 13 : index
    %c0_26 = arith.constant 0 : index
    %c0_27 = arith.constant 0 : index
    %26 = vector.load %arg1[%c13, %c0_26, %c0_27] : memref<17x16x256xf32, #tpu.memory_space<vmem>>, vector<1x16x256xf32>
    %27 = vector.shape_cast %26 : vector<1x16x256xf32> to vector<16x256xf32>
    %c14 = arith.constant 14 : index
    %c0_28 = arith.constant 0 : index
    %c0_29 = arith.constant 0 : index
    %28 = vector.load %arg1[%c14, %c0_28, %c0_29] : memref<17x16x256xf32, #tpu.memory_space<vmem>>, vector<1x16x256xf32>
    %29 = vector.shape_cast %28 : vector<1x16x256xf32> to vector<16x256xf32>
    %c15 = arith.constant 15 : index
    %c0_30 = arith.constant 0 : index
    %c0_31 = arith.constant 0 : index
    %30 = vector.load %arg1[%c15, %c0_30, %c0_31] : memref<17x16x256xf32, #tpu.memory_space<vmem>>, vector<1x16x256xf32>
    %31 = vector.shape_cast %30 : vector<1x16x256xf32> to vector<16x256xf32>
    %c16 = arith.constant 16 : index
    %c0_32 = arith.constant 0 : index
    %c0_33 = arith.constant 0 : index
    %32 = vector.load %arg1[%c16, %c0_32, %c0_33] : memref<17x16x256xf32, #tpu.memory_space<vmem>>, vector<1x16x256xf32>
    %33 = vector.shape_cast %32 : vector<1x16x256xf32> to vector<16x256xf32>
    %c0_34 = arith.constant 0 : index
    %c0_35 = arith.constant 0 : index
    %34 = vector.load %arg2[%c0_34, %c0_35] : memref<32x48xf32, #tpu.memory_space<vmem>>, vector<32x48xf32>
    %c0_36 = arith.constant 0 : index
    %c0_37 = arith.constant 0 : index
    %35 = vector.load %arg3[%c0_36, %c0_37] : memref<32x1xf32, #tpu.memory_space<vmem>>, vector<32x1xf32>
    %36 = tpu.concatenate %1, %3, %5 in 0 : vector<16x256xf32>, vector<16x256xf32>, vector<16x256xf32> -> vector<48x256xf32>
    %cst = arith.constant dense<0.000000e+00> : vector<32x256xf32>
    %37 = tpu.matmul %34, %36, %cst {dimension_numbers = #tpu.dot_dimension_numbers<[1], [0], [0], [1], [0, 0, 1, 1], [], []>} : vector<32x48xf32>, vector<48x256xf32>, vector<32x256xf32> -> vector<32x256xf32>
    %38 = vector.broadcast %35 : vector<32x1xf32> to vector<32x256xf32>
    %39 = arith.addf %37, %38 : vector<32x256xf32>
    %cst_38 = arith.constant 0.000000e+00 : f32
    %40 = vector.broadcast %cst_38 : f32 to vector<32x256xf32>
    %41 = arith.cmpf ogt, %39, %40 : vector<32x256xf32>
    %cst_39 = arith.constant 0.000000e+00 : f32
    %42 = vector.broadcast %cst_39 : f32 to vector<32x256xf32>
    %43 = arith.minimumf %39, %42 : vector<32x256xf32>
    %44 = math.exp %43 : vector<32x256xf32>
    %cst_40 = arith.constant 1.000000e+00 : f32
    %45 = vector.broadcast %cst_40 : f32 to vector<32x256xf32>
    %46 = arith.subf %44, %45 : vector<32x256xf32>
    %47 = arith.select %41, %39, %46 : vector<32x256xi1>, vector<32x256xf32>
    %48 = tpu.concatenate %3, %5, %7 in 0 : vector<16x256xf32>, vector<16x256xf32>, vector<16x256xf32> -> vector<48x256xf32>
    %cst_41 = arith.constant dense<0.000000e+00> : vector<32x256xf32>
    %49 = tpu.matmul %34, %48, %cst_41 {dimension_numbers = #tpu.dot_dimension_numbers<[1], [0], [0], [1], [0, 0, 1, 1], [], []>} : vector<32x48xf32>, vector<48x256xf32>, vector<32x256xf32> -> vector<32x256xf32>
    %50 = vector.broadcast %35 : vector<32x1xf32> to vector<32x256xf32>
    %51 = arith.addf %49, %50 : vector<32x256xf32>
    %cst_42 = arith.constant 0.000000e+00 : f32
    %52 = vector.broadcast %cst_42 : f32 to vector<32x256xf32>
    %53 = arith.cmpf ogt, %51, %52 : vector<32x256xf32>
    %cst_43 = arith.constant 0.000000e+00 : f32
    %54 = vector.broadcast %cst_43 : f32 to vector<32x256xf32>
    %55 = arith.minimumf %51, %54 : vector<32x256xf32>
    %56 = math.exp %55 : vector<32x256xf32>
    %cst_44 = arith.constant 1.000000e+00 : f32
    %57 = vector.broadcast %cst_44 : f32 to vector<32x256xf32>
    %58 = arith.subf %56, %57 : vector<32x256xf32>
    %59 = arith.select %53, %51, %58 : vector<32x256xi1>, vector<32x256xf32>
    %60 = tpu.concatenate %5, %7, %9 in 0 : vector<16x256xf32>, vector<16x256xf32>, vector<16x256xf32> -> vector<48x256xf32>
    %cst_45 = arith.constant dense<0.000000e+00> : vector<32x256xf32>
    %61 = tpu.matmul %34, %60, %cst_45 {dimension_numbers = #tpu.dot_dimension_numbers<[1], [0], [0], [1], [0, 0, 1, 1], [], []>} : vector<32x48xf32>, vector<48x256xf32>, vector<32x256xf32> -> vector<32x256xf32>
    %62 = vector.broadcast %35 : vector<32x1xf32> to vector<32x256xf32>
    %63 = arith.addf %61, %62 : vector<32x256xf32>
    %cst_46 = arith.constant 0.000000e+00 : f32
    %64 = vector.broadcast %cst_46 : f32 to vector<32x256xf32>
    %65 = arith.cmpf ogt, %63, %64 : vector<32x256xf32>
    %cst_47 = arith.constant 0.000000e+00 : f32
    %66 = vector.broadcast %cst_47 : f32 to vector<32x256xf32>
    %67 = arith.minimumf %63, %66 : vector<32x256xf32>
    %68 = math.exp %67 : vector<32x256xf32>
    %cst_48 = arith.constant 1.000000e+00 : f32
    %69 = vector.broadcast %cst_48 : f32 to vector<32x256xf32>
    %70 = arith.subf %68, %69 : vector<32x256xf32>
    %71 = arith.select %65, %63, %70 : vector<32x256xi1>, vector<32x256xf32>
    %72 = tpu.concatenate %7, %9, %11 in 0 : vector<16x256xf32>, vector<16x256xf32>, vector<16x256xf32> -> vector<48x256xf32>
    %cst_49 = arith.constant dense<0.000000e+00> : vector<32x256xf32>
    %73 = tpu.matmul %34, %72, %cst_49 {dimension_numbers = #tpu.dot_dimension_numbers<[1], [0], [0], [1], [0, 0, 1, 1], [], []>} : vector<32x48xf32>, vector<48x256xf32>, vector<32x256xf32> -> vector<32x256xf32>
    %74 = vector.broadcast %35 : vector<32x1xf32> to vector<32x256xf32>
    %75 = arith.addf %73, %74 : vector<32x256xf32>
    %cst_50 = arith.constant 0.000000e+00 : f32
    %76 = vector.broadcast %cst_50 : f32 to vector<32x256xf32>
    %77 = arith.cmpf ogt, %75, %76 : vector<32x256xf32>
    %cst_51 = arith.constant 0.000000e+00 : f32
    %78 = vector.broadcast %cst_51 : f32 to vector<32x256xf32>
    %79 = arith.minimumf %75, %78 : vector<32x256xf32>
    %80 = math.exp %79 : vector<32x256xf32>
    %cst_52 = arith.constant 1.000000e+00 : f32
    %81 = vector.broadcast %cst_52 : f32 to vector<32x256xf32>
    %82 = arith.subf %80, %81 : vector<32x256xf32>
    %83 = arith.select %77, %75, %82 : vector<32x256xi1>, vector<32x256xf32>
    %84 = tpu.concatenate %9, %11, %13 in 0 : vector<16x256xf32>, vector<16x256xf32>, vector<16x256xf32> -> vector<48x256xf32>
    %cst_53 = arith.constant dense<0.000000e+00> : vector<32x256xf32>
    %85 = tpu.matmul %34, %84, %cst_53 {dimension_numbers = #tpu.dot_dimension_numbers<[1], [0], [0], [1], [0, 0, 1, 1], [], []>} : vector<32x48xf32>, vector<48x256xf32>, vector<32x256xf32> -> vector<32x256xf32>
    %86 = vector.broadcast %35 : vector<32x1xf32> to vector<32x256xf32>
    %87 = arith.addf %85, %86 : vector<32x256xf32>
    %cst_54 = arith.constant 0.000000e+00 : f32
    %88 = vector.broadcast %cst_54 : f32 to vector<32x256xf32>
    %89 = arith.cmpf ogt, %87, %88 : vector<32x256xf32>
    %cst_55 = arith.constant 0.000000e+00 : f32
    %90 = vector.broadcast %cst_55 : f32 to vector<32x256xf32>
    %91 = arith.minimumf %87, %90 : vector<32x256xf32>
    %92 = math.exp %91 : vector<32x256xf32>
    %cst_56 = arith.constant 1.000000e+00 : f32
    %93 = vector.broadcast %cst_56 : f32 to vector<32x256xf32>
    %94 = arith.subf %92, %93 : vector<32x256xf32>
    %95 = arith.select %89, %87, %94 : vector<32x256xi1>, vector<32x256xf32>
    %96 = tpu.concatenate %11, %13, %15 in 0 : vector<16x256xf32>, vector<16x256xf32>, vector<16x256xf32> -> vector<48x256xf32>
    %cst_57 = arith.constant dense<0.000000e+00> : vector<32x256xf32>
    %97 = tpu.matmul %34, %96, %cst_57 {dimension_numbers = #tpu.dot_dimension_numbers<[1], [0], [0], [1], [0, 0, 1, 1], [], []>} : vector<32x48xf32>, vector<48x256xf32>, vector<32x256xf32> -> vector<32x256xf32>
    %98 = vector.broadcast %35 : vector<32x1xf32> to vector<32x256xf32>
    %99 = arith.addf %97, %98 : vector<32x256xf32>
    %cst_58 = arith.constant 0.000000e+00 : f32
    %100 = vector.broadcast %cst_58 : f32 to vector<32x256xf32>
    %101 = arith.cmpf ogt, %99, %100 : vector<32x256xf32>
    %cst_59 = arith.constant 0.000000e+00 : f32
    %102 = vector.broadcast %cst_59 : f32 to vector<32x256xf32>
    %103 = arith.minimumf %99, %102 : vector<32x256xf32>
    %104 = math.exp %103 : vector<32x256xf32>
    %cst_60 = arith.constant 1.000000e+00 : f32
    %105 = vector.broadcast %cst_60 : f32 to vector<32x256xf32>
    %106 = arith.subf %104, %105 : vector<32x256xf32>
    %107 = arith.select %101, %99, %106 : vector<32x256xi1>, vector<32x256xf32>
    %108 = tpu.concatenate %13, %15, %17 in 0 : vector<16x256xf32>, vector<16x256xf32>, vector<16x256xf32> -> vector<48x256xf32>
    %cst_61 = arith.constant dense<0.000000e+00> : vector<32x256xf32>
    %109 = tpu.matmul %34, %108, %cst_61 {dimension_numbers = #tpu.dot_dimension_numbers<[1], [0], [0], [1], [0, 0, 1, 1], [], []>} : vector<32x48xf32>, vector<48x256xf32>, vector<32x256xf32> -> vector<32x256xf32>
    %110 = vector.broadcast %35 : vector<32x1xf32> to vector<32x256xf32>
    %111 = arith.addf %109, %110 : vector<32x256xf32>
    %cst_62 = arith.constant 0.000000e+00 : f32
    %112 = vector.broadcast %cst_62 : f32 to vector<32x256xf32>
    %113 = arith.cmpf ogt, %111, %112 : vector<32x256xf32>
    %cst_63 = arith.constant 0.000000e+00 : f32
    %114 = vector.broadcast %cst_63 : f32 to vector<32x256xf32>
    %115 = arith.minimumf %111, %114 : vector<32x256xf32>
    %116 = math.exp %115 : vector<32x256xf32>
    %cst_64 = arith.constant 1.000000e+00 : f32
    %117 = vector.broadcast %cst_64 : f32 to vector<32x256xf32>
    %118 = arith.subf %116, %117 : vector<32x256xf32>
    %119 = arith.select %113, %111, %118 : vector<32x256xi1>, vector<32x256xf32>
    %120 = tpu.concatenate %15, %17, %19 in 0 : vector<16x256xf32>, vector<16x256xf32>, vector<16x256xf32> -> vector<48x256xf32>
    %cst_65 = arith.constant dense<0.000000e+00> : vector<32x256xf32>
    %121 = tpu.matmul %34, %120, %cst_65 {dimension_numbers = #tpu.dot_dimension_numbers<[1], [0], [0], [1], [0, 0, 1, 1], [], []>} : vector<32x48xf32>, vector<48x256xf32>, vector<32x256xf32> -> vector<32x256xf32>
    %122 = vector.broadcast %35 : vector<32x1xf32> to vector<32x256xf32>
    %123 = arith.addf %121, %122 : vector<32x256xf32>
    %cst_66 = arith.constant 0.000000e+00 : f32
    %124 = vector.broadcast %cst_66 : f32 to vector<32x256xf32>
    %125 = arith.cmpf ogt, %123, %124 : vector<32x256xf32>
    %cst_67 = arith.constant 0.000000e+00 : f32
    %126 = vector.broadcast %cst_67 : f32 to vector<32x256xf32>
    %127 = arith.minimumf %123, %126 : vector<32x256xf32>
    %128 = math.exp %127 : vector<32x256xf32>
    %cst_68 = arith.constant 1.000000e+00 : f32
    %129 = vector.broadcast %cst_68 : f32 to vector<32x256xf32>
    %130 = arith.subf %128, %129 : vector<32x256xf32>
    %131 = arith.select %125, %123, %130 : vector<32x256xi1>, vector<32x256xf32>
    %132 = tpu.concatenate %17, %19, %21 in 0 : vector<16x256xf32>, vector<16x256xf32>, vector<16x256xf32> -> vector<48x256xf32>
    %cst_69 = arith.constant dense<0.000000e+00> : vector<32x256xf32>
    %133 = tpu.matmul %34, %132, %cst_69 {dimension_numbers = #tpu.dot_dimension_numbers<[1], [0], [0], [1], [0, 0, 1, 1], [], []>} : vector<32x48xf32>, vector<48x256xf32>, vector<32x256xf32> -> vector<32x256xf32>
    %134 = vector.broadcast %35 : vector<32x1xf32> to vector<32x256xf32>
    %135 = arith.addf %133, %134 : vector<32x256xf32>
    %cst_70 = arith.constant 0.000000e+00 : f32
    %136 = vector.broadcast %cst_70 : f32 to vector<32x256xf32>
    %137 = arith.cmpf ogt, %135, %136 : vector<32x256xf32>
    %cst_71 = arith.constant 0.000000e+00 : f32
    %138 = vector.broadcast %cst_71 : f32 to vector<32x256xf32>
    %139 = arith.minimumf %135, %138 : vector<32x256xf32>
    %140 = math.exp %139 : vector<32x256xf32>
    %cst_72 = arith.constant 1.000000e+00 : f32
    %141 = vector.broadcast %cst_72 : f32 to vector<32x256xf32>
    %142 = arith.subf %140, %141 : vector<32x256xf32>
    %143 = arith.select %137, %135, %142 : vector<32x256xi1>, vector<32x256xf32>
    %144 = tpu.concatenate %19, %21, %23 in 0 : vector<16x256xf32>, vector<16x256xf32>, vector<16x256xf32> -> vector<48x256xf32>
    %cst_73 = arith.constant dense<0.000000e+00> : vector<32x256xf32>
    %145 = tpu.matmul %34, %144, %cst_73 {dimension_numbers = #tpu.dot_dimension_numbers<[1], [0], [0], [1], [0, 0, 1, 1], [], []>} : vector<32x48xf32>, vector<48x256xf32>, vector<32x256xf32> -> vector<32x256xf32>
    %146 = vector.broadcast %35 : vector<32x1xf32> to vector<32x256xf32>
    %147 = arith.addf %145, %146 : vector<32x256xf32>
    %cst_74 = arith.constant 0.000000e+00 : f32
    %148 = vector.broadcast %cst_74 : f32 to vector<32x256xf32>
    %149 = arith.cmpf ogt, %147, %148 : vector<32x256xf32>
    %cst_75 = arith.constant 0.000000e+00 : f32
    %150 = vector.broadcast %cst_75 : f32 to vector<32x256xf32>
    %151 = arith.minimumf %147, %150 : vector<32x256xf32>
    %152 = math.exp %151 : vector<32x256xf32>
    %cst_76 = arith.constant 1.000000e+00 : f32
    %153 = vector.broadcast %cst_76 : f32 to vector<32x256xf32>
    %154 = arith.subf %152, %153 : vector<32x256xf32>
    %155 = arith.select %149, %147, %154 : vector<32x256xi1>, vector<32x256xf32>
    %156 = tpu.concatenate %21, %23, %25 in 0 : vector<16x256xf32>, vector<16x256xf32>, vector<16x256xf32> -> vector<48x256xf32>
    %cst_77 = arith.constant dense<0.000000e+00> : vector<32x256xf32>
    %157 = tpu.matmul %34, %156, %cst_77 {dimension_numbers = #tpu.dot_dimension_numbers<[1], [0], [0], [1], [0, 0, 1, 1], [], []>} : vector<32x48xf32>, vector<48x256xf32>, vector<32x256xf32> -> vector<32x256xf32>
    %158 = vector.broadcast %35 : vector<32x1xf32> to vector<32x256xf32>
    %159 = arith.addf %157, %158 : vector<32x256xf32>
    %cst_78 = arith.constant 0.000000e+00 : f32
    %160 = vector.broadcast %cst_78 : f32 to vector<32x256xf32>
    %161 = arith.cmpf ogt, %159, %160 : vector<32x256xf32>
    %cst_79 = arith.constant 0.000000e+00 : f32
    %162 = vector.broadcast %cst_79 : f32 to vector<32x256xf32>
    %163 = arith.minimumf %159, %162 : vector<32x256xf32>
    %164 = math.exp %163 : vector<32x256xf32>
    %cst_80 = arith.constant 1.000000e+00 : f32
    %165 = vector.broadcast %cst_80 : f32 to vector<32x256xf32>
    %166 = arith.subf %164, %165 : vector<32x256xf32>
    %167 = arith.select %161, %159, %166 : vector<32x256xi1>, vector<32x256xf32>
    %168 = tpu.concatenate %23, %25, %27 in 0 : vector<16x256xf32>, vector<16x256xf32>, vector<16x256xf32> -> vector<48x256xf32>
    %cst_81 = arith.constant dense<0.000000e+00> : vector<32x256xf32>
    %169 = tpu.matmul %34, %168, %cst_81 {dimension_numbers = #tpu.dot_dimension_numbers<[1], [0], [0], [1], [0, 0, 1, 1], [], []>} : vector<32x48xf32>, vector<48x256xf32>, vector<32x256xf32> -> vector<32x256xf32>
    %170 = vector.broadcast %35 : vector<32x1xf32> to vector<32x256xf32>
    %171 = arith.addf %169, %170 : vector<32x256xf32>
    %cst_82 = arith.constant 0.000000e+00 : f32
    %172 = vector.broadcast %cst_82 : f32 to vector<32x256xf32>
    %173 = arith.cmpf ogt, %171, %172 : vector<32x256xf32>
    %cst_83 = arith.constant 0.000000e+00 : f32
    %174 = vector.broadcast %cst_83 : f32 to vector<32x256xf32>
    %175 = arith.minimumf %171, %174 : vector<32x256xf32>
    %176 = math.exp %175 : vector<32x256xf32>
    %cst_84 = arith.constant 1.000000e+00 : f32
    %177 = vector.broadcast %cst_84 : f32 to vector<32x256xf32>
    %178 = arith.subf %176, %177 : vector<32x256xf32>
    %179 = arith.select %173, %171, %178 : vector<32x256xi1>, vector<32x256xf32>
    %180 = tpu.concatenate %25, %27, %29 in 0 : vector<16x256xf32>, vector<16x256xf32>, vector<16x256xf32> -> vector<48x256xf32>
    %cst_85 = arith.constant dense<0.000000e+00> : vector<32x256xf32>
    %181 = tpu.matmul %34, %180, %cst_85 {dimension_numbers = #tpu.dot_dimension_numbers<[1], [0], [0], [1], [0, 0, 1, 1], [], []>} : vector<32x48xf32>, vector<48x256xf32>, vector<32x256xf32> -> vector<32x256xf32>
    %182 = vector.broadcast %35 : vector<32x1xf32> to vector<32x256xf32>
    %183 = arith.addf %181, %182 : vector<32x256xf32>
    %cst_86 = arith.constant 0.000000e+00 : f32
    %184 = vector.broadcast %cst_86 : f32 to vector<32x256xf32>
    %185 = arith.cmpf ogt, %183, %184 : vector<32x256xf32>
    %cst_87 = arith.constant 0.000000e+00 : f32
    %186 = vector.broadcast %cst_87 : f32 to vector<32x256xf32>
    %187 = arith.minimumf %183, %186 : vector<32x256xf32>
    %188 = math.exp %187 : vector<32x256xf32>
    %cst_88 = arith.constant 1.000000e+00 : f32
    %189 = vector.broadcast %cst_88 : f32 to vector<32x256xf32>
    %190 = arith.subf %188, %189 : vector<32x256xf32>
    %191 = arith.select %185, %183, %190 : vector<32x256xi1>, vector<32x256xf32>
    %192 = tpu.concatenate %27, %29, %31 in 0 : vector<16x256xf32>, vector<16x256xf32>, vector<16x256xf32> -> vector<48x256xf32>
    %cst_89 = arith.constant dense<0.000000e+00> : vector<32x256xf32>
    %193 = tpu.matmul %34, %192, %cst_89 {dimension_numbers = #tpu.dot_dimension_numbers<[1], [0], [0], [1], [0, 0, 1, 1], [], []>} : vector<32x48xf32>, vector<48x256xf32>, vector<32x256xf32> -> vector<32x256xf32>
    %194 = vector.broadcast %35 : vector<32x1xf32> to vector<32x256xf32>
    %195 = arith.addf %193, %194 : vector<32x256xf32>
    %cst_90 = arith.constant 0.000000e+00 : f32
    %196 = vector.broadcast %cst_90 : f32 to vector<32x256xf32>
    %197 = arith.cmpf ogt, %195, %196 : vector<32x256xf32>
    %cst_91 = arith.constant 0.000000e+00 : f32
    %198 = vector.broadcast %cst_91 : f32 to vector<32x256xf32>
    %199 = arith.minimumf %195, %198 : vector<32x256xf32>
    %200 = math.exp %199 : vector<32x256xf32>
    %cst_92 = arith.constant 1.000000e+00 : f32
    %201 = vector.broadcast %cst_92 : f32 to vector<32x256xf32>
    %202 = arith.subf %200, %201 : vector<32x256xf32>
    %203 = arith.select %197, %195, %202 : vector<32x256xi1>, vector<32x256xf32>
    %204 = tpu.concatenate %29, %31, %33 in 0 : vector<16x256xf32>, vector<16x256xf32>, vector<16x256xf32> -> vector<48x256xf32>
    %cst_93 = arith.constant dense<0.000000e+00> : vector<32x256xf32>
    %205 = tpu.matmul %34, %204, %cst_93 {dimension_numbers = #tpu.dot_dimension_numbers<[1], [0], [0], [1], [0, 0, 1, 1], [], []>} : vector<32x48xf32>, vector<48x256xf32>, vector<32x256xf32> -> vector<32x256xf32>
    %206 = vector.broadcast %35 : vector<32x1xf32> to vector<32x256xf32>
    %207 = arith.addf %205, %206 : vector<32x256xf32>
    %cst_94 = arith.constant 0.000000e+00 : f32
    %208 = vector.broadcast %cst_94 : f32 to vector<32x256xf32>
    %209 = arith.cmpf ogt, %207, %208 : vector<32x256xf32>
    %cst_95 = arith.constant 0.000000e+00 : f32
    %210 = vector.broadcast %cst_95 : f32 to vector<32x256xf32>
    %211 = arith.minimumf %207, %210 : vector<32x256xf32>
    %212 = math.exp %211 : vector<32x256xf32>
    %cst_96 = arith.constant 1.000000e+00 : f32
    %213 = vector.broadcast %cst_96 : f32 to vector<32x256xf32>
    %214 = arith.subf %212, %213 : vector<32x256xf32>
    %215 = arith.select %209, %207, %214 : vector<32x256xi1>, vector<32x256xf32>
    %c0_97 = arith.constant 0 : index
    %c0_98 = arith.constant 0 : index
    %216 = vector.load %arg4[%c0_97, %c0_98] : memref<32x96xf32, #tpu.memory_space<vmem>>, vector<32x96xf32>
    %c0_99 = arith.constant 0 : index
    %c0_100 = arith.constant 0 : index
    %217 = vector.load %arg5[%c0_99, %c0_100] : memref<32x1xf32, #tpu.memory_space<vmem>>, vector<32x1xf32>
    %218 = tpu.concatenate %47, %59, %71 in 0 : vector<32x256xf32>, vector<32x256xf32>, vector<32x256xf32> -> vector<96x256xf32>
    %cst_101 = arith.constant dense<0.000000e+00> : vector<32x256xf32>
    %219 = tpu.matmul %216, %218, %cst_101 {dimension_numbers = #tpu.dot_dimension_numbers<[1], [0], [0], [1], [0, 0, 1, 1], [], []>} : vector<32x96xf32>, vector<96x256xf32>, vector<32x256xf32> -> vector<32x256xf32>
    %220 = vector.broadcast %217 : vector<32x1xf32> to vector<32x256xf32>
    %221 = arith.addf %219, %220 : vector<32x256xf32>
    %cst_102 = arith.constant 0.000000e+00 : f32
    %222 = vector.broadcast %cst_102 : f32 to vector<32x256xf32>
    %223 = arith.cmpf ogt, %221, %222 : vector<32x256xf32>
    %cst_103 = arith.constant 0.000000e+00 : f32
    %224 = vector.broadcast %cst_103 : f32 to vector<32x256xf32>
    %225 = arith.minimumf %221, %224 : vector<32x256xf32>
    %226 = math.exp %225 : vector<32x256xf32>
    %cst_104 = arith.constant 1.000000e+00 : f32
    %227 = vector.broadcast %cst_104 : f32 to vector<32x256xf32>
    %228 = arith.subf %226, %227 : vector<32x256xf32>
    %229 = arith.select %223, %221, %228 : vector<32x256xi1>, vector<32x256xf32>
    %230 = tpu.concatenate %71, %83, %95 in 0 : vector<32x256xf32>, vector<32x256xf32>, vector<32x256xf32> -> vector<96x256xf32>
    %cst_105 = arith.constant dense<0.000000e+00> : vector<32x256xf32>
    %231 = tpu.matmul %216, %230, %cst_105 {dimension_numbers = #tpu.dot_dimension_numbers<[1], [0], [0], [1], [0, 0, 1, 1], [], []>} : vector<32x96xf32>, vector<96x256xf32>, vector<32x256xf32> -> vector<32x256xf32>
    %232 = vector.broadcast %217 : vector<32x1xf32> to vector<32x256xf32>
    %233 = arith.addf %231, %232 : vector<32x256xf32>
    %cst_106 = arith.constant 0.000000e+00 : f32
    %234 = vector.broadcast %cst_106 : f32 to vector<32x256xf32>
    %235 = arith.cmpf ogt, %233, %234 : vector<32x256xf32>
    %cst_107 = arith.constant 0.000000e+00 : f32
    %236 = vector.broadcast %cst_107 : f32 to vector<32x256xf32>
    %237 = arith.minimumf %233, %236 : vector<32x256xf32>
    %238 = math.exp %237 : vector<32x256xf32>
    %cst_108 = arith.constant 1.000000e+00 : f32
    %239 = vector.broadcast %cst_108 : f32 to vector<32x256xf32>
    %240 = arith.subf %238, %239 : vector<32x256xf32>
    %241 = arith.select %235, %233, %240 : vector<32x256xi1>, vector<32x256xf32>
    %242 = tpu.concatenate %95, %107, %119 in 0 : vector<32x256xf32>, vector<32x256xf32>, vector<32x256xf32> -> vector<96x256xf32>
    %cst_109 = arith.constant dense<0.000000e+00> : vector<32x256xf32>
    %243 = tpu.matmul %216, %242, %cst_109 {dimension_numbers = #tpu.dot_dimension_numbers<[1], [0], [0], [1], [0, 0, 1, 1], [], []>} : vector<32x96xf32>, vector<96x256xf32>, vector<32x256xf32> -> vector<32x256xf32>
    %244 = vector.broadcast %217 : vector<32x1xf32> to vector<32x256xf32>
    %245 = arith.addf %243, %244 : vector<32x256xf32>
    %cst_110 = arith.constant 0.000000e+00 : f32
    %246 = vector.broadcast %cst_110 : f32 to vector<32x256xf32>
    %247 = arith.cmpf ogt, %245, %246 : vector<32x256xf32>
    %cst_111 = arith.constant 0.000000e+00 : f32
    %248 = vector.broadcast %cst_111 : f32 to vector<32x256xf32>
    %249 = arith.minimumf %245, %248 : vector<32x256xf32>
    %250 = math.exp %249 : vector<32x256xf32>
    %cst_112 = arith.constant 1.000000e+00 : f32
    %251 = vector.broadcast %cst_112 : f32 to vector<32x256xf32>
    %252 = arith.subf %250, %251 : vector<32x256xf32>
    %253 = arith.select %247, %245, %252 : vector<32x256xi1>, vector<32x256xf32>
    %254 = tpu.concatenate %119, %131, %143 in 0 : vector<32x256xf32>, vector<32x256xf32>, vector<32x256xf32> -> vector<96x256xf32>
    %cst_113 = arith.constant dense<0.000000e+00> : vector<32x256xf32>
    %255 = tpu.matmul %216, %254, %cst_113 {dimension_numbers = #tpu.dot_dimension_numbers<[1], [0], [0], [1], [0, 0, 1, 1], [], []>} : vector<32x96xf32>, vector<96x256xf32>, vector<32x256xf32> -> vector<32x256xf32>
    %256 = vector.broadcast %217 : vector<32x1xf32> to vector<32x256xf32>
    %257 = arith.addf %255, %256 : vector<32x256xf32>
    %cst_114 = arith.constant 0.000000e+00 : f32
    %258 = vector.broadcast %cst_114 : f32 to vector<32x256xf32>
    %259 = arith.cmpf ogt, %257, %258 : vector<32x256xf32>
    %cst_115 = arith.constant 0.000000e+00 : f32
    %260 = vector.broadcast %cst_115 : f32 to vector<32x256xf32>
    %261 = arith.minimumf %257, %260 : vector<32x256xf32>
    %262 = math.exp %261 : vector<32x256xf32>
    %cst_116 = arith.constant 1.000000e+00 : f32
    %263 = vector.broadcast %cst_116 : f32 to vector<32x256xf32>
    %264 = arith.subf %262, %263 : vector<32x256xf32>
    %265 = arith.select %259, %257, %264 : vector<32x256xi1>, vector<32x256xf32>
    %266 = tpu.concatenate %143, %155, %167 in 0 : vector<32x256xf32>, vector<32x256xf32>, vector<32x256xf32> -> vector<96x256xf32>
    %cst_117 = arith.constant dense<0.000000e+00> : vector<32x256xf32>
    %267 = tpu.matmul %216, %266, %cst_117 {dimension_numbers = #tpu.dot_dimension_numbers<[1], [0], [0], [1], [0, 0, 1, 1], [], []>} : vector<32x96xf32>, vector<96x256xf32>, vector<32x256xf32> -> vector<32x256xf32>
    %268 = vector.broadcast %217 : vector<32x1xf32> to vector<32x256xf32>
    %269 = arith.addf %267, %268 : vector<32x256xf32>
    %cst_118 = arith.constant 0.000000e+00 : f32
    %270 = vector.broadcast %cst_118 : f32 to vector<32x256xf32>
    %271 = arith.cmpf ogt, %269, %270 : vector<32x256xf32>
    %cst_119 = arith.constant 0.000000e+00 : f32
    %272 = vector.broadcast %cst_119 : f32 to vector<32x256xf32>
    %273 = arith.minimumf %269, %272 : vector<32x256xf32>
    %274 = math.exp %273 : vector<32x256xf32>
    %cst_120 = arith.constant 1.000000e+00 : f32
    %275 = vector.broadcast %cst_120 : f32 to vector<32x256xf32>
    %276 = arith.subf %274, %275 : vector<32x256xf32>
    %277 = arith.select %271, %269, %276 : vector<32x256xi1>, vector<32x256xf32>
    %278 = tpu.concatenate %167, %179, %191 in 0 : vector<32x256xf32>, vector<32x256xf32>, vector<32x256xf32> -> vector<96x256xf32>
    %cst_121 = arith.constant dense<0.000000e+00> : vector<32x256xf32>
    %279 = tpu.matmul %216, %278, %cst_121 {dimension_numbers = #tpu.dot_dimension_numbers<[1], [0], [0], [1], [0, 0, 1, 1], [], []>} : vector<32x96xf32>, vector<96x256xf32>, vector<32x256xf32> -> vector<32x256xf32>
    %280 = vector.broadcast %217 : vector<32x1xf32> to vector<32x256xf32>
    %281 = arith.addf %279, %280 : vector<32x256xf32>
    %cst_122 = arith.constant 0.000000e+00 : f32
    %282 = vector.broadcast %cst_122 : f32 to vector<32x256xf32>
    %283 = arith.cmpf ogt, %281, %282 : vector<32x256xf32>
    %cst_123 = arith.constant 0.000000e+00 : f32
    %284 = vector.broadcast %cst_123 : f32 to vector<32x256xf32>
    %285 = arith.minimumf %281, %284 : vector<32x256xf32>
    %286 = math.exp %285 : vector<32x256xf32>
    %cst_124 = arith.constant 1.000000e+00 : f32
    %287 = vector.broadcast %cst_124 : f32 to vector<32x256xf32>
    %288 = arith.subf %286, %287 : vector<32x256xf32>
    %289 = arith.select %283, %281, %288 : vector<32x256xi1>, vector<32x256xf32>
    %290 = tpu.concatenate %191, %203, %215 in 0 : vector<32x256xf32>, vector<32x256xf32>, vector<32x256xf32> -> vector<96x256xf32>
    %cst_125 = arith.constant dense<0.000000e+00> : vector<32x256xf32>
    %291 = tpu.matmul %216, %290, %cst_125 {dimension_numbers = #tpu.dot_dimension_numbers<[1], [0], [0], [1], [0, 0, 1, 1], [], []>} : vector<32x96xf32>, vector<96x256xf32>, vector<32x256xf32> -> vector<32x256xf32>
    %292 = vector.broadcast %217 : vector<32x1xf32> to vector<32x256xf32>
    %293 = arith.addf %291, %292 : vector<32x256xf32>
    %cst_126 = arith.constant 0.000000e+00 : f32
    %294 = vector.broadcast %cst_126 : f32 to vector<32x256xf32>
    %295 = arith.cmpf ogt, %293, %294 : vector<32x256xf32>
    %cst_127 = arith.constant 0.000000e+00 : f32
    %296 = vector.broadcast %cst_127 : f32 to vector<32x256xf32>
    %297 = arith.minimumf %293, %296 : vector<32x256xf32>
    %298 = math.exp %297 : vector<32x256xf32>
    %cst_128 = arith.constant 1.000000e+00 : f32
    %299 = vector.broadcast %cst_128 : f32 to vector<32x256xf32>
    %300 = arith.subf %298, %299 : vector<32x256xf32>
    %301 = arith.select %295, %293, %300 : vector<32x256xi1>, vector<32x256xf32>
    %c0_129 = arith.constant 0 : index
    %c0_130 = arith.constant 0 : index
    %302 = vector.load %arg6[%c0_129, %c0_130] : memref<32x96xf32, #tpu.memory_space<vmem>>, vector<32x96xf32>
    %c0_131 = arith.constant 0 : index
    %c0_132 = arith.constant 0 : index
    %303 = vector.load %arg7[%c0_131, %c0_132] : memref<32x1xf32, #tpu.memory_space<vmem>>, vector<32x1xf32>
    %304 = tpu.concatenate %229, %241, %253 in 0 : vector<32x256xf32>, vector<32x256xf32>, vector<32x256xf32> -> vector<96x256xf32>
    %cst_133 = arith.constant dense<0.000000e+00> : vector<32x256xf32>
    %305 = tpu.matmul %302, %304, %cst_133 {dimension_numbers = #tpu.dot_dimension_numbers<[1], [0], [0], [1], [0, 0, 1, 1], [], []>} : vector<32x96xf32>, vector<96x256xf32>, vector<32x256xf32> -> vector<32x256xf32>
    %306 = vector.broadcast %303 : vector<32x1xf32> to vector<32x256xf32>
    %307 = arith.addf %305, %306 : vector<32x256xf32>
    %cst_134 = arith.constant 0.000000e+00 : f32
    %308 = vector.broadcast %cst_134 : f32 to vector<32x256xf32>
    %309 = arith.cmpf ogt, %307, %308 : vector<32x256xf32>
    %cst_135 = arith.constant 0.000000e+00 : f32
    %310 = vector.broadcast %cst_135 : f32 to vector<32x256xf32>
    %311 = arith.minimumf %307, %310 : vector<32x256xf32>
    %312 = math.exp %311 : vector<32x256xf32>
    %cst_136 = arith.constant 1.000000e+00 : f32
    %313 = vector.broadcast %cst_136 : f32 to vector<32x256xf32>
    %314 = arith.subf %312, %313 : vector<32x256xf32>
    %315 = arith.select %309, %307, %314 : vector<32x256xi1>, vector<32x256xf32>
    %316 = tpu.concatenate %253, %265, %277 in 0 : vector<32x256xf32>, vector<32x256xf32>, vector<32x256xf32> -> vector<96x256xf32>
    %cst_137 = arith.constant dense<0.000000e+00> : vector<32x256xf32>
    %317 = tpu.matmul %302, %316, %cst_137 {dimension_numbers = #tpu.dot_dimension_numbers<[1], [0], [0], [1], [0, 0, 1, 1], [], []>} : vector<32x96xf32>, vector<96x256xf32>, vector<32x256xf32> -> vector<32x256xf32>
    %318 = vector.broadcast %303 : vector<32x1xf32> to vector<32x256xf32>
    %319 = arith.addf %317, %318 : vector<32x256xf32>
    %cst_138 = arith.constant 0.000000e+00 : f32
    %320 = vector.broadcast %cst_138 : f32 to vector<32x256xf32>
    %321 = arith.cmpf ogt, %319, %320 : vector<32x256xf32>
    %cst_139 = arith.constant 0.000000e+00 : f32
    %322 = vector.broadcast %cst_139 : f32 to vector<32x256xf32>
    %323 = arith.minimumf %319, %322 : vector<32x256xf32>
    %324 = math.exp %323 : vector<32x256xf32>
    %cst_140 = arith.constant 1.000000e+00 : f32
    %325 = vector.broadcast %cst_140 : f32 to vector<32x256xf32>
    %326 = arith.subf %324, %325 : vector<32x256xf32>
    %327 = arith.select %321, %319, %326 : vector<32x256xi1>, vector<32x256xf32>
    %328 = tpu.concatenate %277, %289, %301 in 0 : vector<32x256xf32>, vector<32x256xf32>, vector<32x256xf32> -> vector<96x256xf32>
    %cst_141 = arith.constant dense<0.000000e+00> : vector<32x256xf32>
    %329 = tpu.matmul %302, %328, %cst_141 {dimension_numbers = #tpu.dot_dimension_numbers<[1], [0], [0], [1], [0, 0, 1, 1], [], []>} : vector<32x96xf32>, vector<96x256xf32>, vector<32x256xf32> -> vector<32x256xf32>
    %330 = vector.broadcast %303 : vector<32x1xf32> to vector<32x256xf32>
    %331 = arith.addf %329, %330 : vector<32x256xf32>
    %cst_142 = arith.constant 0.000000e+00 : f32
    %332 = vector.broadcast %cst_142 : f32 to vector<32x256xf32>
    %333 = arith.cmpf ogt, %331, %332 : vector<32x256xf32>
    %cst_143 = arith.constant 0.000000e+00 : f32
    %334 = vector.broadcast %cst_143 : f32 to vector<32x256xf32>
    %335 = arith.minimumf %331, %334 : vector<32x256xf32>
    %336 = math.exp %335 : vector<32x256xf32>
    %cst_144 = arith.constant 1.000000e+00 : f32
    %337 = vector.broadcast %cst_144 : f32 to vector<32x256xf32>
    %338 = arith.subf %336, %337 : vector<32x256xf32>
    %339 = arith.select %333, %331, %338 : vector<32x256xi1>, vector<32x256xf32>
    %c0_145 = arith.constant 0 : index
    %c0_146 = arith.constant 0 : index
    %340 = vector.load %arg8[%c0_145, %c0_146] : memref<32x96xf32, #tpu.memory_space<vmem>>, vector<32x96xf32>
    %c0_147 = arith.constant 0 : index
    %c0_148 = arith.constant 0 : index
    %341 = vector.load %arg9[%c0_147, %c0_148] : memref<32x1xf32, #tpu.memory_space<vmem>>, vector<32x1xf32>
    %342 = tpu.concatenate %315, %327, %339 in 0 : vector<32x256xf32>, vector<32x256xf32>, vector<32x256xf32> -> vector<96x256xf32>
    %cst_149 = arith.constant dense<0.000000e+00> : vector<32x256xf32>
    %343 = tpu.matmul %340, %342, %cst_149 {dimension_numbers = #tpu.dot_dimension_numbers<[1], [0], [0], [1], [0, 0, 1, 1], [], []>} : vector<32x96xf32>, vector<96x256xf32>, vector<32x256xf32> -> vector<32x256xf32>
    %344 = vector.broadcast %341 : vector<32x1xf32> to vector<32x256xf32>
    %345 = arith.addf %343, %344 : vector<32x256xf32>
    %cst_150 = arith.constant 0.000000e+00 : f32
    %346 = vector.broadcast %cst_150 : f32 to vector<32x256xf32>
    %347 = arith.cmpf ogt, %345, %346 : vector<32x256xf32>
    %cst_151 = arith.constant 0.000000e+00 : f32
    %348 = vector.broadcast %cst_151 : f32 to vector<32x256xf32>
    %349 = arith.minimumf %345, %348 : vector<32x256xf32>
    %350 = math.exp %349 : vector<32x256xf32>
    %cst_152 = arith.constant 1.000000e+00 : f32
    %351 = vector.broadcast %cst_152 : f32 to vector<32x256xf32>
    %352 = arith.subf %350, %351 : vector<32x256xf32>
    %353 = arith.select %347, %345, %352 : vector<32x256xi1>, vector<32x256xf32>
    %c0_153 = arith.constant 0 : index
    %c0_154 = arith.constant 0 : index
    %354 = vector.load %arg10[%c0_153, %c0_154] : memref<16x32xf32, #tpu.memory_space<vmem>>, vector<16x32xf32>
    %cst_155 = arith.constant dense<0.000000e+00> : vector<16x256xf32>
    %355 = tpu.matmul %354, %353, %cst_155 {dimension_numbers = #tpu.dot_dimension_numbers<[1], [0], [0], [1], [0, 0, 1, 1], [], []>} : vector<16x32xf32>, vector<32x256xf32>, vector<16x256xf32> -> vector<16x256xf32>
    %c0_156 = arith.constant 0 : index
    %c0_157 = arith.constant 0 : index
    %356 = vector.load %arg11[%c0_156, %c0_157] : memref<16x1xf32, #tpu.memory_space<vmem>>, vector<16x1xf32>
    %357 = vector.broadcast %356 : vector<16x1xf32> to vector<16x256xf32>
    %358 = arith.addf %355, %357 : vector<16x256xf32>
    %c0_158 = arith.constant 0 : index
    %c0_159 = arith.constant 0 : index
    %359 = vector.load %arg12[%c0_158, %c0_159] : memref<16x256xf32, #tpu.memory_space<vmem>>, vector<16x256xf32>
    tpu.vector_store %arg12[%c0_158, %c0_159], %358 {strides = array<i32>} : memref<16x256xf32, #tpu.memory_space<vmem>>, vector<16x256xf32>,
    return
  }
  func.func @transform_0(%arg0: i32) -> (i32, i32, i32) {
    %c0_i32 = arith.constant 0 : i32
    %c0_i32_0 = arith.constant 0 : i32
    %c0_i32_1 = arith.constant 0 : i32
    return %c0_i32, %c0_i32_0, %arg0 : i32, i32, i32
  }
  func.func @transform_1(%arg0: i32) -> (i32, i32) {
    %c0_i32 = arith.constant 0 : i32
    %c0_i32_0 = arith.constant 0 : i32
    %c0_i32_1 = arith.constant 0 : i32
    return %c0_i32, %c0_i32_0 : i32, i32
  }
  func.func @transform_2(%arg0: i32) -> (i32, i32) {
    %c0_i32 = arith.constant 0 : i32
    %c0_i32_0 = arith.constant 0 : i32
    %c0_i32_1 = arith.constant 0 : i32
    return %c0_i32, %c0_i32_0 : i32, i32
  }
  func.func @transform_3(%arg0: i32) -> (i32, i32) {
    %c0_i32 = arith.constant 0 : i32
    %c0_i32_0 = arith.constant 0 : i32
    %c0_i32_1 = arith.constant 0 : i32
    return %c0_i32, %c0_i32_0 : i32, i32
  }
  func.func @transform_4(%arg0: i32) -> (i32, i32) {
    %c0_i32 = arith.constant 0 : i32
    %c0_i32_0 = arith.constant 0 : i32
    %c0_i32_1 = arith.constant 0 : i32
    return %c0_i32, %c0_i32_0 : i32, i32
  }
  func.func @transform_5(%arg0: i32) -> (i32, i32) {
    %c0_i32 = arith.constant 0 : i32
    %c0_i32_0 = arith.constant 0 : i32
    %c0_i32_1 = arith.constant 0 : i32
    return %c0_i32, %c0_i32_0 : i32, i32
  }
  func.func @transform_6(%arg0: i32) -> (i32, i32) {
    %c0_i32 = arith.constant 0 : i32
    %c0_i32_0 = arith.constant 0 : i32
    %c0_i32_1 = arith.constant 0 : i32
    return %c0_i32, %c0_i32_0 : i32, i32
  }
  func.func @transform_7(%arg0: i32) -> (i32, i32) {
    %c0_i32 = arith.constant 0 : i32
    %c0_i32_0 = arith.constant 0 : i32
    %c0_i32_1 = arith.constant 0 : i32
    return %c0_i32, %c0_i32_0 : i32, i32
  }
  func.func @transform_8(%arg0: i32) -> (i32, i32) {
    %c0_i32 = arith.constant 0 : i32
    %c0_i32_0 = arith.constant 0 : i32
    %c0_i32_1 = arith.constant 0 : i32
    return %c0_i32, %c0_i32_0 : i32, i32
  }
  func.func @transform_9(%arg0: i32) -> (i32, i32) {
    %c0_i32 = arith.constant 0 : i32
    %c0_i32_0 = arith.constant 0 : i32
    %c0_i32_1 = arith.constant 0 : i32
    return %c0_i32, %c0_i32_0 : i32, i32
  }
  func.func @transform_10(%arg0: i32) -> (i32, i32) {
    %c0_i32 = arith.constant 0 : i32
    %c0_i32_0 = arith.constant 0 : i32
    %c0_i32_1 = arith.constant 0 : i32
    return %c0_i32, %c0_i32_0 : i32, i32
  }
  func.func @transform_11(%arg0: i32) -> (i32, i32) {
    %c0_i32 = arith.constant 0 : i32
    %c0_i32_0 = arith.constant 0 : i32
    return %c0_i32, %arg0 : i32, i32
  }
}

</mosaic_0001>

<bundles_post_ra>
// kernel: tpu_custom_call.1
= control target key start
LH: loop header
LB: loop body
LE: loop exit
PB: predicated region body
PF: predicated region fallthrough
CT: control target
= control target key end

     0   :  { %16 = vsyncpa [#allocation3], 0  ;;  %s7618_s0 = inlined_call_operand.hbm [shape: f32[17,16,256], index: 0, kind: input, shape index: {}]   ;;  %s7619_s1 = inlined_call_operand.vmem [shape: f32[32,48], index: 1, kind: input, shape index: {}]   ;;  %s7620_s2 = inlined_call_operand.vmem [shape: f32[32,1], index: 2, kind: input, shape index: {}]   ;;  %s7621_s3 = inlined_call_operand.vmem [shape: f32[32,96], index: 3, kind: input, shape index: {}]   ;;  %s7622_s4 = inlined_call_operand.vmem [shape: f32[32,1], index: 4, kind: input, shape index: {}]   ;;  %s7623_s5 = inlined_call_operand.vmem [shape: f32[32,96], index: 5, kind: input, shape index: {}]   ;;  %s7624_s6 = inlined_call_operand.vmem [shape: f32[32,1], index: 6, kind: input, shape index: {}]   ;;  %s7625_s7 = inlined_call_operand.vmem [shape: f32[32,96], index: 7, kind: input, shape index: {}]   ;;  %s7626_s8 = inlined_call_operand.vmem [shape: f32[32,1], index: 8, kind: input, shape index: {}]   ;;  %s7627_s9 = inlined_call_operand.vmem [shape: f32[16,32], index: 9, kind: input, shape index: {}]   ;;  %s7628_s10 = inlined_call_operand.vmem [shape: f32[16,1], index: 10, kind: input, shape index: {}]   ;;  %s7629_s11 = inlined_call_operand.hbm [shape: f32[16,256], index: 11, kind: output, shape index: {}]  }
   0x1   :  { %17 = vsyncpa [#allocation4], 0  ;;  %s5222_s17 = smov [#allocation2]   ;;  %s5174_s21 = scalar_lea.hbm %s7618_s0, 8704 }
   0x2   :  { %s23_s18 = sshll.u32 %s5222_s17, 4  ;;  %p5175_p0 = scmp.ne.s32.totalorder %s7618_s0, %s5174_s21  ;;  %s24_s18 = int_to_ptr.vmem [resolvable:$true] %s23_s18 }
   0x3   :  { %p5178_p1 = scmp.lt.u32.totalorder %s5174_s21, %s7618_s0 }
   0x5   :  { %p5180_p2 = pnand %p5178_p1, %p5175_p0 }
   0x7   :  { %5183 = shalt.err (!%p5180_p2)
}
   0x8   :  { %s5184_s26 = scalar_lea.vmem %s24_s18, 8704  ;;  %p5189_p4 = scmp.lt.s32.totalorder %s24_s18, %s24_s18 }
   0x9   :  { %p5185_p3 = scmp.ne.s32.totalorder %s24_s18, %s5184_s26  ;;  %p5190_p5 = scmp.lt.s32.totalorder %s5184_s26, %s5184_s26 }
   0xb   :  { %p5191_p6 = por %p5190_p5, %p5189_p4 }
   0xd   :  { %p5192_p7 = pnand %p5191_p6, %p5185_p3 }
   0xf   :  { %5195 = shalt.err (!%p5192_p7)
}
  0x10   :  { %s5223_s27 = smov 256   ;;  %s5224_s28 = smov 16  }
  0x11   :  { %29 = dma.hbm_to_vmem [thread:$0]  %s7618_s0, 8704, %s24_s18, [#allocation3], %s5223_s27, %s5223_s27, %s5224_s28  }
  0x12   :  { %5218 = dma.done.wait [#allocation3], 8704  }
  0x13   :  { %5219 = vsyncadd [#allocation3], 4294958592  ;;  %v7630_v0 = vmov 0.0   ;;  %v5226_v1 = vmov 0   ;;  %v54_v2 = vld [vmem:[#allocation2 + $0x8] sm:$0xff]  ;;  %v56_v3 = vld [vmem:[#allocation2 + $0x18] sm:$0xff] }
  0x14   :  { %242 = vmatprep.mubr.f32.mxu0 %v7630_v0  ;;  %379 = vmatprep.mubr.f32.mxu1 %v7630_v0  ;;  %v59_v4 = vld [vmem:[#allocation2 + $0x28] sm:$0xff]  ;;  %v4294_v5 = vpack.c.bf16 %v56_v3, %v54_v2  ;;  %v61_v6 = vld [vmem:[#allocation2 + $0x38] sm:$0xff]  ;;  %v53_v7 = vld [vmem:[#allocation2] sm:$0xff]  ;;  %vm165_vm0 = vcmask 392192   ;;  %s5227_s19 = smov [#allocation5]  }
  0x15   :  { %4752 = vset.pattern.permute.xlu0 %v5226_v1  ;;  %4753 = vset.pattern.permute.xlu1 %v5226_v1  ;;  %v55_v8 = vld [vmem:[#allocation2 + $0x10] sm:$0xff]  ;;  %v4298_v9 = vpack.c.bf16 %v61_v6, %v59_v4  ;;  %v58_v11 = vld [vmem:[#allocation2 + $0x20] sm:$0xff]  ;;  %v64_v13 = vld [vmem:[#allocation2 + $0x48] sm:$0xff]  ;;  %s3968_s20 = sshll.u32 %s5227_s19, 4  ;;  %s3969_s20 = int_to_ptr.vmem [resolvable:$true] %s3968_s20 }
  0x16   :  { %v4296_v10 = vpack.c.bf16 %v55_v8, %v53_v7  ;;  %v60_v12 = vld [vmem:[#allocation2 + $0x30] sm:$0xff]  ;;  %4295 = vmatprep.subr.bf16.mxu0 %v4294_v5  ;;  %v66_v15 = vld [vmem:[#allocation2 + $0x58] sm:$0xff]  ;;  %v63_v16 = vld [vmem:[#allocation2 + $0x40] sm:$0xff]  ;;  %s5196_s21 = scalar_lea.vmem %s3969_s20, 512  ;;  %p5201_p9 = scmp.lt.s32.totalorder %s3969_s20, %s3969_s20 }
  0x17   :  { %v4300_v14 = vpack.c.bf16 %v60_v12, %v58_v11  ;;  %v65_v17 = vld [vmem:[#allocation2 + $0x50] sm:$0xff]  ;;  %4307 = vmatprep.subr.bf16.mxu1 %v4298_v9  ;;  %v4302_v18 = vpack.c.bf16 %v66_v15, %v64_v13  ;;  %v69_v19 = vld [vmem:[#allocation2 + $0x68] sm:$0xff]  ;;  %v71_v20 = vld [vmem:[#allocation2 + $0x78] sm:$0xff]  ;;  %p5197_p8 = scmp.ne.s32.totalorder %s3969_s20, %s5196_s21  ;;  %p5202_p10 = scmp.lt.s32.totalorder %s5196_s21, %s5196_s21 }
  0x18   :  { %4297 = vmatpush1.bf16.msra.mxu0 %v4296_v10  ;;  %v4304_v21 = vpack.c.bf16 %v65_v17, %v63_v16  ;;  %v4314_v22 = vpack.c.bf16 %v71_v20, %v69_v19  ;;  %v68_v23 = vld [vmem:[#allocation2 + $0x60] sm:$0xff]  ;;  %v70_v24 = vld [vmem:[#allocation2 + $0x70] sm:$0xff]  ;;  %v74_v27 = vld [vmem:[#allocation2 + $0x88] sm:$0xff] }
  0x19   :  { %4309 = vmatpush1.bf16.msra.mxu1 %v4300_v14  ;;  %4299 = vmatprep.subr.bf16.mxu0 %v4298_v9  ;;  %v4316_v25 = vpack.c.bf16 %v70_v24, %v68_v23  ;;  %v5308_v26 = vld [vmem:[%s7619_s1] sm:$0xff]  ;;  %v76_v28 = vld [vmem:[#allocation2 + $0x98] sm:$0xff]  ;;  %v75_v31 = vld [vmem:[#allocation2 + $0x90] sm:$0xff]  ;;  %p5203_p11 = por %p5202_p10, %p5201_p9 }
  0x1a   :  { %4311 = vmatprep.subr.bf16.mxu1 %v4302_v18  ;;  %v4326_v29 = vpack.c.bf16 %v76_v28, %v74_v27  ;;  %v73_v30 = vld [vmem:[#allocation2 + $0x80] sm:$0xff]  ;;  %v5318_v32 = vld [vmem:[%s7619_s1 + $0x8] sm:$0xff]  ;;  %v81_v34 = vld [vmem:[#allocation2 + $0xb8] sm:$0xff] }
  0x1b   :  { %v79_v33 = vld [vmem:[#allocation2 + $0xa8] sm:$0xff]  ;;  %v4328_v35 = vpack.c.bf16 %v75_v31, %v73_v30  ;;  %v78_v37 = vld [vmem:[#allocation2 + $0xa0] sm:$0xff]  ;;  %v80_v38 = vld [vmem:[#allocation2 + $0xb0] sm:$0xff]  ;;  %p5204_p12 = pnand %p5203_p11, %p5197_p8 }
  0x1c   :  { %4301 = vmatpush1.bf16.msra.mxu0 %v4300_v14  ;;  %v4338_v36 = vpack.c.bf16 %v81_v34, %v79_v33  ;;  %v5329_v39 = vld [vmem:[%s7619_s1 + $0x10] sm:$0xff]  ;;  %v4340_v40 = vpack.c.bf16 %v80_v38, %v78_v37  ;;  %v5340_v41 = vld [vmem:[%s7619_s1 + $0x18] sm:$0xff]  ;;  %v141_v42 = vld [vmem:[%s7620_s2] sm:$0xff] }
  0x1d   :  { %4313 = vmatpush1.bf16.msra.mxu1 %v4304_v21  ;;  %4303 = vmatprep.subr.bf16.mxu0 %v4302_v18  ;;  %v143_v43 = vld [vmem:[%s7620_s2 + $0x10] sm:$0xff]  ;;  %v84_v44 = vld [vmem:[#allocation2 + $0xc8] sm:$0xff]  ;;  %v86_v45 = vld [vmem:[#allocation2 + $0xd8] sm:$0xff] }
  0x1e   :  { %4315 = vmatprep.subr.bf16.mxu1 %v4314_v22  ;;  %147 = vperm.xlu0 %4752, %v141_v42   ;;  %v4350_v46 = vpack.c.bf16 %v86_v45, %v84_v44  ;;  %v83_v47 = vld [vmem:[#allocation2 + $0xc0] sm:$0xff]  ;;  %v85_v48 = vld [vmem:[#allocation2 + $0xd0] sm:$0xff]  ;;  %v89_v49 = vld [vmem:[#allocation2 + $0xe8] sm:$0xff] }
  0x1f   :  { %157 = vperm.xlu1 %4753, %v143_v43   ;;  %v91_v50 = vld [vmem:[#allocation2 + $0xf8] sm:$0xff]  ;;  %v4352_v51 = vpack.c.bf16 %v85_v48, %v83_v47  ;;  %v88_v53 = vld [vmem:[#allocation2 + $0xe0] sm:$0xff]  ;;  %v90_v54 = vld [vmem:[#allocation2 + $0xf0] sm:$0xff] }
  0x20   :  { %4305 = vmatpush1.bf16.msra.mxu0 %v4304_v21  ;;  %v4362_v52 = vpack.c.bf16 %v91_v50, %v89_v49  ;;  %v4364_v55 = vpack.c.bf16 %v90_v54, %v88_v53  ;;  %v142_v56 = vld [vmem:[%s7620_s2 + $0x8] sm:$0xff]  ;;  %v144_v57 = vld [vmem:[%s7620_s2 + $0x18] sm:$0xff]  ;;  %v93_v61 = vld [vmem:[#allocation2 + $0x100] sm:$0xff] }
  0x21   :  { %4317 = vmatpush1.bf16.msra.mxu1 %v4316_v25  ;;  %4319 = vmatprep.subr.bf16.mxu0 %v4302_v18  ;;  %v94_v58 = vld [vmem:[#allocation2 + $0x108] sm:$0xff]  ;;  %v96_v59 = vld [vmem:[#allocation2 + $0x118] sm:$0xff]  ;;  %v95_v62 = vld [vmem:[#allocation2 + $0x110] sm:$0xff] }
  0x22   :  { %4331 = vmatprep.subr.bf16.mxu1 %v4314_v22  ;;  %152 = vperm.xlu0 %4752, %v142_v56   ;;  %v4374_v60 = vpack.c.bf16 %v96_v59, %v94_v58  ;;  %v99_v63 = vld [vmem:[#allocation2 + $0x128] sm:$0xff]  ;;  %v101_v1 = vld [vmem:[#allocation2 + $0x138] sm:$0xff]  ;;  %v4376_v2 = vpack.c.bf16 %v95_v62, %v93_v61  ;;  %v98_v4 = vld [vmem:[#allocation2 + $0x120] sm:$0xff] }
  0x23   :  { %3980 = vmatmul.mubr.msk.f32.vlgmr.msra.gmra.mrb[0].mxu0 %vm165_vm0, %v5308_v26  ;;  %162 = vperm.xlu1 %4753, %v144_v57   ;;  %v4386_v3 = vpack.c.bf16 %v101_v1, %v99_v63  ;;  %v100_v5 = vld [vmem:[#allocation2 + $0x130] sm:$0xff]  ;;  %v2237_v7 = vld [vmem:[%s7622_s4] sm:$0xff]  ;;  %v2238_v8 = vld [vmem:[%s7622_s4 + $0x8] sm:$0xff] }
  0x24   :  { %3992 = vmatmul.mubr.msk.f32.vlgmr.msra.gmra.mrb[0].mxu1 %vm165_vm0, %v5308_v26  ;;  %248 = vmatprep.mubr.f32.mxu0 %v7630_v0  ;;  %v4388_v6 = vpack.c.bf16 %v100_v5, %v98_v4  ;;  %v104_v9 = vld [vmem:[#allocation2 + $0x148] sm:$0xff]  ;;  %v106_v10 = vld [vmem:[#allocation2 + $0x158] sm:$0xff]  ;;  %v103_v12 = vld [vmem:[#allocation2 + $0x140] sm:$0xff] }
  0x25   :  { %385 = vmatprep.mubr.f32.mxu1 %v7630_v0  ;;  %4321 = vmatpush1.bf16.msra.mxu0 %v4304_v21  ;;  %v4398_v11 = vpack.c.bf16 %v106_v10, %v104_v9  ;;  %v105_v13 = vld [vmem:[#allocation2 + $0x150] sm:$0xff]  ;;  %v109_v14 = vld [vmem:[#allocation2 + $0x168] sm:$0xff]  ;;  %v111_v15 = vld [vmem:[#allocation2 + $0x178] sm:$0xff] }
  0x26   :  { %4333 = vmatpush1.bf16.msra.mxu1 %v4316_v25  ;;  %4323 = vmatprep.subr.bf16.mxu0 %v4314_v22  ;;  %v4400_v16 = vpack.c.bf16 %v105_v13, %v103_v12  ;;  %v4410_v17 = vpack.c.bf16 %v111_v15, %v109_v14  ;;  %v108_v18 = vld [vmem:[#allocation2 + $0x160] sm:$0xff]  ;;  %v110_v19 = vld [vmem:[#allocation2 + $0x170] sm:$0xff]  ;;  %v2240_v22 = vld [vmem:[%s7622_s4 + $0x18] sm:$0xff] }
  0x27   :  { %3981 = vmatmul.mubr.msk.f32.gmra.mrb[2].mxu0 %vm165_vm0, %v5318_v32  ;;  %4335 = vmatprep.subr.bf16.mxu1 %v4326_v29  ;;  %v4412_v20 = vpack.c.bf16 %v110_v19, %v108_v18  ;;  %v2239_v21 = vld [vmem:[%s7622_s4 + $0x10] sm:$0xff]  ;;  %v114_v23 = vld [vmem:[#allocation2 + $0x188] sm:$0xff]  ;;  %v116_v24 = vld [vmem:[#allocation2 + $0x198] sm:$0xff] }
  0x28   :  { %3993 = vmatmul.mubr.msk.f32.gmra.mrb[2].mxu1 %vm165_vm0, %v5318_v32  ;;  %254 = vmatprep.mubr.f32.mxu0 %v7630_v0  ;;  %v113_v27 = vld [vmem:[#allocation2 + $0x180] sm:$0xff]  ;;  %v115_v28 = vld [vmem:[#allocation2 + $0x190] sm:$0xff]  ;;  %v121_v30 = vld [vmem:[#allocation2 + $0x1b8] sm:$0xff] }
  0x29   :  { %391 = vmatprep.mubr.f32.mxu1 %v7630_v0  ;;  %4325 = vmatpush1.bf16.msra.mxu0 %v4316_v25  ;;  %v4422_v25 = vpack.c.bf16 %v116_v24, %v114_v23  ;;  %v4424_v31 = vpack.c.bf16 %v115_v28, %v113_v27  ;;  %v118_v34 = vld [vmem:[#allocation2 + $0x1a0] sm:$0xff]  ;;  %v3238_v38 = vld [vmem:[%s7624_s6 + $0x8] sm:$0xff]  ;;  %v126_v42 = vld [vmem:[#allocation2 + $0x1d8] sm:$0xff] }
  0x2a   :  { %4337 = vmatpush1.bf16.msra.mxu1 %v4328_v35  ;;  %4327 = vmatprep.subr.bf16.mxu0 %v4326_v29  ;;  %v3237_v37 = vld [vmem:[%s7624_s6] sm:$0xff]  ;;  %v125_v45 = vld [vmem:[#allocation2 + $0x1d0] sm:$0xff]  ;;  %v131_v47 = vld [vmem:[#allocation2 + $0x1f8] sm:$0xff] }
  0x2b   :  { %3982 = vmatmul.mubr.msk.f32.gmra.mrb[4].mxu0 %vm165_vm0, %v5329_v39  ;;  %4339 = vmatprep.subr.bf16.mxu1 %v4338_v36  ;;  %v123_v44 = vld [vmem:[#allocation2 + $0x1c0] sm:$0xff]  ;;  %v3239_v53 = vld [vmem:[%s7624_s6 + $0x10] sm:$0xff]  ;;  %v3240_v54 = vld [vmem:[%s7624_s6 + $0x18] sm:$0xff] }
  0x2c   :  { %3994 = vmatmul.mubr.msk.f32.gmra.mrb[4].mxu1 %vm165_vm0, %v5329_v39  ;;  %260 = vmatprep.mubr.f32.mxu0 %v7630_v0  ;;  %v4448_v48 = vpack.c.bf16 %v125_v45, %v123_v44  ;;  %v128_v50 = vld [vmem:[#allocation2 + $0x1e0] sm:$0xff]  ;;  %v134_v56 = vld [vmem:[#allocation2 + $0x208] sm:$0xff]  ;;  %v136_v57 = vld [vmem:[#allocation2 + $0x218] sm:$0xff] }
  0x2d   :  { %397 = vmatprep.mubr.f32.mxu1 %v7630_v0  ;;  %4329 = vmatpush1.bf16.msra.mxu0 %v4328_v35  ;;  %v3689_v58 = vld [vmem:[%s7626_s8 + $0x8] sm:$0xff]  ;;  %v3690_v59 = vld [vmem:[%s7626_s8 + $0x10] sm:$0xff]  ;;  %v133_v61 = vld [vmem:[#allocation2 + $0x200] sm:$0xff] }
  0x2e   :  { %4341 = vmatpush1.bf16.msra.mxu1 %v4340_v40  ;;  %4343 = vmatprep.subr.bf16.mxu0 %v4326_v29  ;;  %v119_v29 = vld [vmem:[#allocation2 + $0x1a8] sm:$0xff]  ;;  %v135_v62 = vld [vmem:[#allocation2 + $0x210] sm:$0xff]  ;;  %v3691_v63 = vld [vmem:[%s7626_s8 + $0x18] sm:$0xff] }
  0x2f   :  { %3983 = vmatmul.mubr.msk.f32.gmra.mrb[6].mxu0 %vm165_vm0, %v5340_v41  ;;  %4355 = vmatprep.subr.bf16.mxu1 %v4338_v36  ;;  %v4434_v33 = vpack.c.bf16 %v121_v30, %v119_v29  ;;  %v3863_v1 = vld [vmem:[%s7628_s10] sm:$0xff] }
  0x30   :  { %3995 = vmatmul.mubr.msk.f32.gmra.mrb[6].mxu1 %vm165_vm0, %v5340_v41  ;;  %516 = vmatprep.mubr.f32.mxu0 %v7630_v0 }
  0x31   :  { %653 = vmatprep.mubr.f32.mxu1 %v7630_v0  ;;  %2243 = vperm.xlu0 %4752, %v2237_v7  }
  0x32   :  { %2248 = vperm.xlu1 %4753, %v2238_v8  }
  0x33   :  { %4004 = vmatmul.mubr.msk.f32.vlgmr.msra.gmra.mrb[8].mxu0 %vm165_vm0, %v5308_v26 }
  0x34   :  { %4016 = vmatmul.mubr.msk.f32.vlgmr.msra.gmra.mrb[8].mxu1 %vm165_vm0, %v5308_v26  ;;  %522 = vmatprep.mubr.f32.mxu0 %v7630_v0 }
  0x35   :  { %659 = vmatprep.mubr.f32.mxu1 %v7630_v0  ;;  %4345 = vmatpush1.bf16.msra.mxu0 %v4328_v35  ;;  %v120_v35 = vld [vmem:[#allocation2 + $0x1b0] sm:$0xff] }
  0x36   :  { %4357 = vmatpush1.bf16.msra.mxu1 %v4340_v40  ;;  %4347 = vmatprep.subr.bf16.mxu0 %v4338_v36  ;;  %v4436_v36 = vpack.c.bf16 %v120_v35, %v118_v34 }
  0x37   :  { %4005 = vmatmul.mubr.msk.f32.gmra.mrb[10].mxu0 %vm165_vm0, %v5318_v32  ;;  %4359 = vmatprep.subr.bf16.mxu1 %v4350_v46 }
  0x38   :  { %4017 = vmatmul.mubr.msk.f32.gmra.mrb[10].mxu1 %vm165_vm0, %v5318_v32  ;;  %528 = vmatprep.mubr.f32.mxu0 %v7630_v0 }
  0x39   :  { %665 = vmatprep.mubr.f32.mxu1 %v7630_v0  ;;  %4349 = vmatpush1.bf16.msra.mxu0 %v4340_v40  ;;  %v124_v40 = vld [vmem:[#allocation2 + $0x1c8] sm:$0xff] }
  0x3a   :  { %4361 = vmatpush1.bf16.msra.mxu1 %v4352_v51  ;;  %4351 = vmatprep.subr.bf16.mxu0 %v4350_v46  ;;  %v4446_v43 = vpack.c.bf16 %v126_v42, %v124_v40 }
  0x3b   :  { %4006 = vmatmul.mubr.msk.f32.gmra.mrb[12].mxu0 %vm165_vm0, %v5329_v39  ;;  %4363 = vmatprep.subr.bf16.mxu1 %v4362_v52 }
  0x3c   :  { %4018 = vmatmul.mubr.msk.f32.gmra.mrb[12].mxu1 %vm165_vm0, %v5329_v39  ;;  %534 = vmatprep.mubr.f32.mxu0 %v7630_v0 }
  0x3d   :  { %671 = vmatprep.mubr.f32.mxu1 %v7630_v0  ;;  %4353 = vmatpush1.bf16.msra.mxu0 %v4352_v51 }
  0x3e   :  { %4365 = vmatpush1.bf16.msra.mxu1 %v4364_v55  ;;  %4367 = vmatprep.subr.bf16.mxu0 %v4350_v46  ;;  %v129_v46 = vld [vmem:[#allocation2 + $0x1e8] sm:$0xff] }
  0x3f   :  { %4007 = vmatmul.mubr.msk.f32.gmra.mrb[14].mxu0 %vm165_vm0, %v5340_v41  ;;  %4379 = vmatprep.subr.bf16.mxu1 %v4362_v52  ;;  %v4458_v49 = vpack.c.bf16 %v131_v47, %v129_v46 }
  0x40   :  { %4019 = vmatmul.mubr.msk.f32.gmra.mrb[14].mxu1 %vm165_vm0, %v5340_v41  ;;  %790 = vmatprep.mubr.f32.mxu0 %v7630_v0 }
  0x41   :  { %927 = vmatprep.mubr.f32.mxu1 %v7630_v0  ;;  %2253 = vperm.xlu0 %4752, %v2239_v21  }
  0x42   :  { %2258 = vperm.xlu1 %4753, %v2240_v22  }
  0x43   :  { %4028 = vmatmul.mubr.msk.f32.vlgmr.msra.gmra.mrb[16].mxu0 %vm165_vm0, %v5308_v26 }
  0x44   :  { %4040 = vmatmul.mubr.msk.f32.vlgmr.msra.gmra.mrb[16].mxu1 %vm165_vm0, %v5308_v26  ;;  %796 = vmatprep.mubr.f32.mxu0 %v7630_v0 }
  0x45   :  { %933 = vmatprep.mubr.f32.mxu1 %v7630_v0  ;;  %4369 = vmatpush1.bf16.msra.mxu0 %v4352_v51  ;;  %v130_v51 = vld [vmem:[#allocation2 + $0x1f0] sm:$0xff] }
  0x46   :  { %4381 = vmatpush1.bf16.msra.mxu1 %v4364_v55  ;;  %4371 = vmatprep.subr.bf16.mxu0 %v4362_v52  ;;  %v4460_v52 = vpack.c.bf16 %v130_v51, %v128_v50 }
  0x47   :  { %4029 = vmatmul.mubr.msk.f32.gmra.mrb[18].mxu0 %vm165_vm0, %v5318_v32  ;;  %4383 = vmatprep.subr.bf16.mxu1 %v4374_v60 }
  0x48   :  { %4041 = vmatmul.mubr.msk.f32.gmra.mrb[18].mxu1 %vm165_vm0, %v5318_v32  ;;  %802 = vmatprep.mubr.f32.mxu0 %v7630_v0 }
  0x49   :  { %939 = vmatprep.mubr.f32.mxu1 %v7630_v0  ;;  %4373 = vmatpush1.bf16.msra.mxu0 %v4364_v55  ;;  %v3688_v55 = vld [vmem:[%s7626_s8] sm:$0xff] }
  0x4a   :  { %4385 = vmatpush1.bf16.msra.mxu1 %v4376_v2  ;;  %4375 = vmatprep.subr.bf16.mxu0 %v4374_v60 }
  0x4b   :  { %4030 = vmatmul.mubr.msk.f32.gmra.mrb[20].mxu0 %vm165_vm0, %v5329_v39  ;;  %4387 = vmatprep.subr.bf16.mxu1 %v4386_v3 }
  0x4c   :  { %4042 = vmatmul.mubr.msk.f32.gmra.mrb[20].mxu1 %vm165_vm0, %v5329_v39  ;;  %808 = vmatprep.mubr.f32.mxu0 %v7630_v0 }
  0x4d   :  { %945 = vmatprep.mubr.f32.mxu1 %v7630_v0  ;;  %4377 = vmatpush1.bf16.msra.mxu0 %v4376_v2 }
  0x4e   :  { %4389 = vmatpush1.bf16.msra.mxu1 %v4388_v6  ;;  %4391 = vmatprep.subr.bf16.mxu0 %v4374_v60  ;;  %v4470_v60 = vpack.c.bf16 %v136_v57, %v134_v56 }
  0x4f   :  { %4031 = vmatmul.mubr.msk.f32.gmra.mrb[22].mxu0 %vm165_vm0, %v5340_v41  ;;  %4403 = vmatprep.subr.bf16.mxu1 %v4386_v3 }
  0x50   :  { %4043 = vmatmul.mubr.msk.f32.gmra.mrb[22].mxu1 %vm165_vm0, %v5340_v41  ;;  %1064 = vmatprep.mubr.f32.mxu0 %v7630_v0 }
  0x51   :  { %1201 = vmatprep.mubr.f32.mxu1 %v7630_v0  ;;  %3243 = vperm.xlu0 %4752, %v3237_v37  }
  0x52   :  { %3248 = vperm.xlu1 %4753, %v3238_v38  }
  0x53   :  { %4052 = vmatmul.mubr.msk.f32.vlgmr.msra.gmra.mrb[24].mxu0 %vm165_vm0, %v5308_v26 }
  0x54   :  { %4064 = vmatmul.mubr.msk.f32.vlgmr.msra.gmra.mrb[24].mxu1 %vm165_vm0, %v5308_v26  ;;  %1070 = vmatprep.mubr.f32.mxu0 %v7630_v0 }
  0x55   :  { %1207 = vmatprep.mubr.f32.mxu1 %v7630_v0  ;;  %4393 = vmatpush1.bf16.msra.mxu0 %v4376_v2  ;;  %v4472_v2 = vpack.c.bf16 %v135_v62, %v133_v61 }
  0x56   :  { %4405 = vmatpush1.bf16.msra.mxu1 %v4388_v6  ;;  %4395 = vmatprep.subr.bf16.mxu0 %v4386_v3  ;;  %v3864_v3 = vld [vmem:[%s7628_s10 + $0x8] sm:$0xff] }
  0x57   :  { %4053 = vmatmul.mubr.msk.f32.gmra.mrb[26].mxu0 %vm165_vm0, %v5318_v32  ;;  %4407 = vmatprep.subr.bf16.mxu1 %v4398_v11 }
  0x58   :  { %4065 = vmatmul.mubr.msk.f32.gmra.mrb[26].mxu1 %vm165_vm0, %v5318_v32  ;;  %1076 = vmatprep.mubr.f32.mxu0 %v7630_v0 }
  0x59   :  { %1213 = vmatprep.mubr.f32.mxu1 %v7630_v0  ;;  %4397 = vmatpush1.bf16.msra.mxu0 %v4388_v6 }
  0x5a   :  { %4409 = vmatpush1.bf16.msra.mxu1 %v4400_v16  ;;  %4399 = vmatprep.subr.bf16.mxu0 %v4398_v11 }
  0x5b   :  { %4054 = vmatmul.mubr.msk.f32.gmra.mrb[28].mxu0 %vm165_vm0, %v5329_v39  ;;  %4411 = vmatprep.subr.bf16.mxu1 %v4410_v17 }
  0x5c   :  { %4066 = vmatmul.mubr.msk.f32.gmra.mrb[28].mxu1 %vm165_vm0, %v5329_v39  ;;  %1082 = vmatprep.mubr.f32.mxu0 %v7630_v0 }
  0x5d   :  { %1219 = vmatprep.mubr.f32.mxu1 %v7630_v0  ;;  %4401 = vmatpush1.bf16.msra.mxu0 %v4400_v16 }
  0x5e   :  { %4413 = vmatpush1.bf16.msra.mxu1 %v4412_v20  ;;  %4415 = vmatprep.subr.bf16.mxu0 %v4398_v11 }
  0x5f   :  { %4055 = vmatmul.mubr.msk.f32.gmra.mrb[30].mxu0 %vm165_vm0, %v5340_v41  ;;  %4427 = vmatprep.subr.bf16.mxu1 %v4410_v17 }
  0x60   :  { %4067 = vmatmul.mubr.msk.f32.gmra.mrb[30].mxu1 %vm165_vm0, %v5340_v41  ;;  %1338 = vmatprep.mubr.f32.mxu0 %v7630_v0 }
  0x61   :  { %1475 = vmatprep.mubr.f32.mxu1 %v7630_v0  ;;  %3253 = vperm.xlu0 %4752, %v3239_v53  }
  0x62   :  { %3258 = vperm.xlu1 %4753, %v3240_v54  }
  0x63   :  { %4076 = vmatmul.mubr.msk.f32.vlgmr.msra.gmra.mrb[32].mxu0 %vm165_vm0, %v5308_v26 }
  0x64   :  { %4088 = vmatmul.mubr.msk.f32.vlgmr.msra.gmra.mrb[32].mxu1 %vm165_vm0, %v5308_v26  ;;  %1344 = vmatprep.mubr.f32.mxu0 %v7630_v0 }
  0x65   :  { %1481 = vmatprep.mubr.f32.mxu1 %v7630_v0  ;;  %4417 = vmatpush1.bf16.msra.mxu0 %v4400_v16 }
  0x66   :  { %4429 = vmatpush1.bf16.msra.mxu1 %v4412_v20  ;;  %4419 = vmatprep.subr.bf16.mxu0 %v4410_v17 }
  0x67   :  { %4077 = vmatmul.mubr.msk.f32.gmra.mrb[34].mxu0 %vm165_vm0, %v5318_v32  ;;  %4431 = vmatprep.subr.bf16.mxu1 %v4422_v25 }
  0x68   :  { %4089 = vmatmul.mubr.msk.f32.gmra.mrb[34].mxu1 %vm165_vm0, %v5318_v32  ;;  %1350 = vmatprep.mubr.f32.mxu0 %v7630_v0 }
  0x69   :  { %1487 = vmatprep.mubr.f32.mxu1 %v7630_v0  ;;  %4421 = vmatpush1.bf16.msra.mxu0 %v4412_v20 }
  0x6a   :  { %4433 = vmatpush1.bf16.msra.mxu1 %v4424_v31  ;;  %4423 = vmatprep.subr.bf16.mxu0 %v4422_v25 }
  0x6b   :  { %4078 = vmatmul.mubr.msk.f32.gmra.mrb[36].mxu0 %vm165_vm0, %v5329_v39  ;;  %4435 = vmatprep.subr.bf16.mxu1 %v4434_v33 }
  0x6c   :  { %4090 = vmatmul.mubr.msk.f32.gmra.mrb[36].mxu1 %vm165_vm0, %v5329_v39  ;;  %1356 = vmatprep.mubr.f32.mxu0 %v7630_v0 }
  0x6d   :  { %1493 = vmatprep.mubr.f32.mxu1 %v7630_v0  ;;  %4425 = vmatpush1.bf16.msra.mxu0 %v4424_v31 }
  0x6e   :  { %4437 = vmatpush1.bf16.msra.mxu1 %v4436_v36  ;;  %4439 = vmatprep.subr.bf16.mxu0 %v4422_v25 }
  0x6f   :  { %4079 = vmatmul.mubr.msk.f32.gmra.mrb[38].mxu0 %vm165_vm0, %v5340_v41  ;;  %4451 = vmatprep.subr.bf16.mxu1 %v4434_v33 }
  0x70   :  { %4091 = vmatmul.mubr.msk.f32.gmra.mrb[38].mxu1 %vm165_vm0, %v5340_v41  ;;  %1612 = vmatprep.mubr.f32.mxu0 %v7630_v0 }
  0x71   :  { %1749 = vmatprep.mubr.f32.mxu1 %v7630_v0  ;;  %3694 = vperm.xlu0 %4752, %v3688_v55  }
  0x72   :  { %3699 = vperm.xlu1 %4753, %v3689_v58  }
  0x73   :  { %4100 = vmatmul.mubr.msk.f32.vlgmr.msra.gmra.mrb[40].mxu0 %vm165_vm0, %v5308_v26 }
  0x74   :  { %4112 = vmatmul.mubr.msk.f32.vlgmr.msra.gmra.mrb[40].mxu1 %vm165_vm0, %v5308_v26  ;;  %1618 = vmatprep.mubr.f32.mxu0 %v7630_v0 }
  0x75   :  { %1755 = vmatprep.mubr.f32.mxu1 %v7630_v0  ;;  %4441 = vmatpush1.bf16.msra.mxu0 %v4424_v31 }
  0x76   :  { %4453 = vmatpush1.bf16.msra.mxu1 %v4436_v36  ;;  %4443 = vmatprep.subr.bf16.mxu0 %v4434_v33 }
  0x77   :  { %4101 = vmatmul.mubr.msk.f32.gmra.mrb[42].mxu0 %vm165_vm0, %v5318_v32  ;;  %4455 = vmatprep.subr.bf16.mxu1 %v4446_v43 }
  0x78   :  { %4113 = vmatmul.mubr.msk.f32.gmra.mrb[42].mxu1 %vm165_vm0, %v5318_v32  ;;  %1624 = vmatprep.mubr.f32.mxu0 %v7630_v0 }
  0x79   :  { %1761 = vmatprep.mubr.f32.mxu1 %v7630_v0  ;;  %4445 = vmatpush1.bf16.msra.mxu0 %v4436_v36 }
  0x7a   :  { %4457 = vmatpush1.bf16.msra.mxu1 %v4448_v48  ;;  %4447 = vmatprep.subr.bf16.mxu0 %v4446_v43 }
  0x7b   :  { %4102 = vmatmul.mubr.msk.f32.gmra.mrb[44].mxu0 %vm165_vm0, %v5329_v39  ;;  %4459 = vmatprep.subr.bf16.mxu1 %v4458_v49 }
  0x7c   :  { %4114 = vmatmul.mubr.msk.f32.gmra.mrb[44].mxu1 %vm165_vm0, %v5329_v39  ;;  %1630 = vmatprep.mubr.f32.mxu0 %v7630_v0 }
  0x7d   :  { %1767 = vmatprep.mubr.f32.mxu1 %v7630_v0  ;;  %4449 = vmatpush1.bf16.msra.mxu0 %v4448_v48 }
  0x7e   :  { %4461 = vmatpush1.bf16.msra.mxu1 %v4460_v52  ;;  %4463 = vmatprep.subr.bf16.mxu0 %v4446_v43 }
  0x7f   :  { %4103 = vmatmul.mubr.msk.f32.gmra.mrb[46].mxu0 %vm165_vm0, %v5340_v41  ;;  %3704 = vperm.xlu0 %4752, %v3690_v59  }
  0x80   :  { %4115 = vmatmul.mubr.msk.f32.gmra.mrb[46].mxu1 %vm165_vm0, %v5340_v41  ;;  %1886 = vmatprep.mubr.f32.mxu0 %v7630_v0 }
  0x81   :  { %2023 = vmatprep.mubr.f32.mxu1 %v7630_v0  ;;  %3709 = vperm.xlu1 %4753, %v3691_v63  }
  0x83   :  { %4124 = vmatmul.mubr.msk.f32.vlgmr.msra.gmra.mrb[48].mxu0 %vm165_vm0, %v5308_v26  ;;  %3867 = vperm.xlu0 %4752, %v3863_v1  }
  0x84   :  { %4136 = vmatmul.mubr.msk.f32.vlgmr.msra.gmra.mrb[48].mxu1 %vm165_vm0, %v5308_v26  ;;  %1892 = vmatprep.mubr.f32.mxu0 %v7630_v0 }
  0x85   :  { %2029 = vmatprep.mubr.f32.mxu1 %v7630_v0  ;;  %4465 = vmatpush1.bf16.msra.mxu0 %v4448_v48 }
  0x86   :  { %4467 = vmatprep.subr.bf16.mxu0 %v4458_v49  ;;  %3872 = vperm.xlu1 %4753, %v3864_v3  }
  0x87   :  { %4125 = vmatmul.mubr.msk.f32.gmra.mrb[50].mxu0 %vm165_vm0, %v5318_v32 }
  0x88   :  { %4137 = vmatmul.mubr.msk.f32.gmra.mrb[50].mxu1 %vm165_vm0, %v5318_v32  ;;  %1898 = vmatprep.mubr.f32.mxu0 %v7630_v0 }
  0x89   :  { %2035 = vmatprep.mubr.f32.mxu1 %v7630_v0  ;;  %4469 = vmatpush1.bf16.msra.mxu0 %v4460_v52 }
  0x8a   :  { %4471 = vmatprep.subr.bf16.mxu0 %v4470_v60 }
  0x8b   :  { %4126 = vmatmul.mubr.msk.f32.gmra.mrb[52].mxu0 %vm165_vm0, %v5329_v39 }
  0x8c   :  { %4138 = vmatmul.mubr.msk.f32.gmra.mrb[52].mxu1 %vm165_vm0, %v5329_v39  ;;  %1904 = vmatprep.mubr.f32.mxu0 %v7630_v0 }
  0x8d   :  { %2041 = vmatprep.mubr.f32.mxu1 %v7630_v0  ;;  %4473 = vmatpush1.bf16.msra.mxu0 %v4472_v2 }
  0x8f   :  { %4127 = vmatmul.mubr.msk.f32.gmra.mrb[54].mxu0 %vm165_vm0, %v5340_v41 }
  0x90   :  { %4139 = vmatmul.mubr.msk.f32.gmra.mrb[54].mxu1 %vm165_vm0, %v5340_v41  ;;  %2160 = vmatprep.mubr.f32.mxu0 %v7630_v0 }
  0x91   :  { %2338 = vmatprep.mubr.f32.mxu1 %v7630_v0 }
  0x93   :  { %4148 = vmatmul.mubr.msk.f32.vlgmr.msra.gmra.mrb[56].mxu0 %vm165_vm0, %v5308_v26 }
  0x94   :  { %2166 = vmatprep.mubr.f32.mxu0 %v7630_v0 }
  0x97   :  { %4149 = vmatmul.mubr.msk.f32.gmra.mrb[58].mxu0 %vm165_vm0, %v5318_v32 }
  0x98   :  { %2172 = vmatprep.mubr.f32.mxu0 %v7630_v0 }
  0x9b   :  { %4150 = vmatmul.mubr.msk.f32.gmra.mrb[60].mxu0 %vm165_vm0, %v5329_v39 }
  0x9c   :  { %2178 = vmatprep.mubr.f32.mxu0 %v7630_v0 }
  0x9d   :  { %v5559_v4 = vpop.permute.xlu0 %147 }
  0x9e   :  { %v5574_v16 = vpop.permute.xlu1 %157 }
  0x9f   :  { %4151 = vmatmul.mubr.msk.f32.gmra.mrb[62].mxu0 %vm165_vm0, %v5340_v41 }
  0xa0   :  { %2475 = vmatprep.mubr.f32.mxu0 %v7630_v0 }
  0xa1   :  { %v5569_v10 = vpop.permute.xlu0 %152 }
  0xa2   :  { %v5591_v30 = vpop.permute.xlu1 %162 }
  0xf6   :  { %v244_v26 = vpop.f32.mrb[0].mxu0 }
  0xf7   :  { %v5562_v5 = vadd.f32 %v244_v26, %v5559_v4  ;;  %v381_v6 = vpop.f32.mrb[0].mxu1  ;;  %v246_v32 = vpop.f32.mrb[1].mxu0 }
  0xf8   :  { %v5565_v7 = vadd.f32 %v381_v6, %v5559_v4  ;;  %v383_v8 = vpop.f32.mrb[1].mxu1  ;;  %v5606_v44 = vadd.f32 %v246_v32, %v5559_v4 }
  0xf9   :  { %v275_v39 = vmin.f32 %v5562_v5, 0.0  ;;  %v5609_v47 = vadd.f32 %v383_v8, %v5559_v4  ;;  %vm267_vm1 = vcmp.gt.f32.partialorder %v5562_v5, 0.0 }
  0xfa   :  { %v412_v9 = vmin.f32 %v5565_v7, 0.0  ;;  %v250_v41 = vpop.f32.mrb[2].mxu0  ;;  %v276_v57 = vmin.f32 %v5606_v44, 0.0  ;;  %vm404_vm2 = vcmp.gt.f32.partialorder %v5565_v7, 0.0  ;;  %vm268_vm9 = vcmp.gt.f32.partialorder %v5606_v44, 0.0 }
  0xfb   :  { %v283_v11 = vmul.f32 1.442695, %v275_v39  ;;  %v5572_v12 = vadd.f32 %v250_v41, %v5569_v10  ;;  %v387_v13 = vpop.f32.mrb[2].mxu1  ;;  %v252_v14 = vpop.f32.mrb[3].mxu0  ;;  %v413_v62 = vmin.f32 %v5609_v47, 0.0 }
  0xfc   :  { %v420_v15 = vmul.f32 1.442695, %v412_v9  ;;  %v5577_v17 = vadd.f32 %v387_v13, %v5569_v10  ;;  %v389_v18 = vpop.f32.mrb[3].mxu1  ;;  %v5615_v52 = vadd.f32 %v252_v14, %v5569_v10 }
  0xfd   :  { %4754 = vpow2.f32 %v283_v11  ;;  %v277_v19 = vmin.f32 %v5572_v12, 0.0  ;;  %v5628_v6 = vadd.f32 %v389_v18, %v5569_v10  ;;  %vm269_vm3 = vcmp.gt.f32.partialorder %v5572_v12, 0.0 }
  0xfe   :  { %4756 = vpow2.f32 %v420_v15  ;;  %v414_v20 = vmin.f32 %v5577_v17, 0.0  ;;  %v256_v21 = vpop.f32.mrb[4].mxu0  ;;  %v278_v26 = vmin.f32 %v5615_v52, 0.0  ;;  %v285_v11 = vmul.f32 1.442695, %v276_v57 }
  0xff   :  { %v287_v22 = vmul.f32 1.442695, %v277_v19  ;;  %v393_v23 = vpop.f32.mrb[4].mxu1  ;;  %v5581_v24 = vpop.f32.mrb[5].mxu0  ;;  %v5584_v27 = vadd.f32 %v256_v21, %v5574_v16  ;;  %vm406_vm4 = vcmp.gt.f32.partialorder %v5577_v17, 0.0  ;;  %vm270_vm10 = vcmp.gt.f32.partialorder %v5615_v52, 0.0 }
 0x100   :  { %v424_v25 = vmul.f32 1.442695, %v414_v20  ;;  %v5587_v28 = vadd.f32 %v393_v23, %v5574_v16  ;;  %v5589_v29 = vpop.f32.mrb[5].mxu1  ;;  %v422_v18 = vmul.f32 1.442695, %v413_v62  ;;  %v415_v23 = vmin.f32 %v5628_v6, 0.0 }
 0x101   :  { %4758 = vpow2.f32 %v287_v22  ;;  %v279_v31 = vmin.f32 %v5584_v27, 0.0  ;;  %v289_v22 = vmul.f32 1.442695, %v278_v26  ;;  %vm271_vm5 = vcmp.gt.f32.partialorder %v5584_v27, 0.0 }
 0x102   :  { %4760 = vpow2.f32 %v424_v25  ;;  %v262_v33 = vpop.f32.mrb[6].mxu0  ;;  %v416_v34 = vmin.f32 %v5587_v28, 0.0  ;;  %vm408_vm6 = vcmp.gt.f32.partialorder %v5587_v28, 0.0 }
 0x103   :  { %v399_v35 = vpop.f32.mrb[6].mxu1  ;;  %v5595_v36 = vpop.f32.mrb[7].mxu0  ;;  %v291_v37 = vmul.f32 1.442695, %v279_v31  ;;  %v5598_v38 = vadd.f32 %v262_v33, %v5591_v30  ;;  %v5670_v33 = vadd.f32 %v5581_v24, %v5574_v16 }
 0x104   :  { %v5601_v40 = vadd.f32 %v399_v35, %v5591_v30  ;;  %v5603_v42 = vpop.f32.mrb[7].mxu1  ;;  %v428_v43 = vmul.f32 1.442695, %v416_v34  ;;  %v5675_v35 = vadd.f32 %v5589_v29, %v5574_v16 }
 0x105   :  { %4762 = vpow2.f32 %v291_v37  ;;  %v281_v48 = vmin.f32 %v5598_v38, 0.0  ;;  %vm273_vm7 = vcmp.gt.f32.partialorder %v5598_v38, 0.0  ;;  %vm272_vm14 = vcmp.gt.f32.partialorder %v5670_v33, 0.0 }
 0x106   :  { %v518_v45 = vpop.f32.mrb[8].mxu0  ;;  %4764 = vpow2.f32 %v428_v43  ;;  %v418_v53 = vmin.f32 %v5601_v40, 0.0  ;;  %vm410_vm8 = vcmp.gt.f32.partialorder %v5601_v40, 0.0 }
 0x107   :  { %v4755_v46 = vpop.eup %4754  ;;  %v655_v49 = vpop.f32.mrb[8].mxu1  ;;  %v295_v55 = vmul.f32 1.442695, %v281_v48  ;;  %v5634_v39 = vadd.f32 %v518_v45, %v5559_v4  ;;  %v5680_v45 = vadd.f32 %v5595_v36, %v5591_v30 }
 0x108   :  { %v5612_v50 = vpop.f32.mrb[9].mxu0  ;;  %v4757_v51 = vpop.eup %4756  ;;  %v3984_v56 = vadd.f32 -1.0, %v4755_v46  ;;  %v432_v58 = vmul.f32 1.442695, %v418_v53  ;;  %v5637_v9 = vadd.f32 %v655_v49, %v5559_v4  ;;  %v426_v49 = vmul.f32 1.442695, %v415_v23 }
 0x109   :  { %v5618_v54 = vpop.f32.mrb[9].mxu1  ;;  %v3996_v61 = vadd.f32 -1.0, %v4757_v51  ;;  %4766 = vpow2.f32 %v295_v55  ;;  %vm541_vm11 = vcmp.gt.f32.partialorder %v5634_v39, 0.0  ;;  %vm274_vm0 = vcmp.gt.f32.partialorder %v5680_v45, 0.0 }
 0x10a   :  { %v524_v59 = vpop.f32.mrb[10].mxu0  ;;  %4768 = vpow2.f32 %v432_v58  ;;  %v5642_v41 = vsel %vm267_vm1, %v5562_v5, %v3984_v56  ;;  %v280_v56 = vmin.f32 %v5670_v33, 0.0  ;;  %v417_v58 = vmin.f32 %v5675_v35, 0.0 }
 0x10b   :  { %v4759_v60 = vpop.eup %4758  ;;  %v661_v63 = vpop.f32.mrb[10].mxu1  ;;  %v5651_v15 = vsel %vm404_vm2, %v5565_v7, %v3996_v61  ;;  %v549_v7 = vmin.f32 %v5634_v39, 0.0  ;;  %4770 = vpow2.f32 %v285_v11  ;;  %v5683_v24 = vadd.f32 %v524_v59, %v5569_v10 }
 0x10c   :  { %v5624_v1 = vpop.f32.mrb[11].mxu0  ;;  %v4761_v2 = vpop.eup %4760  ;;  %v3986_v3 = vadd.f32 -1.0, %v4759_v60  ;;  %4772 = vpow2.f32 %v422_v18  ;;  %vm678_vm13 = vcmp.gt.f32.partialorder %v5637_v9, 0.0  ;;  %vm405_vm2 = vcmp.gt.f32.partialorder %v5609_v47, 0.0 }
 0x10d   :  { %v5630_v32 = vpop.f32.mrb[11].mxu1  ;;  %v3998_v8 = vadd.f32 -1.0, %v4761_v2  ;;  %v557_v37 = vmul.f32 1.442695, %v549_v7  ;;  %4774 = vpow2.f32 %v289_v22  ;;  %v551_v60 = vmin.f32 %v5683_v24, 0.0 }
 0x10e   :  { %v5645_v13 = vsel %vm269_vm3, %v5572_v12, %v3986_v3  ;;  %v530_v14 = vpop.f32.mrb[12].mxu0  ;;  %v282_v2 = vmin.f32 %v5680_v45, 0.0  ;;  %v5701_v3 = vadd.f32 %v661_v63, %v5569_v10  ;;  %vm543_vm12 = vcmp.gt.f32.partialorder %v5683_v24, 0.0 }
 0x10f   :  { %v5656_v20 = vsel %vm406_vm4, %v5577_v17, %v3998_v8  ;;  %v5658_v5 = vpop.f32.mrb[12].mxu1  ;;  %v5660_v21 = vpop.f32.mrb[13].mxu0  ;;  %v686_v17 = vmin.f32 %v5637_v9, 0.0  ;;  %4776 = vpow2.f32 %v557_v37  ;;  %v561_v22 = vmul.f32 1.442695, %v551_v60 }
 0x110   :  { %v5666_v25 = vpop.f32.mrb[13].mxu1  ;;  %v4763_v31 = vpop.eup %4762  ;;  %v5716_v23 = vadd.f32 %v530_v14, %v5574_v16  ;;  %v688_v14 = vmin.f32 %v5701_v3, 0.0  ;;  %v5744_v60 = vadd.f32 %v5658_v5, %v5574_v16  ;;  %vm680_vm15 = vcmp.gt.f32.partialorder %v5701_v3, 0.0 }
 0x111   :  { %v4765_v34 = vpop.eup %4764  ;;  %v3988_v29 = vadd.f32 -1.0, %v4763_v31  ;;  %v694_v36 = vmul.f32 1.442695, %v686_v17  ;;  %vm407_vm3 = vcmp.gt.f32.partialorder %v5628_v6, 0.0 }
 0x112   :  { %v536_v43 = vpop.f32.mrb[14].mxu0  ;;  %v4000_v55 = vadd.f32 -1.0, %v4765_v34  ;;  %v293_v34 = vmul.f32 1.442695, %v280_v56  ;;  %vm545_vm1 = vcmp.gt.f32.partialorder %v5716_v23, 0.0  ;;  %vm682_vm4 = vcmp.gt.f32.partialorder %v5744_v60, 0.0 }
 0x113   :  { %v5685_v46 = vpop.f32.mrb[14].mxu1  ;;  %v5687_v48 = vpop.f32.mrb[15].mxu0  ;;  %v5710_v11 = vsel %vm271_vm5, %v5584_v27, %v3988_v29  ;;  %4778 = vpow2.f32 %v694_v36 }
 0x114   :  { %v5690_v51 = vpop.f32.mrb[15].mxu1  ;;  %v4767_v53 = vpop.eup %4766  ;;  %v5723_v63 = vsel %vm408_vm6, %v5587_v28, %v4000_v55  ;;  %4780 = vpow2.f32 %v561_v22  ;;  %v698_v55 = vmul.f32 1.442695, %v688_v14  ;;  %v690_v14 = vmin.f32 %v5744_v60, 0.0 }
 0x115   :  { %v4769_v57 = vpop.eup %4768  ;;  %v3990_v59 = vadd.f32 -1.0, %v4767_v53  ;;  %7645 = vst [vmem:[#allocation8_spill] sm:$0xff] %v5723_v63  ;;  %v430_v53 = vmul.f32 1.442695, %v417_v58  ;;  %4782 = vpow2.f32 %v426_v49  ;;  %v5750_v58 = vadd.f32 %v5603_v42, %v5591_v30 }
 0x116   :  { %v5696_v61 = vpop.f32.mrb[16].mxu0  ;;  %v4002_v62 = vadd.f32 -1.0, %v4769_v57  ;;  %v4771_v29 = vpop.eup %4770  ;;  %4784 = vpow2.f32 %v698_v55  ;;  %v5754_v49 = vadd.f32 %v536_v43, %v5591_v30  ;;  %v5762_v55 = vadd.f32 %v5612_v50, %v5559_v4 }
 0x117   :  { %v5703_v26 = vpop.f32.mrb[16].mxu1  ;;  %v5705_v8 = vpop.f32.mrb[17].mxu0  ;;  %v5713_v18 = vsel %vm273_vm7, %v5598_v38, %v3990_v59  ;;  %v297_v59 = vmul.f32 1.442695, %v282_v2  ;;  %4786 = vpow2.f32 %v293_v34  ;;  %v702_v42 = vmul.f32 1.442695, %v690_v14 }
 0x118   :  { %v5718_v7 = vpop.f32.mrb[17].mxu1  ;;  %v5728_v27 = vsel %vm410_vm8, %v5601_v40, %v4002_v62  ;;  %v553_v40 = vmin.f32 %v5716_v23, 0.0  ;;  %v4773_v36 = vpop.eup %4772  ;;  %4788 = vpow2.f32 %v430_v53  ;;  %v3985_v34 = vadd.f32 -1.0, %v4771_v29 }
 0x119   :  { %7646 = vst [vmem:[#allocation9_spill] sm:$0xff] %v5728_v27  ;;  %v4775_v62 = vpop.eup %4774  ;;  %4790 = vpow2.f32 %v297_v59  ;;  %v5770_v53 = vadd.f32 -1.0, %v4773_v36  ;;  %v419_v50 = vmin.f32 %v5750_v58, 0.0  ;;  %v555_v19 = vmin.f32 %v5754_v49, 0.0 }
 0x11a   :  { %v5733_v17 = vpop.f32.mrb[18].mxu0  ;;  %v565_v56 = vmul.f32 1.442695, %v553_v40  ;;  %v4777_v0 = vpop.eup %4776  ;;  %v3987_v43 = vadd.f32 -1.0, %v4775_v62  ;;  %v5787_v36 = vadd.f32 %v5624_v1, %v5569_v10  ;;  %v308_v27 = vsel %vm268_vm9, %v5606_v44, %v3985_v34 }
 0x11b   :  { %v5735_v37 = vpop.f32.mrb[18].mxu1  ;;  %v5737_v28 = vpop.f32.mrb[19].mxu0  ;;  %v4008_v38 = vadd.f32 -1.0, %v4777_v0  ;;  %v550_v0 = vmin.f32 %v5762_v55, 0.0  ;;  %vm547_vm5 = vcmp.gt.f32.partialorder %v5754_v49, 0.0  ;;  %vm409_vm7 = vcmp.gt.f32.partialorder %v5675_v35, 0.0 }
 0x11c   :  { %v5740_v57 = vpop.f32.mrb[19].mxu1  ;;  %4792 = vpow2.f32 %v565_v56  ;;  %vm411_vm8 = vcmp.gt.f32.partialorder %v5750_v58, 0.0  ;;  %vm542_vm9 = vcmp.gt.f32.partialorder %v5762_v55, 0.0 }
 0x11d   :  { %v4779_v31 = vpop.eup %4778  ;;  %4794 = vpow2.f32 %v702_v42 }
 0x11e   :  { %v5746_v22 = vpop.f32.mrb[20].mxu0  ;;  %v4781_v29 = vpop.eup %4780  ;;  %v4020_v63 = vadd.f32 -1.0, %v4779_v31 }
 0x11f   :  { %v5756_v2 = vpop.f32.mrb[20].mxu1  ;;  %v5758_v5 = vpop.f32.mrb[21].mxu0  ;;  %v4010_v56 = vadd.f32 -1.0, %v4781_v29 }
 0x120   :  { %7647 = vst [vmem:[#allocation10_spill] sm:$0xff] %v5758_v5  ;;  %v5764_v40 = vpop.f32.mrb[21].mxu1 }
 0x121   :  { %7648 = vst [vmem:[#allocation11_spill] sm:$0xff] %v5764_v40  ;;  %v5776_v40 = vadd.f32 %v5685_v46, %v5591_v30  ;;  %v569_v46 = vmul.f32 1.442695, %v555_v19  ;;  %v583_v29 = vsel %vm543_vm12, %v5683_v24, %v4010_v56  ;;  %v5814_v24 = vadd.f32 %v5618_v54, %v5559_v4 }
 0x122   :  { %v5768_v12 = vpop.f32.mrb[22].mxu0  ;;  %v5826_v56 = vadd.f32 %v5630_v32, %v5569_v10  ;;  %v7655_v54 = vpack.c.bf16 %v5645_v13, %v5642_v41  ;;  %v5843_v32 = vsel %vm678_vm13, %v5637_v9, %v4020_v63 }
 0x123   :  { %7649 = vst [vmem:[#allocation12_spill] sm:$0xff] %v5768_v12  ;;  %v5778_v5 = vpop.f32.mrb[22].mxu1  ;;  %v5780_v59 = vpop.f32.mrb[23].mxu0  ;;  %v692_v14 = vmin.f32 %v5776_v40, 0.0  ;;  %4796 = vpow2.f32 %v569_v46  ;;  %v5833_v46 = vadd.f32 %v5703_v26, %v5559_v4  ;;  %7656 = vst [vmem:[#allocation18_spill] sm:$0xff] %v5843_v32  ;;  %v687_v9 = vmin.f32 %v5814_v24, 0.0 }
 0x124   :  { %7650 = vst [vmem:[#allocation13_spill] sm:$0xff] %v5778_v5  ;;  %7651 = vst [vmem:[#allocation14_spill] sm:$0xff] %v5780_v59  ;;  %v5789_v62 = vpop.f32.mrb[23].mxu1  ;;  %v581_v59 = vsel %vm541_vm11, %v5634_v39, %v4008_v38  ;;  %v310_v5 = vsel %vm270_vm10, %v5615_v52, %v3987_v43  ;;  %v4783_v12 = vpop.eup %4782  ;;  %v434_v38 = vmul.f32 1.442695, %v419_v50  ;;  %v552_v52 = vmin.f32 %v5787_v36, 0.0 }
 0x125   :  { %7652 = vst [vmem:[#allocation15_spill] sm:$0xff] %v5789_v62  ;;  %v706_v19 = vmul.f32 1.442695, %v692_v14  ;;  %v4474_v42 = vpack.c.bf16 %v310_v5, %v308_v27  ;;  %v4785_v31 = vpop.eup %4784  ;;  %v5807_v44 = vpack.c.bf16 %v583_v29, %v581_v59  ;;  %v5818_v5 = vadd.f32 %v5696_v61, %v5559_v4 }
 0x126   :  { %v5799_v1 = vpop.f32.mrb[24].mxu0  ;;  %v4787_v43 = vpop.eup %4786  ;;  %v4022_v27 = vadd.f32 -1.0, %v4785_v31  ;;  %v559_v59 = vmul.f32 1.442695, %v550_v0  ;;  %v5837_v29 = vadd.f32 -1.0, %v4783_v12  ;;  %v960_v63 = vmin.f32 %v5833_v46, 0.0 }
 0x127   :  { %v5802_v62 = vpop.f32.mrb[24].mxu1  ;;  %v5804_v39 = vpop.f32.mrb[25].mxu0  ;;  %4798 = vpow2.f32 %v706_v19  ;;  %4475 = vmatprep.subr.bf16.mxu1 %v4474_v42  ;;  %v563_v19 = vmul.f32 1.442695, %v552_v52  ;;  %v823_v42 = vmin.f32 %v5818_v5, 0.0  ;;  %v5869_v32 = vadd.f32 %v5733_v17, %v5569_v10 }
 0x128   :  { %7653 = vst [vmem:[#allocation16_spill] sm:$0xff] %v5804_v39  ;;  %v5810_v34 = vpop.f32.mrb[25].mxu1  ;;  %v5820_v50 = vpop.eup %4788  ;;  %4477 = vmatpush1.bf16.msra.mxu1 %v7655_v54  ;;  %v5846_v0 = vsel %vm680_vm15, %v5701_v3, %v4022_v27  ;;  %4800 = vpow2.f32 %v434_v38  ;;  %v3989_v54 = vadd.f32 -1.0, %v4787_v43  ;;  %v5860_v3 = vadd.f32 %v5660_v21, %v5574_v16 }
 0x129   :  { %7654 = vst [vmem:[#allocation17_spill] sm:$0xff] %v5810_v34  ;;  %v4791_v14 = vpop.eup %4790  ;;  %7657 = vst [vmem:[#allocation19_spill] sm:$0xff] %v5846_v0  ;;  %4802 = vpow2.f32 %v559_v59  ;;  %v689_v38 = vmin.f32 %v5826_v56, 0.0  ;;  %v968_v43 = vmul.f32 1.442695, %v960_v63  ;;  %v5880_v59 = vadd.f32 %v5666_v25, %v5574_v16 }
 0x12a   :  { %v5835_v61 = vpop.f32.mrb[26].mxu0  ;;  %v4793_v26 = vpop.eup %4792  ;;  %v3991_v27 = vadd.f32 -1.0, %v4791_v14  ;;  %4804 = vpow2.f32 %v563_v19  ;;  %v5884_v14 = vadd.f32 %v5735_v37, %v5569_v10  ;;  %v5892_v19 = vadd.f32 %v5687_v48, %v5591_v30 }
 0x12b   :  { %v5848_v41 = vpop.f32.mrb[26].mxu1  ;;  %v5850_v13 = vpop.f32.mrb[27].mxu0  ;;  %v825_v25 = vmin.f32 %v5869_v32, 0.0  ;;  %vm684_vm6 = vcmp.gt.f32.partialorder %v5776_v40, 0.0  ;;  %vm544_vm10 = vcmp.gt.f32.partialorder %v5787_v36, 0.0  ;;  %vm815_vm11 = vcmp.gt.f32.partialorder %v5818_v5, 0.0 }
 0x12c   :  { %7658 = vst [vmem:[#allocation20_spill] sm:$0xff] %v5850_v13  ;;  %v5855_v31 = vpop.f32.mrb[27].mxu1  ;;  %v831_v13 = vmul.f32 1.442695, %v823_v42  ;;  %v4795_v52 = vpop.eup %4794  ;;  %v554_v42 = vmin.f32 %v5860_v3, 0.0  ;;  %v962_v48 = vmin.f32 %v5884_v14, 0.0 }
 0x12d   :  { %7659 = vst [vmem:[#allocation21_spill] sm:$0xff] %v5855_v31  ;;  %v4012_v31 = vadd.f32 -1.0, %v4793_v26  ;;  %v4797_v26 = vpop.eup %4796  ;;  %v4024_v63 = vadd.f32 -1.0, %v4795_v52  ;;  %v835_v34 = vmul.f32 1.442695, %v825_v25  ;;  %v691_v25 = vmin.f32 %v5880_v59, 0.0 }
 0x12e   :  { %v5864_v12 = vpop.f32.mrb[28].mxu0  ;;  %4806 = vpow2.f32 %v831_v13  ;;  %v312_v13 = vsel %vm272_vm14, %v5670_v33, %v3989_v54  ;;  %v972_v39 = vmul.f32 1.442695, %v962_v48  ;;  %vm952_vm12 = vcmp.gt.f32.partialorder %v5833_v46, 0.0 }
 0x12f   :  { %7660 = vst [vmem:[#allocation22_spill] sm:$0xff] %v5864_v12  ;;  %v5871_v21 = vpop.f32.mrb[28].mxu1  ;;  %v5873_v0 = vpop.f32.mrb[29].mxu0  ;;  %4808 = vpow2.f32 %v968_v43  ;;  %v5902_v12 = vadd.f32 %v5690_v51, %v5591_v30  ;;  %vm817_vm13 = vcmp.gt.f32.partialorder %v5869_v32, 0.0  ;;  %vm954_vm14 = vcmp.gt.f32.partialorder %v5884_v14, 0.0 }
 0x130   :  { %7661 = vst [vmem:[#allocation23_spill] sm:$0xff] %v5871_v21  ;;  %7662 = vst [vmem:[#allocation24_spill] sm:$0xff] %v5873_v0  ;;  %v5886_v17 = vpop.f32.mrb[29].mxu1  ;;  %v4014_v0 = vadd.f32 -1.0, %v4797_v26  ;;  %4810 = vpow2.f32 %v835_v34  ;;  %v4001_v34 = vadd.f32 -1.0, %v5820_v50  ;;  %v447_v50 = vsel %vm407_vm3, %v5628_v6, %v5837_v29 }
 0x131   :  { %7663 = vst [vmem:[#allocation25_spill] sm:$0xff] %v5886_v17  ;;  %v4799_v37 = vpop.eup %4798  ;;  %v585_v17 = vsel %vm545_vm1, %v5716_v23, %v4012_v31  ;;  %v314_v23 = vsel %vm274_vm0, %v5680_v45, %v3991_v27  ;;  %v700_v27 = vmul.f32 1.442695, %v689_v38  ;;  %4812 = vpow2.f32 %v972_v39 }
 0x132   :  { %v5895_v21 = vpop.f32.mrb[30].mxu0  ;;  %v587_v26 = vsel %vm547_vm5, %v5754_v49, %v4014_v0  ;;  %v4478_v33 = vpack.c.bf16 %v314_v23, %v312_v13  ;;  %v4801_v54 = vpop.eup %4800  ;;  %v5924_v49 = vsel %vm682_vm4, %v5744_v60, %v4024_v63  ;;  %v7666_v38 = vpack.c.bf16 %v5713_v18, %v5710_v11 }
 0x133   :  { %7664 = vst [vmem:[#allocation26_spill] sm:$0xff] %v5895_v21  ;;  %v5908_v52 = vpop.f32.mrb[30].mxu1  ;;  %v5910_v43 = vpop.f32.mrb[31].mxu0  ;;  %v4026_v21 = vadd.f32 -1.0, %v4799_v37  ;;  %v5918_v31 = vpack.c.bf16 %v587_v26, %v585_v17  ;;  %v693_v37 = vmin.f32 %v5902_v12, 0.0  ;;  %v445_v39 = vsel %vm405_vm2, %v5609_v47, %v5770_v53 }
 0x134   :  { %7665 = vst [vmem:[#allocation27_spill] sm:$0xff] %v5908_v52  ;;  %v5916_v51 = vpop.f32.mrb[31].mxu1  ;;  %v696_v52 = vmul.f32 1.442695, %v687_v9  ;;  %v556_v9 = vmin.f32 %v5892_v19, 0.0  ;;  %4479 = vmatprep.subr.bf16.mxu1 %v4478_v33  ;;  %v5962_v11 = vadd.f32 %v5756_v2, %v5574_v16  ;;  %v5966_v13 = vadd.f32 %v5705_v8, %v5559_v4 }
 0x135   :  { %v5927_v0 = vsel %vm684_vm6, %v5776_v40, %v4026_v21  ;;  %v4803_v40 = vpop.eup %4802  ;;  %v567_v21 = vmul.f32 1.442695, %v554_v42  ;;  %4481 = vmatpush1.bf16.msra.mxu1 %v7666_v38  ;;  %v5958_v42 = vadd.f32 %v5746_v22, %v5574_v16  ;;  %v5970_v47 = vadd.f32 %v5718_v7, %v5559_v4 }
 0x136   :  { %v5929_v45 = vpop.f32.mrb[32].mxu0  ;;  %v4805_v18 = vpop.eup %4804  ;;  %4814 = vpow2.f32 %v696_v52  ;;  %v4482_v53 = vpack.c.bf16 %v447_v50, %v445_v39  ;;  %v4003_v22 = vadd.f32 -1.0, %v4801_v54  ;;  %v571_v26 = vmul.f32 1.442695, %v556_v9 }
 0x137   :  { %v5936_v60 = vpop.f32.mrb[32].mxu1  ;;  %v5938_v63 = vpop.f32.mrb[33].mxu0  ;;  %4816 = vpow2.f32 %v700_v27  ;;  %v827_v2 = vmin.f32 %v5958_v42, 0.0  ;;  %v4009_v8 = vadd.f32 -1.0, %v4803_v40  ;;  %v5979_v7 = vmul.f32 1.442695, %v691_v25 }
 0x138   :  { %v5946_v48 = vpop.f32.mrb[33].mxu1  ;;  %v4807_v29 = vpop.eup %4806  ;;  %4818 = vpow2.f32 %v567_v21  ;;  %4483 = vmatprep.subr.bf16.mxu1 %v4482_v53  ;;  %v964_v33 = vmin.f32 %v5962_v11, 0.0  ;;  %v4011_v27 = vadd.f32 -1.0, %v4805_v18  ;;  %v5986_v9 = vmul.f32 1.442695, %v693_v37 }
 0x139   :  { %v4809_v52 = vpop.eup %4808  ;;  %v7669_v40 = vpack.c.bf16 %v5656_v20, %v5651_v15  ;;  %v4032_v21 = vadd.f32 -1.0, %v4807_v29  ;;  %v824_v25 = vmin.f32 %v5966_v13, 0.0  ;;  %v961_v39 = vmin.f32 %v5970_v47, 0.0 }
 0x13a   :  { %v5972_v6 = vpop.f32.mrb[34].mxu0  ;;  %v5997_v50 = vadd.f32 %v5737_v28, %v5569_v10  ;;  %4820 = vpow2.f32 %v571_v26  ;;  %v4044_v37 = vadd.f32 -1.0, %v4809_v52  ;;  %v839_v53 = vmul.f32 1.442695, %v827_v2  ;;  %v4811_v20 = vpop.eup %4810 }
 0x13b   :  { %v5975_v23 = vpop.f32.mrb[34].mxu1  ;;  %v5982_v38 = vpop.f32.mrb[35].mxu0  ;;  %4485 = vmatpush1.bf16.msra.mxu1 %v7669_v40  ;;  %v976_v29 = vmul.f32 1.442695, %v964_v33  ;;  %v449_v28 = vsel %vm409_vm7, %v5675_v35, %v4001_v34  ;;  %v451_v26 = vsel %vm411_vm8, %v5750_v58, %v4003_v22  ;;  %v4034_v2 = vadd.f32 -1.0, %v4811_v20  ;;  %v7673_v22 = vld [vmem:[#allocation13_spill] sm:$0xff] }
 0x13c   :  { %7667 = vst [vmem:[#allocation28_spill] sm:$0xff] %v5982_v38  ;;  %v5984_v54 = vpop.f32.mrb[35].mxu1  ;;  %v4813_v40 = vpop.eup %4812  ;;  %v7672_v38 = vld [vmem:[#allocation12_spill] sm:$0xff]  ;;  %v855_v35 = vsel %vm815_vm11, %v5818_v5, %v4032_v21  ;;  %v826_v58 = vmin.f32 %v5997_v50, 0.0  ;;  %4822 = vpow2.f32 %v839_v53  ;;  %vm546_vm15 = vcmp.gt.f32.partialorder %v5860_v3, 0.0 }
 0x13d   :  { %7668 = vst [vmem:[#allocation29_spill] sm:$0xff] %v5984_v54  ;;  %v6017_v54 = vadd.f32 %v5740_v57, %v5569_v10  ;;  %v6021_v33 = vadd.f32 %v7672_v38, %v5591_v30  ;;  %v4046_v34 = vadd.f32 -1.0, %v4813_v40  ;;  %v6036_v57 = vsel %vm952_vm12, %v5833_v46, %v4044_v37  ;;  %v7679_v53 = vld [vmem:[#allocation8_spill] sm:$0xff] }
 0x13e   :  { %v5999_v18 = vpop.f32.mrb[36].mxu0  ;;  %7675 = vst [vmem:[#allocation13_spill] sm:$0xff] %v6036_v57  ;;  %v857_v38 = vsel %vm817_vm13, %v5869_v32, %v4034_v2  ;;  %4824 = vpow2.f32 %v976_v29  ;;  %v7678_v32 = vld [vmem:[#allocation9_spill] sm:$0xff]  ;;  %vm548_vm0 = vcmp.gt.f32.partialorder %v5892_v19, 0.0  ;;  %vm819_vm1 = vcmp.gt.f32.partialorder %v5958_v42, 0.0 }
 0x13f   :  { %v6002_v17 = vpop.f32.mrb[36].mxu1  ;;  %v6004_v15 = vpop.f32.mrb[37].mxu0  ;;  %v829_v5 = vmin.f32 %v6021_v33, 0.0  ;;  %v6046_v40 = vpack.c.bf16 %v857_v38, %v855_v35  ;;  %v6051_v46 = vsel %vm954_vm14, %v5884_v14, %v4046_v34  ;;  %v582_v38 = vsel %vm542_vm9, %v5762_v55, %v4009_v8 }
 0x140   :  { %7670 = vst [vmem:[#allocation30_spill] sm:$0xff] %v6004_v15  ;;  %v6013_v52 = vpop.f32.mrb[37].mxu1  ;;  %v4486_v15 = vpack.c.bf16 %v451_v26, %v449_v28  ;;  %v4815_v26 = vpop.eup %4814  ;;  %v584_v14 = vsel %vm544_vm10, %v5787_v36, %v4011_v27  ;;  %v963_v34 = vmin.f32 %v6017_v54, 0.0  ;;  %v970_v8 = vmul.f32 1.442695, %v961_v39 }
 0x141   :  { %7671 = vst [vmem:[#allocation31_spill] sm:$0xff] %v6013_v52  ;;  %v6029_v52 = vadd.f32 %v7673_v22, %v5591_v30  ;;  %v4817_v22 = vpop.eup %4816  ;;  %v843_v35 = vmul.f32 1.442695, %v829_v5  ;;  %v833_v5 = vmul.f32 1.442695, %v824_v25  ;;  %vm2261_vm2 = vcmask 785408  }
 0x142   :  { %v6031_v20 = vpop.f32.mrb[38].mxu0  ;;  %4487 = vmatprep.subr.bf16.mxu1 %v4486_v15  ;;  %v7680_v15 = vpack.c.bf16 %v7678_v32, %v7679_v53  ;;  %v4819_v29 = vpop.eup %4818  ;;  %v4490_v53 = vpack.c.bf16 %v584_v14, %v582_v38  ;;  %v974_v39 = vmul.f32 1.442695, %v963_v34  ;;  %vm679_vm3 = vcmp.gt.f32.partialorder %v5814_v24, 0.0 }
 0x143   :  { %7674 = vst [vmem:[#allocation12_spill] sm:$0xff] %v6031_v20  ;;  %v6042_v21 = vpop.f32.mrb[38].mxu1  ;;  %v6044_v28 = vpop.f32.mrb[39].mxu0  ;;  %v966_v37 = vmin.f32 %v6029_v52, 0.0  ;;  %4826 = vpow2.f32 %v843_v35  ;;  %v7687_v35 = vld [vmem:[#allocation11_spill] sm:$0xff]  ;;  %vm681_vm4 = vcmp.gt.f32.partialorder %v5826_v56, 0.0 }
 0x144   :  { %7676 = vst [vmem:[#allocation32_spill] sm:$0xff] %v6042_v21  ;;  %7677 = vst [vmem:[#allocation33_spill] sm:$0xff] %v6044_v28  ;;  %4489 = vmatpush1.bf16.msra.mxu1 %v7680_v15  ;;  %v6057_v2 = vpop.f32.mrb[39].mxu1  ;;  %v6070_v15 = vadd.f32 %v5799_v1, %v5559_v4  ;;  %v7683_v28 = vld [vmem:[#allocation10_spill] sm:$0xff]  ;;  %4499 = vmatprep.subr.bf16.mxu0 %v4490_v53  ;;  %v4821_v1 = vpop.eup %4820  ;;  %v6096_v38 = vadd.f32 %v7687_v35, %v5574_v16  ;;  %vm956_vm5 = vcmp.gt.f32.partialorder %v5962_v11, 0.0  ;;  %v7725_v20 = vld [vmem:[#allocation27_spill] sm:$0xff] }
 0x145   :  { %7681 = vst [vmem:[#allocation9_spill] sm:$0xff] %v6057_v2  ;;  %v980_v32 = vmul.f32 1.442695, %v966_v37  ;;  %v6076_v21 = vadd.f32 %v7683_v28, %v5574_v16  ;;  %4491 = vmatprep.subr.bf16.mxu1 %v4490_v53  ;;  %v837_v37 = vmul.f32 1.442695, %v826_v58  ;;  %4501 = vmatpush1.bf16.msra.mxu0 %v5807_v44  ;;  %v6089_v28 = vadd.f32 %v5802_v62, %v5559_v4 }
 0x146   :  { %v6072_v2 = vpop.f32.mrb[40].mxu0  ;;  %v1097_v25 = vmin.f32 %v6070_v15, 0.0  ;;  %v6100_v58 = vadd.f32 -1.0, %v4815_v26  ;;  %v4823_v35 = vpop.eup %4822  ;;  %v4013_v26 = vadd.f32 -1.0, %v4819_v29  ;;  %v7693_v29 = vld [vmem:[#allocation14_spill] sm:$0xff]  ;;  %vm821_vm6 = vcmp.gt.f32.partialorder %v6021_v33, 0.0 }
 0x147   :  { %7682 = vst [vmem:[#allocation8_spill] sm:$0xff] %v6072_v2  ;;  %v6078_v55 = vpop.f32.mrb[40].mxu1  ;;  %v6080_v36 = vpop.f32.mrb[41].mxu0  ;;  %4828 = vpow2.f32 %v980_v32  ;;  %v828_v62 = vmin.f32 %v6076_v21, 0.0  ;;  %v4015_v32 = vadd.f32 -1.0, %v4821_v1  ;;  %v1234_v34 = vmin.f32 %v6089_v28, 0.0 }
 0x148   :  { %7684 = vst [vmem:[#allocation10_spill] sm:$0xff] %v6078_v55  ;;  %7685 = vst [vmem:[#allocation34_spill] sm:$0xff] %v6080_v36  ;;  %v6082_v27 = vpop.f32.mrb[41].mxu1  ;;  %4830 = vpow2.f32 %v5979_v7  ;;  %4493 = vmatpush1.bf16.msra.mxu1 %v5807_v44  ;;  %vm958_vm7 = vcmp.gt.f32.partialorder %v6029_v52, 0.0  ;;  %vm683_vm8 = vcmp.gt.f32.partialorder %v5880_v59, 0.0  ;;  %vm685_vm9 = vcmp.gt.f32.partialorder %v5902_v12, 0.0 }
 0x149   :  { %7686 = vst [vmem:[#allocation35_spill] sm:$0xff] %v6082_v27  ;;  %4832 = vpow2.f32 %v5986_v9  ;;  %v1105_v9 = vmul.f32 1.442695, %v1097_v25  ;;  %v6111_v27 = vadd.f32 -1.0, %v4817_v22  ;;  %v1242_v1 = vmul.f32 1.442695, %v1234_v34 }
 0x14a   :  { %v6098_v7 = vpop.f32.mrb[42].mxu0  ;;  %4834 = vpow2.f32 %v833_v5  ;;  %v4825_v5 = vpop.eup %4824  ;;  %v6120_v22 = vmul.f32 1.442695, %v828_v62  ;;  %v4036_v34 = vadd.f32 -1.0, %v4823_v35  ;;  %v588_v62 = vsel %vm548_vm0, %v5892_v19, %v4015_v32 }
 0x14b   :  { %7688 = vst [vmem:[#allocation11_spill] sm:$0xff] %v6098_v7  ;;  %v6104_v14 = vpop.f32.mrb[42].mxu1  ;;  %v6106_v44 = vpop.f32.mrb[43].mxu0  ;;  %4836 = vpow2.f32 %v970_v8  ;;  %v965_v8 = vmin.f32 %v6096_v38, 0.0  ;;  %vm816_vm10 = vcmp.gt.f32.partialorder %v5966_v13, 0.0  ;;  %vm818_vm11 = vcmp.gt.f32.partialorder %v5997_v50, 0.0 }
 0x14c   :  { %7689 = vst [vmem:[#allocation36_spill] sm:$0xff] %v6104_v14  ;;  %7690 = vst [vmem:[#allocation37_spill] sm:$0xff] %v6106_v44  ;;  %v6109_v53 = vpop.f32.mrb[43].mxu1  ;;  %4838 = vpow2.f32 %v837_v37  ;;  %v6124_v37 = vadd.f32 %v7693_v29, %v5591_v30  ;;  %vm1089_vm12 = vcmp.gt.f32.partialorder %v6070_v15, 0.0  ;;  %vm1226_vm13 = vcmp.gt.f32.partialorder %v6089_v28, 0.0 }
 0x14d   :  { %7691 = vst [vmem:[#allocation38_spill] sm:$0xff] %v6109_v53  ;;  %4840 = vpow2.f32 %v974_v39  ;;  %v6128_v53 = vadd.f32 %v5835_v61, %v5569_v10  ;;  %v6132_v39 = vadd.f32 %v5848_v41, %v5569_v10  ;;  %v4827_v61 = vpop.eup %4826  ;;  %vm820_vm0 = vcmp.gt.f32.partialorder %v6076_v21, 0.0 }
 0x14e   :  { %v6118_v25 = vpop.f32.mrb[44].mxu0  ;;  %4842 = vpow2.f32 %v1105_v9  ;;  %v4038_v35 = vadd.f32 -1.0, %v4827_v61 }
 0x14f   :  { %7692 = vst [vmem:[#allocation39_spill] sm:$0xff] %v6118_v25  ;;  %v6134_v44 = vpop.f32.mrb[44].mxu1  ;;  %v6136_v14 = vpop.f32.mrb[45].mxu0  ;;  %v4048_v25 = vadd.f32 -1.0, %v4825_v5  ;;  %4844 = vpow2.f32 %v1242_v1  ;;  %v1099_v41 = vmin.f32 %v6128_v53, 0.0  ;;  %v1236_v9 = vmin.f32 %v6132_v39, 0.0 }
 0x150   :  { %7694 = vst [vmem:[#allocation14_spill] sm:$0xff] %v6134_v44  ;;  %7695 = vst [vmem:[#allocation40_spill] sm:$0xff] %v6136_v14  ;;  %v6142_v29 = vpop.f32.mrb[45].mxu1  ;;  %v586_v44 = vsel %vm546_vm15, %v5860_v3, %v4013_v26  ;;  %v830_v5 = vmin.f32 %v6124_v37, 0.0  ;;  %v7698_v1 = vld [vmem:[#allocation15_spill] sm:$0xff]  ;;  %v859_v26 = vsel %vm819_vm1, %v5958_v42, %v4036_v34  ;;  %vm1091_vm14 = vcmp.gt.f32.partialorder %v6128_v53, 0.0 }
 0x151   :  { %7696 = vst [vmem:[#allocation41_spill] sm:$0xff] %v6142_v29  ;;  %v4829_v14 = vpop.eup %4828  ;;  %v4494_v7 = vpack.c.bf16 %v588_v62, %v586_v44  ;;  %v6155_v29 = vadd.f32 %v7698_v1, %v5591_v30  ;;  %v1109_v55 = vmul.f32 1.442695, %v1099_v41  ;;  %v861_v44 = vsel %vm821_vm6, %v6021_v33, %v4038_v35 }
 0x152   :  { %v6150_v36 = vpop.f32.mrb[46].mxu0  ;;  %v4831_v19 = vpop.eup %4830  ;;  %v4050_v32 = vadd.f32 -1.0, %v4829_v14  ;;  %v7700_v14 = vld [vmem:[#allocation16_spill] sm:$0xff]  ;;  %v1246_v61 = vmul.f32 1.442695, %v1236_v9  ;;  %v6177_v42 = vsel %vm956_vm5, %v5962_v11, %v4048_v25  ;;  %v6179_v33 = vpack.c.bf16 %v861_v44, %v859_v26 }
 0x153   :  { %7697 = vst [vmem:[#allocation42_spill] sm:$0xff] %v6150_v36  ;;  %v6157_v2 = vpop.f32.mrb[46].mxu1  ;;  %v4833_v3 = vpop.eup %4832  ;;  %v6167_v62 = vadd.f32 %v7700_v14, %v5559_v4  ;;  %4495 = vmatprep.subr.bf16.mxu1 %v4494_v7  ;;  %4503 = vmatprep.subr.bf16.mxu0 %v4494_v7  ;;  %7703 = vst [vmem:[#allocation44_spill] sm:$0xff] %v6177_v42  ;;  %4846 = vpow2.f32 %v1109_v55  ;;  %v6191_v7 = vld [vmem:[%s7621_s3] sm:$0xff]  ;;  %v978_v11 = vmul.f32 1.442695, %v965_v8 }
 0x154   :  { %7699 = vst [vmem:[#allocation15_spill] sm:$0xff] %v6157_v2  ;;  %v6169_v1 = vpop.f32.mrb[47].mxu0  ;;  %v6171_v41 = vpop.f32.mrb[47].mxu1  ;;  %v6184_v34 = vsel %vm958_vm7, %v6029_v52, %v4050_v32  ;;  %4497 = vmatpush1.bf16.msra.mxu1 %v5918_v31  ;;  %4505 = vmatpush1.bf16.msra.mxu0 %v5918_v31  ;;  %4848 = vpow2.f32 %v1246_v61  ;;  %v845_v9 = vmul.f32 1.442695, %v830_v5  ;;  %v967_v31 = vmin.f32 %v6155_v29, 0.0 }
 0x155   :  { %7701 = vst [vmem:[#allocation16_spill] sm:$0xff] %v6169_v1  ;;  %7702 = vst [vmem:[#allocation43_spill] sm:$0xff] %v6171_v41  ;;  %v4835_v2 = vpop.eup %4834  ;;  %v719_v32 = vsel %vm679_vm3, %v5814_v24, %v6100_v58  ;;  %v721_v8 = vsel %vm681_vm4, %v5826_v56, %v6111_v27  ;;  %v7708_v5 = vld [vmem:[#allocation17_spill] sm:$0xff]  ;;  %v7710_v41 = vld [vmem:[#allocation22_spill] sm:$0xff]  ;;  %v4025_v27 = vadd.f32 -1.0, %v4831_v19  ;;  %4850 = vpow2.f32 %v6120_v22 }
 0x156   :  { %7704 = vst [vmem:[#allocation45_spill] sm:$0xff] %v6184_v34  ;;  %v6193_v35 = vpop.eup %4836  ;;  %v6198_v52 = vpop.f32.mrb[48].mxu0  ;;  %v6217_v61 = vadd.f32 %v7708_v5, %v5559_v4  ;;  %v4506_v25 = vpack.c.bf16 %v721_v8, %v719_v32  ;;  %v7711_v24 = vld [vmem:[#allocation23_spill] sm:$0xff]  ;;  %v1098_v32 = vmin.f32 %v6167_v62, 0.0  ;;  %v7713_v8 = vmov 0.0   ;;  %v7716_v1 = vld [vmem:[#allocation20_spill] sm:$0xff] }
 0x157   :  { %7705 = vst [vmem:[#allocation46_spill] sm:$0xff] %v6198_v52  ;;  %v4839_v55 = vpop.eup %4838  ;;  %v6209_v26 = vpop.f32.mrb[48].mxu1  ;;  %v6221_v52 = vadd.f32 %v7710_v41, %v5574_v16  ;;  %v6225_v58 = vadd.f32 %v7711_v24, %v5574_v16  ;;  %4160 = vmatmul.mubr.msk.f32.vlgmr.msra.gmra.mrb[56].mxu1 %vm2261_vm2, %v6191_v7  ;;  %v6238_v41 = vld [vmem:[%s7621_s3 + $0x8] sm:$0xff]  ;;  %v4033_v24 = vadd.f32 -1.0, %v4835_v2  ;;  %4852 = vpow2.f32 %v978_v11  ;;  %v7717_v42 = vld [vmem:[#allocation19_spill] sm:$0xff]  ;;  %v7718_v34 = vld [vmem:[#allocation18_spill] sm:$0xff] }
 0x158   :  { %7706 = vst [vmem:[#allocation47_spill] sm:$0xff] %v6209_v26  ;;  %v6211_v44 = vpop.f32.mrb[49].mxu0  ;;  %v6213_v14 = vpop.eup %4840  ;;  %7709 = vst [vmem:[#allocation17_spill] sm:$0xff] %v6217_v61  ;;  %2344 = vmatprep.mubr.f32.mxu1 %v7713_v8  ;;  %4507 = vmatprep.subr.bf16.mxu0 %v4506_v25  ;;  %v6244_v26 = vmul.f32 1.442695, %v967_v31  ;;  %v6249_v36 = vadd.f32 %v7716_v1, %v5569_v10  ;;  %4854 = vpow2.f32 %v845_v9  ;;  %v1235_v31 = vmin.f32 %v6217_v61, 0.0 }
 0x159   :  { %7707 = vst [vmem:[#allocation48_spill] sm:$0xff] %v6211_v44  ;;  %v6229_v56 = vpop.f32.mrb[49].mxu1  ;;  %v4027_v44 = vadd.f32 -1.0, %v4833_v3  ;;  %7714 = vst [vmem:[#allocation23_spill] sm:$0xff] %v6238_v41  ;;  %v4843_v5 = vpop.eup %4842  ;;  %v1101_v19 = vmin.f32 %v6221_v52, 0.0  ;;  %v1238_v2 = vmin.f32 %v6225_v58, 0.0 }
 0x15a   :  { %7712 = vst [vmem:[#allocation22_spill] sm:$0xff] %v6229_v56  ;;  %v4035_v56 = vadd.f32 -1.0, %v4839_v55  ;;  %v6242_v3 = vpop.f32.mrb[50].mxu0  ;;  %v4845_v22 = vpop.eup %4844  ;;  %v7719_v55 = vpack.c.bf16 %v7717_v42, %v7718_v34  ;;  %v6266_v1 = vld [vmem:[%s7621_s3 + $0x10] sm:$0xff]  ;;  %v4056_v34 = vadd.f32 -1.0, %v4843_v5  ;;  %vm1228_vm15 = vcmp.gt.f32.partialorder %v6132_v39, 0.0 }
 0x15b   :  { %7715 = vst [vmem:[#allocation49_spill] sm:$0xff] %v6242_v3  ;;  %v6255_v11 = vpop.f32.mrb[50].mxu1  ;;  %v6257_v25 = vpop.f32.mrb[51].mxu0  ;;  %v1113_v3 = vmul.f32 1.442695, %v1101_v19  ;;  %4161 = vmatmul.mubr.msk.f32.gmra.mrb[58].mxu1 %vm2261_vm2, %v6238_v41  ;;  %v723_v19 = vsel %vm683_vm8, %v5880_v59, %v4025_v27  ;;  %v7723_v61 = vld [vmem:[#allocation26_spill] sm:$0xff]  ;;  %v6290_v41 = vadd.f32 %v7725_v20, %v5591_v30 }
 0x15c   :  { %4509 = vmatpush1.bf16.msra.mxu0 %v7719_v55  ;;  %7720 = vst [vmem:[#allocation20_spill] sm:$0xff] %v6255_v11  ;;  %7721 = vst [vmem:[#allocation19_spill] sm:$0xff] %v6257_v25  ;;  %v6268_v42 = vpop.f32.mrb[51].mxu1  ;;  %v6270_v55 = vmul.f32 1.442695, %v1098_v32  ;;  %2350 = vmatprep.mubr.f32.mxu1 %v7713_v8  ;;  %v4068_v25 = vadd.f32 -1.0, %v4845_v22  ;;  %v725_v11 = vsel %vm685_vm9, %v5902_v12, %v4027_v44 }
 0x15d   :  { %7722 = vst [vmem:[#allocation18_spill] sm:$0xff] %v6268_v42  ;;  %v1250_v9 = vmul.f32 1.442695, %v1238_v2  ;;  %v6282_v42 = vadd.f32 %v7723_v61, %v5591_v30  ;;  %v4847_v5 = vpop.eup %4846  ;;  %v1100_v2 = vmin.f32 %v6249_v36, 0.0  ;;  %v4510_v22 = vpack.c.bf16 %v725_v11, %v723_v19  ;;  %v7727_v61 = vld [vmem:[#allocation21_spill] sm:$0xff] }
 0x15e   :  { %v6284_v32 = vpop.f32.mrb[52].mxu0  ;;  %v4849_v12 = vpop.eup %4848  ;;  %v4058_v44 = vadd.f32 -1.0, %v4847_v5  ;;  %v6298_v57 = vadd.f32 %v7727_v61, %v5569_v10  ;;  %4856 = vpow2.f32 %v1113_v3  ;;  %v1129_v20 = vsel %vm1089_vm12, %v6070_v15, %v4056_v34  ;;  %v6313_v3 = vld [vmem:[%s7621_s3 + $0x18] sm:$0xff] }
 0x15f   :  { %7724 = vst [vmem:[#allocation26_spill] sm:$0xff] %v6284_v32  ;;  %v6292_v59 = vpop.f32.mrb[52].mxu1  ;;  %v6294_v27 = vpop.f32.mrb[53].mxu0  ;;  %v1103_v32 = vmin.f32 %v6282_v42, 0.0  ;;  %4162 = vmatmul.mubr.msk.f32.gmra.mrb[60].mxu1 %vm2261_vm2, %v6266_v1  ;;  %v4070_v19 = vadd.f32 -1.0, %v4849_v12  ;;  %4858 = vpow2.f32 %v1250_v9  ;;  %4511 = vmatprep.subr.bf16.mxu0 %v4510_v22  ;;  %v1240_v5 = vmin.f32 %v6290_v41, 0.0 }
 0x160   :  { %7726 = vst [vmem:[#allocation27_spill] sm:$0xff] %v6294_v27  ;;  %v6303_v11 = vpop.f32.mrb[53].mxu1  ;;  %2356 = vmatprep.mubr.f32.mxu1 %v7713_v8  ;;  %v6318_v61 = vsel %vm1226_vm13, %v6089_v28, %v4068_v25  ;;  %v1131_v15 = vsel %vm1091_vm14, %v6128_v53, %v4058_v44  ;;  %v856_v9 = vsel %vm816_vm10, %v5966_v13, %v4033_v24  ;;  %vm822_vm1 = vcmp.gt.f32.partialorder %v6124_v37, 0.0 }
 0x161   :  { %7728 = vst [vmem:[#allocation21_spill] sm:$0xff] %v6303_v11  ;;  %v1117_v34 = vmul.f32 1.442695, %v1103_v32  ;;  %v7729_v22 = vpack.c.bf16 %v5927_v0, %v5924_v49  ;;  %v4851_v11 = vpop.eup %4850  ;;  %v6331_v27 = vpack.c.bf16 %v1131_v15, %v1129_v20  ;;  %v6336_v28 = vsel %vm1228_vm15, %v6132_v39, %v4070_v19  ;;  %v7733_v32 = vld [vmem:[#allocation24_spill] sm:$0xff] }
 0x162   :  { %v6329_v12 = vpop.f32.mrb[54].mxu0  ;;  %v1254_v53 = vmul.f32 1.442695, %v1240_v5  ;;  %v858_v25 = vsel %vm818_vm11, %v5997_v50, %v4035_v56  ;;  %v4853_v49 = vpop.eup %4852  ;;  %v6349_v44 = vadd.f32 %v7733_v32, %v5574_v16  ;;  %v1244_v50 = vmul.f32 1.442695, %v1235_v31 }
 0x163   :  { %4513 = vmatpush1.bf16.msra.mxu0 %v7729_v22  ;;  %7730 = vst [vmem:[#allocation50_spill] sm:$0xff] %v6329_v12  ;;  %v6341_v13 = vpop.f32.mrb[54].mxu1  ;;  %v6343_v24 = vpop.f32.mrb[55].mxu0  ;;  %4860 = vpow2.f32 %v1117_v34  ;;  %v4514_v39 = vpack.c.bf16 %v858_v25, %v856_v9  ;;  %4163 = vmatmul.mubr.msk.f32.gmra.mrb[62].mxu1 %vm2261_vm2, %v6313_v3  ;;  %v6357_v56 = vadd.f32 %v5929_v45, %v5559_v4  ;;  %v6365_v15 = vadd.f32 -1.0, %v6193_v35  ;;  %v7736_v45 = vld [vmem:[#allocation25_spill] sm:$0xff] }
 0x164   :  { %7731 = vst [vmem:[#allocation51_spill] sm:$0xff] %v6341_v13  ;;  %7732 = vst [vmem:[#allocation52_spill] sm:$0xff] %v6343_v24  ;;  %v6353_v20 = vpop.f32.mrb[55].mxu1  ;;  %4862 = vpow2.f32 %v1254_v53  ;;  %v6361_v19 = vadd.f32 %v5936_v60, %v5559_v4  ;;  %2612 = vmatprep.mubr.f32.mxu1 %v7713_v8  ;;  %v4855_v5 = vpop.eup %4854  ;;  %v1111_v34 = vmul.f32 1.442695, %v1100_v2  ;;  %v1237_v31 = vmin.f32 %v6298_v57, 0.0 }
 0x165   :  { %7734 = vst [vmem:[#allocation24_spill] sm:$0xff] %v6353_v20  ;;  %4523 = vmatprep.subr.bf16.mxu1 %v4514_v39  ;;  %4515 = vmatprep.subr.bf16.mxu0 %v4514_v39  ;;  %4864 = vpow2.f32 %v6244_v26  ;;  %v6375_v60 = vadd.f32 %v7736_v45, %v5574_v16  ;;  %v1371_v35 = vmin.f32 %v6357_v56, 0.0  ;;  %v6383_v22 = vadd.f32 -1.0, %v6213_v14 }
 0x166   :  { %v6369_v9 = vpop.f32.mrb[56].mxu0  ;;  %4525 = vmatpush1.bf16.msra.mxu1 %v6046_v40  ;;  %4866 = vpow2.f32 %v6270_v55  ;;  %v1102_v53 = vmin.f32 %v6349_v44, 0.0  ;;  %v1508_v26 = vmin.f32 %v6361_v19, 0.0  ;;  %v4037_v25 = vadd.f32 -1.0, %v4851_v11 }
 0x167   :  { %7735 = vst [vmem:[#allocation53_spill] sm:$0xff] %v6369_v9  ;;  %4517 = vmatpush1.bf16.msra.mxu0 %v6046_v40  ;;  %v6380_v2 = vpop.f32.mrb[57].mxu0  ;;  %v6388_v32 = vadd.f32 -1.0, %v4853_v49  ;;  %4868 = vpow2.f32 %v1244_v50  ;;  %v6392_v39 = vadd.f32 %v5910_v43, %v5591_v30  ;;  %v4039_v45 = vadd.f32 -1.0, %v4855_v5 }
 0x168   :  { %7737 = vst [vmem:[#allocation25_spill] sm:$0xff] %v6380_v2  ;;  %v4857_v40 = vpop.eup %4856  ;;  %4870 = vpow2.f32 %v1111_v34  ;;  %v6394_v0 = vmul.f32 1.442695, %v1237_v31  ;;  %v1379_v14 = vmul.f32 1.442695, %v1371_v35  ;;  %vm953_vm3 = vcmp.gt.f32.partialorder %v5970_v47, 0.0 }
 0x169   :  { %v4859_v55 = vpop.eup %4858  ;;  %vm955_vm4 = vcmp.gt.f32.partialorder %v6017_v54, 0.0  ;;  %vm1093_vm5 = vcmp.gt.f32.partialorder %v6221_v52, 0.0  ;;  %vm1230_vm6 = vcmp.gt.f32.partialorder %v6225_v58, 0.0  ;;  %v1239_v43 = vmin.f32 %v6375_v60, 0.0 }
 0x16a   :  { %v6396_v2 = vpop.f32.mrb[58].mxu0  ;;  %v1516_v11 = vmul.f32 1.442695, %v1508_v26  ;;  %v1115_v50 = vmul.f32 1.442695, %v1102_v53  ;;  %vm1095_vm7 = vcmp.gt.f32.partialorder %v6282_v42, 0.0  ;;  %v6409_v5 = vadd.f32 %v5916_v51, %v5591_v30 }
 0x16b   :  { %7738 = vst [vmem:[#allocation54_spill] sm:$0xff] %v6396_v2  ;;  %v6403_v49 = vpop.f32.mrb[59].mxu0  ;;  %vm1232_vm8 = vcmp.gt.f32.partialorder %v6290_v41, 0.0  ;;  %v4060_v34 = vadd.f32 -1.0, %v4857_v40  ;;  %v1104_v31 = vmin.f32 %v6392_v39, 0.0  ;;  %v6414_v35 = vadd.f32 %v5972_v6, %v5569_v10 }
 0x16c   :  { %7739 = vst [vmem:[#allocation55_spill] sm:$0xff] %v6403_v49  ;;  %v6418_v26 = vadd.f32 %v5975_v23, %v5569_v10  ;;  %v4072_v49 = vadd.f32 -1.0, %v4859_v55  ;;  %4872 = vpow2.f32 %v1379_v14  ;;  %v6422_v2 = vadd.f32 %v5938_v63, %v5559_v4 }
 0x16d   :  { %v4861_v53 = vpop.eup %4860  ;;  %v862_v51 = vsel %vm822_vm1, %v6124_v37, %v4039_v45  ;;  %4874 = vpow2.f32 %v1516_v11  ;;  %v1373_v20 = vmin.f32 %v6414_v35, 0.0  ;;  %v860_v23 = vsel %vm820_vm0, %v6076_v21, %v4037_v25 }
 0x16e   :  { %v6427_v40 = vpop.f32.mrb[60].mxu0  ;;  %v4863_v9 = vpop.eup %4862  ;;  %v4062_v6 = vadd.f32 -1.0, %v4861_v53  ;;  %v1241_v63 = vmin.f32 %v6409_v5, 0.0  ;;  %v1510_v24 = vmin.f32 %v6418_v26, 0.0  ;;  %v4518_v13 = vpack.c.bf16 %v862_v51, %v860_v23 }
 0x16f   :  { %7740 = vst [vmem:[#allocation56_spill] sm:$0xff] %v6427_v40  ;;  %v6433_v14 = vpop.f32.mrb[61].mxu0  ;;  %v4074_v55 = vadd.f32 -1.0, %v4863_v9  ;;  %v4865_v37 = vpop.eup %4864  ;;  %v1133_v45 = vsel %vm1093_vm5, %v6221_v52, %v4060_v34  ;;  %v6445_v21 = vadd.f32 %v5946_v48, %v5559_v4  ;;  %v1383_v25 = vmul.f32 1.442695, %v1373_v20 }
 0x170   :  { %7741 = vst [vmem:[#allocation57_spill] sm:$0xff] %v6433_v14  ;;  %v1135_v11 = vsel %vm1095_vm7, %v6282_v42, %v4062_v6  ;;  %v4867_v9 = vpop.eup %4866  ;;  %vm957_vm9 = vcmp.gt.f32.partialorder %v6096_v38, 0.0  ;;  %vm959_vm10 = vcmp.gt.f32.partialorder %v6155_v29, 0.0  ;;  %v6452_v53 = vsel %vm1230_vm6, %v6225_v58, %v4072_v49  ;;  %4519 = vmatprep.subr.bf16.mxu0 %v4518_v13  ;;  %4527 = vmatprep.subr.bf16.mxu1 %v4518_v13 }
 0x171   :  { %v6454_v52 = vpack.c.bf16 %v1135_v11, %v1133_v45  ;;  %v6459_v42 = vsel %vm1232_vm8, %v6290_v41, %v4074_v55  ;;  %v1520_v48 = vmul.f32 1.442695, %v1510_v24  ;;  %v4869_v34 = vpop.eup %4868  ;;  %v1252_v51 = vmul.f32 1.442695, %v1239_v43  ;;  %4521 = vmatpush1.bf16.msra.mxu0 %v6179_v33  ;;  %4529 = vmatpush1.bf16.msra.mxu1 %v6179_v33 }
 0x172   :  { %v6461_v20 = vpop.f32.mrb[62].mxu0  ;;  %v1119_v23 = vmul.f32 1.442695, %v1104_v31  ;;  %4876 = vpow2.f32 %v1383_v25  ;;  %v4871_v41 = vpop.eup %4870  ;;  %v993_v13 = vsel %vm953_vm3, %v5970_v47, %v6365_v15  ;;  %v995_v24 = vsel %vm955_vm4, %v6017_v54, %v6383_v22 }
 0x173   :  { %7742 = vst [vmem:[#allocation58_spill] sm:$0xff] %v6461_v20  ;;  %v6467_v58 = vpop.f32.mrb[63].mxu0  ;;  %4878 = vpow2.f32 %v1520_v48  ;;  %v6479_v43 = vadd.f32 %v5999_v18, %v5574_v16  ;;  %v4051_v49 = vadd.f32 -1.0, %v4865_v37  ;;  %v1256_v33 = vmul.f32 1.442695, %v1241_v63  ;;  %v7744_v63 = vld [vmem:[#allocation13_spill] sm:$0xff] }
 0x174   :  { %7743 = vst [vmem:[#allocation59_spill] sm:$0xff] %v6467_v58  ;;  %4880 = vpow2.f32 %v6394_v0  ;;  %v4530_v31 = vpack.c.bf16 %v995_v24, %v993_v13  ;;  %v1372_v55 = vmin.f32 %v6422_v2, 0.0  ;;  %v1509_v45 = vmin.f32 %v6445_v21, 0.0  ;;  %4172 = vmatmul.mubr.msk.f32.vlgmr.msra.gmra.mrb[64].mxu0 %vm2261_vm2, %v6191_v7  ;;  %v7766_v58 = vld [vmem:[#allocation36_spill] sm:$0xff] }
 0x175   :  { %4882 = vpow2.f32 %v1115_v50  ;;  %v1375_v47 = vmin.f32 %v6479_v43, 0.0  ;;  %v4057_v54 = vadd.f32 -1.0, %v4867_v9  ;;  %v6487_v15 = vadd.f32 -1.0, %v4869_v34  ;;  %2481 = vmatprep.mubr.f32.mxu0 %v7713_v8  ;;  %v7747_v9 = vld [vmem:[#allocation29_spill] sm:$0xff] }
 0x176   :  { %vm1092_vm11 = vcmp.gt.f32.partialorder %v6249_v36, 0.0  ;;  %4884 = vpow2.f32 %v1252_v51  ;;  %4531 = vmatprep.subr.bf16.mxu1 %v4530_v31  ;;  %v6492_v18 = vadd.f32 %v6002_v17, %v5574_v16  ;;  %v4873_v0 = vpop.eup %4872  ;;  %vm1090_vm12 = vcmp.gt.f32.partialorder %v6167_v62, 0.0  ;;  %v7746_v17 = vld [vmem:[#allocation28_spill] sm:$0xff] }
 0x177   :  { %v4059_v22 = vadd.f32 -1.0, %v4871_v41  ;;  %4886 = vpow2.f32 %v1119_v23  ;;  %vm1363_vm13 = vcmp.gt.f32.partialorder %v6357_v56, 0.0  ;;  %v1387_v50 = vmul.f32 1.442695, %v1375_v47  ;;  %v4875_v11 = vpop.eup %4874  ;;  %v7748_v23 = vld [vmem:[#allocation23_spill] sm:$0xff] }
 0x178   :  { %v7745_v37 = vpack.c.bf16 %v6051_v46, %v7744_v63  ;;  %4888 = vpow2.f32 %v1256_v33  ;;  %vm1500_vm14 = vcmp.gt.f32.partialorder %v6361_v19, 0.0  ;;  %v6503_v25 = vadd.f32 %v7746_v17, %v5569_v10  ;;  %4173 = vmatmul.mubr.msk.f32.gmra.mrb[66].mxu0 %vm2261_vm2, %v7748_v23  ;;  %v7752_v17 = vld [vmem:[#allocation31_spill] sm:$0xff] }
 0x179   :  { %v6507_v48 = vadd.f32 %v7747_v9, %v5569_v10  ;;  %v1381_v34 = vmul.f32 1.442695, %v1372_v55  ;;  %v6509_v51 = vmul.f32 1.442695, %v1509_v45  ;;  %vm1365_vm15 = vcmp.gt.f32.partialorder %v6414_v35, 0.0  ;;  %2487 = vmatprep.mubr.f32.mxu0 %v7713_v8  ;;  %v7749_v45 = vld [vmem:[#allocation12_spill] sm:$0xff] }
 0x17a   :  { %4533 = vmatpush1.bf16.msra.mxu1 %v7745_v37  ;;  %v1512_v46 = vmin.f32 %v6492_v18, 0.0  ;;  %v4080_v41 = vadd.f32 -1.0, %v4873_v0  ;;  %4890 = vpow2.f32 %v1387_v50  ;;  %v997_v13 = vsel %vm957_vm9, %v6096_v38, %v6388_v32  ;;  %v7750_v32 = vld [vmem:[#allocation32_spill] sm:$0xff]  ;;  %v7751_v37 = vld [vmem:[#allocation30_spill] sm:$0xff] }
 0x17b   :  { %v999_v24 = vsel %vm959_vm10, %v6155_v29, %v4051_v49  ;;  %v4092_v33 = vadd.f32 -1.0, %v4875_v11  ;;  %v6525_v47 = vadd.f32 %v7749_v45, %v5591_v30  ;;  %vm1502_vm0 = vcmp.gt.f32.partialorder %v6418_v26, 0.0 }
 0x17c   :  { %v1524_v31 = vmul.f32 1.442695, %v1512_v46  ;;  %v4534_v55 = vpack.c.bf16 %v999_v24, %v997_v13  ;;  %v4877_v0 = vpop.eup %4876  ;;  %v1374_v50 = vmin.f32 %v6503_v25, 0.0  ;;  %v1511_v38 = vmin.f32 %v6507_v48, 0.0  ;;  %4174 = vmatmul.mubr.msk.f32.gmra.mrb[68].mxu0 %vm2261_vm2, %v6266_v1 }
 0x17d   :  { %v6532_v63 = vadd.f32 %v7750_v32, %v5591_v30  ;;  %v4879_v29 = vpop.eup %4878  ;;  %v4082_v49 = vadd.f32 -1.0, %v4877_v0  ;;  %v6536_v11 = vadd.f32 %v7751_v37, %v5574_v16  ;;  %v6540_v9 = vadd.f32 %v7752_v17, %v5574_v16  ;;  %v7753_v32 = vld [vmem:[#allocation45_spill] sm:$0xff]  ;;  %v7754_v37 = vld [vmem:[#allocation44_spill] sm:$0xff]  ;;  %2493 = vmatprep.mubr.f32.mxu0 %v7713_v8 }
 0x17e   :  { %4535 = vmatprep.subr.bf16.mxu1 %v4534_v55  ;;  %v1377_v46 = vmin.f32 %v6525_v47, 0.0  ;;  %v4881_v13 = vpop.eup %4880  ;;  %v1403_v24 = vsel %vm1363_vm13, %v6357_v56, %v4080_v41  ;;  %v4094_v45 = vadd.f32 -1.0, %v4879_v29  ;;  %4892 = vpow2.f32 %v1524_v31 }
 0x17f   :  { %v1514_v0 = vmin.f32 %v6532_v63, 0.0  ;;  %v7755_v6 = vpack.c.bf16 %v7753_v32, %v7754_v37  ;;  %v4883_v55 = vpop.eup %4882  ;;  %v6556_v17 = vsel %vm1500_vm14, %v6361_v19, %v4092_v33  ;;  %v1405_v56 = vsel %vm1365_vm15, %v6414_v35, %v4082_v49 }
 0x180   :  { %7756 = vst [vmem:[#allocation13_spill] sm:$0xff] %v6556_v17  ;;  %v1391_v41 = vmul.f32 1.442695, %v1377_v46  ;;  %v1132_v31 = vsel %vm1092_vm11, %v6249_v36, %v4059_v22  ;;  %v4885_v29 = vpop.eup %4884  ;;  %v6564_v32 = vpack.c.bf16 %v1405_v56, %v1403_v24  ;;  %v1130_v19 = vsel %vm1090_vm12, %v6167_v62, %v4057_v54  ;;  %4175 = vmatmul.mubr.msk.f32.gmra.mrb[70].mxu0 %vm2261_vm2, %v6313_v3  ;;  %v7759_v62 = vld [vmem:[#allocation10_spill] sm:$0xff] }
 0x181   :  { %4537 = vmatpush1.bf16.msra.mxu1 %v7755_v6  ;;  %v6569_v6 = vsel %vm1502_vm0, %v6418_v26, %v4094_v45  ;;  %v1528_v37 = vmul.f32 1.442695, %v1514_v0  ;;  %v4887_v33 = vpop.eup %4886  ;;  %v1376_v49 = vmin.f32 %v6536_v11, 0.0  ;;  %v4538_v36 = vpack.c.bf16 %v1132_v31, %v1130_v19  ;;  %v7758_v26 = vld [vmem:[#allocation8_spill] sm:$0xff]  ;;  %2749 = vmatprep.mubr.f32.mxu0 %v7713_v8 }
 0x182   :  { %7757 = vst [vmem:[#allocation28_spill] sm:$0xff] %v6569_v6  ;;  %4894 = vpow2.f32 %v1391_v41  ;;  %v4889_v22 = vpop.eup %4888  ;;  %v1385_v46 = vmul.f32 1.442695, %v1374_v50  ;;  %v6581_v24 = vadd.f32 %v7758_v26, %v5559_v4  ;;  %v6585_v54 = vadd.f32 %v7759_v62, %v5559_v4  ;;  %v7763_v62 = vld [vmem:[#allocation11_spill] sm:$0xff] }
 0x183   :  { %4896 = vpow2.f32 %v1528_v37  ;;  %v6588_v45 = vadd.f32 -1.0, %v4881_v13  ;;  %vm1096_vm1 = vcmp.gt.f32.partialorder %v6392_v39, 0.0  ;;  %v1522_v0 = vmul.f32 1.442695, %v1511_v38  ;;  %4547 = vmatprep.subr.bf16.mxu0 %v4538_v36  ;;  %4539 = vmatprep.subr.bf16.mxu1 %v4538_v36 }
 0x184   :  { %4898 = vpow2.f32 %v1381_v34  ;;  %v4891_v50 = vpop.eup %4890  ;;  %vm1094_vm3 = vcmp.gt.f32.partialorder %v6349_v44, 0.0  ;;  %v4061_v56 = vadd.f32 -1.0, %v4883_v55  ;;  %v6592_v41 = vadd.f32 -1.0, %v4885_v29  ;;  %4549 = vmatpush1.bf16.msra.mxu0 %v6331_v27  ;;  %v7760_v55 = vld [vmem:[#allocation33_spill] sm:$0xff] }
 0x185   :  { %v4063_v31 = vadd.f32 -1.0, %v4887_v33  ;;  %4900 = vpow2.f32 %v6509_v51  ;;  %4541 = vmatpush1.bf16.msra.mxu1 %v6331_v27  ;;  %v1389_v13 = vmul.f32 1.442695, %v1376_v49  ;;  %v1513_v37 = vmin.f32 %v6540_v9, 0.0  ;;  %v7761_v51 = vld [vmem:[#allocation9_spill] sm:$0xff] }
 0x186   :  { %v1645_v34 = vmin.f32 %v6581_v24, 0.0  ;;  %v1782_v38 = vmin.f32 %v6585_v54, 0.0  ;;  %v6600_v19 = vadd.f32 -1.0, %v4889_v22  ;;  %4902 = vpow2.f32 %v1385_v46  ;;  %v7762_v46 = vld [vmem:[#allocation34_spill] sm:$0xff] }
 0x187   :  { %v6604_v29 = vadd.f32 %v7760_v55, %v5591_v30  ;;  %v6608_v33 = vadd.f32 %v7761_v51, %v5591_v30  ;;  %4904 = vpow2.f32 %v1522_v0  ;;  %vm1367_vm4 = vcmp.gt.f32.partialorder %v6479_v43, 0.0  ;;  %v7764_v51 = vld [vmem:[#allocation17_spill] sm:$0xff] }
 0x188   :  { %v4084_v27 = vadd.f32 -1.0, %v4891_v50  ;;  %v1653_v49 = vmul.f32 1.442695, %v1645_v34  ;;  %v4893_v36 = vpop.eup %4892  ;;  %vm1229_vm5 = vcmp.gt.f32.partialorder %v6298_v57, 0.0  ;;  %vm1504_vm6 = vcmp.gt.f32.partialorder %v6492_v18, 0.0 }
 0x189   :  { %v1790_v22 = vmul.f32 1.442695, %v1782_v38  ;;  %v6615_v26 = vadd.f32 %v7762_v46, %v5559_v4  ;;  %v6619_v55 = vadd.f32 %v7763_v62, %v5569_v10  ;;  %vm1227_vm7 = vcmp.gt.f32.partialorder %v7764_v51, 0.0  ;;  %v7765_v38 = vld [vmem:[#allocation35_spill] sm:$0xff] }
 0x18a   :  { %4906 = vpow2.f32 %v1389_v13  ;;  %v1526_v0 = vmul.f32 1.442695, %v1513_v37  ;;  %vm1369_vm8 = vcmp.gt.f32.partialorder %v6525_v47, 0.0  ;;  %vm1506_vm9 = vcmp.gt.f32.partialorder %v6532_v63, 0.0 }
 0x18b   :  { %v1378_v50 = vmin.f32 %v6604_v29, 0.0  ;;  %v1515_v34 = vmin.f32 %v6608_v33, 0.0  ;;  %4908 = vpow2.f32 %v1653_v49  ;;  %v6628_v46 = vadd.f32 %v7765_v38, %v5559_v4 }
 0x18c   :  { %v4895_v35 = vpop.eup %4894  ;;  %v1407_v62 = vsel %vm1367_vm4, %v6479_v43, %v4084_v27  ;;  %v4096_v13 = vadd.f32 -1.0, %v4893_v36  ;;  %v1647_v37 = vmin.f32 %v6619_v55, 0.0  ;;  %v6636_v20 = vadd.f32 %v7766_v58, %v5569_v10  ;;  %v7767_v27 = vld [vmem:[#allocation37_spill] sm:$0xff] }
 0x18d   :  { %v4897_v14 = vpop.eup %4896  ;;  %v4086_v40 = vadd.f32 -1.0, %v4895_v35  ;;  %4910 = vpow2.f32 %v1790_v22  ;;  %v1646_v49 = vmin.f32 %v6615_v26, 0.0  ;;  %v1136_v38 = vsel %vm1096_vm1, %v6392_v39, %v4063_v31 }
 0x18e   :  { %v4899_v12 = vpop.eup %4898  ;;  %v4098_v17 = vadd.f32 -1.0, %v4897_v14  ;;  %v1657_v6 = vmul.f32 1.442695, %v1647_v37  ;;  %v1134_v43 = vsel %vm1094_vm3, %v6349_v44, %v4061_v56  ;;  %v6647_v58 = vadd.f32 %v7767_v27, %v5569_v10 }
 0x18f   :  { %v4901_v36 = vpop.eup %4900  ;;  %v1409_v35 = vsel %vm1369_vm8, %v6525_v47, %v4086_v40  ;;  %v1783_v22 = vmin.f32 %v6628_v46, 0.0  ;;  %v1784_v39 = vmin.f32 %v6636_v20, 0.0  ;;  %v4542_v31 = vpack.c.bf16 %v1136_v38, %v1134_v43 }
 0x190   :  { %v6657_v14 = vsel %vm1504_vm6, %v6492_v18, %v4096_v13  ;;  %v6659_v44 = vpack.c.bf16 %v1409_v35, %v1407_v62  ;;  %v6664_v56 = vsel %vm1506_vm9, %v6532_v63, %v4098_v17  ;;  %4912 = vpow2.f32 %v1657_v6  ;;  %v4903_v37 = vpop.eup %4902  ;;  %v7768_v17 = vld [vmem:[#allocation39_spill] sm:$0xff] }
 0x191   :  { %vm1231_vm10 = vcmp.gt.f32.partialorder %v6375_v60, 0.0  ;;  %vm1233_vm11 = vcmp.gt.f32.partialorder %v6409_v5, 0.0  ;;  %v4584_v40 = vpack.c.bf16 %v6664_v56, %v6657_v14  ;;  %v1393_v47 = vmul.f32 1.442695, %v1378_v50  ;;  %4543 = vmatprep.subr.bf16.mxu1 %v4542_v31  ;;  %4551 = vmatprep.subr.bf16.mxu0 %v4542_v31  ;;  %v4905_v62 = vpop.eup %4904  ;;  %v7769_v50 = vld [vmem:[#allocation14_spill] sm:$0xff] }
 0x192   :  { %v1530_v38 = vmul.f32 1.442695, %v1515_v34  ;;  %v1794_v18 = vmul.f32 1.442695, %v1784_v39  ;;  %v1648_v13 = vmin.f32 %v6647_v58, 0.0  ;;  %4545 = vmatpush1.bf16.msra.mxu1 %v6454_v52  ;;  %4553 = vmatpush1.bf16.msra.mxu0 %v6454_v52  ;;  %v1269_v63 = vsel %vm1229_vm5, %v6298_v57, %v6588_v45 }
 0x193   :  { %v6679_v6 = vadd.f32 %v7768_v17, %v5574_v16  ;;  %v6683_v34 = vadd.f32 %v7769_v50, %v5574_v16  ;;  %v6685_v43 = vadd.f32 -1.0, %v4899_v12  ;;  %vm1366_vm12 = vcmp.gt.f32.partialorder %v6503_v25, 0.0 }
 0x194   :  { %v1655_v27 = vmul.f32 1.442695, %v1646_v49  ;;  %4914 = vpow2.f32 %v1794_v18  ;;  %v1267_v52 = vsel %vm1227_vm7, %v7764_v51, %v6487_v15  ;;  %v6692_v57 = vpop.eup %4906  ;;  %v6694_v45 = vadd.f32 -1.0, %v4901_v36  ;;  %v7770_v49 = vld [vmem:[#allocation38_spill] sm:$0xff] }
 0x195   :  { %4916 = vpow2.f32 %v1526_v0  ;;  %v1792_v35 = vmul.f32 1.442695, %v1783_v22  ;;  %v4554_v39 = vpack.c.bf16 %v1269_v63, %v1267_v52  ;;  %v4909_v31 = vpop.eup %4908  ;;  %vm1364_vm13 = vcmp.gt.f32.partialorder %v6422_v2, 0.0  ;;  %4184 = vmatmul.mubr.msk.f32.vlgmr.msra.gmra.mrb[64].mxu1 %vm2261_vm2, %v6191_v7  ;;  %v7773_v63 = vld [vmem:[#allocation41_spill] sm:$0xff] }
 0x196   :  { %v4083_v12 = vadd.f32 -1.0, %v4903_v37  ;;  %4918 = vpow2.f32 %v1393_v47  ;;  %v6699_v18 = vadd.f32 %v7770_v49, %v5569_v10  ;;  %v1649_v17 = vmin.f32 %v6679_v6, 0.0  ;;  %2618 = vmatprep.mubr.f32.mxu1 %v7713_v8  ;;  %v7772_v47 = vld [vmem:[#allocation40_spill] sm:$0xff] }
 0x197   :  { %v6704_v15 = vadd.f32 -1.0, %v4905_v62  ;;  %4920 = vpow2.f32 %v1530_v38  ;;  %v1659_v51 = vmul.f32 1.442695, %v1648_v13  ;;  %4555 = vmatprep.subr.bf16.mxu0 %v4554_v39  ;;  %v1786_v0 = vmin.f32 %v6683_v34, 0.0  ;;  %v4911_v36 = vpop.eup %4910 }
 0x198   :  { %vm1637_vm14 = vcmp.gt.f32.partialorder %v6581_v24, 0.0  ;;  %vm1774_vm15 = vcmp.gt.f32.partialorder %v6585_v54, 0.0  ;;  %4922 = vpow2.f32 %v1655_v27  ;;  %v1661_v22 = vmul.f32 1.442695, %v1649_v17 }
 0x199   :  { %v7771_v37 = vpack.c.bf16 %v6336_v28, %v6318_v61  ;;  %v4104_v7 = vadd.f32 -1.0, %v4909_v31  ;;  %4924 = vpow2.f32 %v1792_v35  ;;  %vm1639_vm0 = vcmp.gt.f32.partialorder %v6619_v55, 0.0  ;;  %4185 = vmatmul.mubr.msk.f32.gmra.mrb[66].mxu1 %vm2261_vm2, %v7748_v23  ;;  %v7774_v23 = vld [vmem:[#allocation42_spill] sm:$0xff] }
 0x19a   :  { %v6716_v38 = vadd.f32 %v7772_v47, %v5574_v16  ;;  %vm1776_vm1 = vcmp.gt.f32.partialorder %v6636_v20, 0.0  ;;  %v1785_v62 = vmin.f32 %v6699_v18, 0.0  ;;  %v1798_v13 = vmul.f32 1.442695, %v1786_v0  ;;  %v4913_v61 = vpop.eup %4912  ;;  %2624 = vmatprep.mubr.f32.mxu1 %v7713_v8 }
 0x19b   :  { %4557 = vmatpush1.bf16.msra.mxu0 %v7771_v37  ;;  %v6722_v50 = vadd.f32 %v7773_v63, %v5574_v16  ;;  %v4116_v28 = vadd.f32 -1.0, %v4911_v36  ;;  %4926 = vpow2.f32 %v1659_v51  ;;  %v1271_v27 = vsel %vm1231_vm10, %v6375_v60, %v6592_v41  ;;  %v7775_v41 = vld [vmem:[#allocation15_spill] sm:$0xff]  ;;  %v7777_v63 = vld [vmem:[#allocation16_spill] sm:$0xff] }
 0x19c   :  { %v1273_v52 = vsel %vm1233_vm11, %v6409_v5, %v6600_v19  ;;  %v4106_v35 = vadd.f32 -1.0, %v4913_v61  ;;  %4928 = vpow2.f32 %v1661_v22  ;;  %v6737_v31 = vadd.f32 %v7774_v23, %v5591_v30 }
 0x19d   :  { %v4558_v39 = vpack.c.bf16 %v1273_v52, %v1271_v27  ;;  %v1677_v49 = vsel %vm1637_vm14, %v6581_v24, %v4104_v7  ;;  %v1650_v60 = vmin.f32 %v6716_v38, 0.0  ;;  %v6745_v17 = vadd.f32 %v7775_v41, %v5591_v30  ;;  %4186 = vmatmul.mubr.msk.f32.gmra.mrb[68].mxu1 %vm2261_vm2, %v6266_v1 }
 0x19e   :  { %v1406_v5 = vsel %vm1366_vm12, %v6503_v25, %v4083_v12  ;;  %v4915_v19 = vpop.eup %4914  ;;  %v1679_v51 = vsel %vm1639_vm0, %v6619_v55, %v4106_v35  ;;  %4930 = vpow2.f32 %v1798_v13  ;;  %v1787_v0 = vmin.f32 %v6722_v50, 0.0  ;;  %2630 = vmatprep.mubr.f32.mxu1 %v7713_v8 }
 0x19f   :  { %4559 = vmatprep.subr.bf16.mxu0 %v4558_v39  ;;  %v1651_v24 = vmin.f32 %v6737_v31, 0.0  ;;  %v4917_v36 = vpop.eup %4916  ;;  %v6757_v22 = vpack.c.bf16 %v1679_v51, %v1677_v49  ;;  %v4118_v37 = vadd.f32 -1.0, %v4915_v19  ;;  %v1788_v25 = vmin.f32 %v6745_v17, 0.0 }
 0x1a0   :  { %v1404_v55 = vsel %vm1364_vm13, %v6422_v2, %v6685_v43  ;;  %v7776_v12 = vpack.c.bf16 %v6459_v42, %v6452_v53  ;;  %v4919_v7 = vpop.eup %4918  ;;  %v1796_v47 = vmul.f32 1.442695, %v1785_v62  ;;  %v6770_v61 = vadd.f32 %v7777_v63, %v5591_v30  ;;  %v7778_v42 = vld [vmem:[#allocation46_spill] sm:$0xff] }
 0x1a1   :  { %v1665_v1 = vmul.f32 1.442695, %v1651_v24  ;;  %v4562_v13 = vpack.c.bf16 %v1406_v5, %v1404_v55  ;;  %v4921_v27 = vpop.eup %4920  ;;  %v6775_v52 = vsel %vm1774_vm15, %v6585_v54, %v4116_v28  ;;  %v6780_v2 = vsel %vm1776_vm1, %v6636_v20, %v4118_v37  ;;  %v7779_v54 = vld [vmem:[#allocation43_spill] sm:$0xff]  ;;  %4187 = vmatmul.mubr.msk.f32.gmra.mrb[70].mxu1 %vm2261_vm2, %v6313_v3 }
 0x1a2   :  { %4561 = vmatpush1.bf16.msra.mxu0 %v7776_v12  ;;  %v1802_v53 = vmul.f32 1.442695, %v1788_v25  ;;  %v6784_v43 = vadd.f32 %v7778_v42, %v5559_v4  ;;  %v4923_v62 = vpop.eup %4922  ;;  %v4604_v35 = vpack.c.bf16 %v6780_v2, %v6775_v52  ;;  %v1663_v39 = vmul.f32 1.442695, %v1650_v60  ;;  %v7780_v5 = vld [vmem:[#allocation47_spill] sm:$0xff]  ;;  %2886 = vmatprep.mubr.f32.mxu1 %v7713_v8 }
 0x1a3   :  { %4932 = vpow2.f32 %v1665_v1  ;;  %4571 = vmatprep.subr.bf16.mxu1 %v4562_v13  ;;  %v6790_v28 = vadd.f32 %v7779_v54, %v5591_v30  ;;  %4563 = vmatprep.subr.bf16.mxu0 %v4562_v13  ;;  %v4925_v23 = vpop.eup %4924  ;;  %vm1368_vm3 = vcmp.gt.f32.partialorder %v6536_v11, 0.0  ;;  %v4085_v20 = vadd.f32 -1.0, %v6692_v57  ;;  %v7804_v2 = vld [vmem:[#allocation59_spill] sm:$0xff] }
 0x1a4   :  { %vm1370_vm4 = vcmp.gt.f32.partialorder %v6604_v29, 0.0  ;;  %v1800_v49 = vmul.f32 1.442695, %v1787_v0  ;;  %4934 = vpow2.f32 %v1802_v53  ;;  %4573 = vmatpush1.bf16.msra.mxu1 %v6564_v32  ;;  %v1652_v60 = vmin.f32 %v6770_v61, 0.0  ;;  %v7782_v53 = vld [vmem:[#allocation22_spill] sm:$0xff] }
 0x1a5   :  { %4936 = vpow2.f32 %v1796_v47  ;;  %v1919_v41 = vmin.f32 %v6784_v43, 0.0  ;;  %v6801_v19 = vadd.f32 %v7780_v5, %v5559_v4  ;;  %v4927_v57 = vpop.eup %4926  ;;  %v6805_v51 = vadd.f32 -1.0, %v4917_v36  ;;  %v7781_v47 = vld [vmem:[#allocation48_spill] sm:$0xff]  ;;  %v7785_v5 = vld [vmem:[#allocation19_spill] sm:$0xff] }
 0x1a6   :  { %4565 = vmatpush1.bf16.msra.mxu0 %v6564_v32  ;;  %v4087_v0 = vadd.f32 -1.0, %v4919_v7  ;;  %v6807_v24 = vadd.f32 -1.0, %v4921_v27  ;;  %vm1641_vm5 = vcmp.gt.f32.partialorder %v6679_v6, 0.0  ;;  %v4929_v32 = vpop.eup %4928  ;;  %vm1778_vm6 = vcmp.gt.f32.partialorder %v6683_v34, 0.0 }
 0x1a7   :  { %4938 = vpow2.f32 %v1663_v39  ;;  %v1789_v37 = vmin.f32 %v6790_v28, 0.0  ;;  %v1927_v25 = vmul.f32 1.442695, %v1919_v41  ;;  %v6813_v55 = vadd.f32 -1.0, %v4923_v62  ;;  %v7783_v39 = vld [vmem:[#allocation49_spill] sm:$0xff] }
 0x1a8   :  { %v6815_v3 = vadd.f32 -1.0, %v4925_v23  ;;  %4940 = vpow2.f32 %v1800_v49  ;;  %v2056_v36 = vmin.f32 %v6801_v19, 0.0  ;;  %v4931_v12 = vpop.eup %4930  ;;  %vm1643_vm7 = vcmp.gt.f32.partialorder %v6737_v31, 0.0  ;;  %v7784_v23 = vld [vmem:[#allocation20_spill] sm:$0xff] }
 0x1a9   :  { %vm1780_vm8 = vcmp.gt.f32.partialorder %v6745_v17, 0.0  ;;  %v1667_v7 = vmul.f32 1.442695, %v1652_v60  ;;  %v6822_v1 = vadd.f32 %v7781_v47, %v5559_v4  ;;  %vm1501_vm9 = vcmp.gt.f32.partialorder %v6445_v21, 0.0 }
 0x1aa   :  { %vm1503_vm10 = vcmp.gt.f32.partialorder %v6507_v48, 0.0  ;;  %v6826_v13 = vadd.f32 -1.0, %v4927_v57  ;;  %v4108_v63 = vadd.f32 -1.0, %v4929_v32  ;;  %v2064_v27 = vmul.f32 1.442695, %v2056_v36 }
 0x1ab   :  { %v6830_v42 = vadd.f32 %v7782_v53, %v5559_v4  ;;  %v1804_v62 = vmul.f32 1.442695, %v1789_v37  ;;  %4942 = vpow2.f32 %v1927_v25  ;;  %v6834_v54 = vadd.f32 %v7783_v39, %v5569_v10 }
 0x1ac   :  { %v6838_v49 = vadd.f32 %v7784_v23, %v5569_v10  ;;  %v4120_v60 = vadd.f32 -1.0, %v4931_v12  ;;  %4944 = vpow2.f32 %v2064_v27  ;;  %v1410_v41 = vsel %vm1370_vm4, %v6604_v29, %v4087_v0 }
 0x1ad   :  { %v6845_v57 = vadd.f32 %v7785_v5, %v5569_v10  ;;  %v4933_v32 = vpop.eup %4932  ;;  %4946 = vpow2.f32 %v1667_v7  ;;  %v1920_v37 = vmin.f32 %v6822_v1, 0.0  ;;  %v1921_v25 = vmin.f32 %v6834_v54, 0.0 }
 0x1ae   :  { %v1408_v36 = vsel %vm1368_vm3, %v6536_v11, %v4085_v20  ;;  %v4935_v12 = vpop.eup %4934  ;;  %v4110_v47 = vadd.f32 -1.0, %v4933_v32  ;;  %v2057_v27 = vmin.f32 %v6830_v42, 0.0  ;;  %v2058_v29 = vmin.f32 %v6838_v49, 0.0  ;;  %v7786_v32 = vld [vmem:[#allocation18_spill] sm:$0xff] }
 0x1af   :  { %v4566_v0 = vpack.c.bf16 %v1410_v41, %v1408_v36  ;;  %v4937_v53 = vpop.eup %4936  ;;  %vm1505_vm11 = vcmp.gt.f32.partialorder %v6540_v9, 0.0  ;;  %v1681_v7 = vsel %vm1641_vm5, %v6679_v6, %v4108_v63  ;;  %v4122_v39 = vadd.f32 -1.0, %v4935_v12 }
 0x1b0   :  { %v1931_v23 = vmul.f32 1.442695, %v1921_v25  ;;  %v1922_v5 = vmin.f32 %v6845_v57, 0.0  ;;  %v6862_v11 = vsel %vm1778_vm6, %v6683_v34, %v4120_v60  ;;  %v1683_v20 = vsel %vm1643_vm7, %v6737_v31, %v4110_v47 }
 0x1b1   :  { %v2068_v41 = vmul.f32 1.442695, %v2058_v29  ;;  %4567 = vmatprep.subr.bf16.mxu0 %v4566_v0  ;;  %4575 = vmatprep.subr.bf16.mxu1 %v4566_v0  ;;  %v6869_v36 = vadd.f32 %v7786_v32, %v5569_v10  ;;  %v4939_v6 = vpop.eup %4938  ;;  %vm1507_vm12 = vcmp.gt.f32.partialorder %v6608_v33, 0.0  ;;  %v6872_v63 = vpack.c.bf16 %v1683_v20, %v1681_v7 }
 0x1b2   :  { %v6877_v34 = vsel %vm1780_vm8, %v6745_v17, %v4122_v39  ;;  %v1929_v60 = vmul.f32 1.442695, %v1920_v37  ;;  %4948 = vpow2.f32 %v1931_v23  ;;  %4569 = vmatpush1.bf16.msra.mxu0 %v6659_v44  ;;  %4577 = vmatpush1.bf16.msra.mxu1 %v6659_v44  ;;  %v4941_v31 = vpop.eup %4940  ;;  %v6881_v25 = vadd.f32 -1.0, %v4937_v53  ;;  %v6906_v39 = vld [vmem:[%s7621_s3] sm:$0xff] }
 0x1b3   :  { %v4608_v12 = vpack.c.bf16 %v6877_v34, %v6862_v11  ;;  %v2066_v47 = vmul.f32 1.442695, %v2057_v27  ;;  %4950 = vpow2.f32 %v2068_v41  ;;  %vm1911_vm13 = vcmp.gt.f32.partialorder %v6784_v43, 0.0  ;;  %v7787_v27 = vld [vmem:[#allocation26_spill] sm:$0xff] }
 0x1b4   :  { %v1933_v29 = vmul.f32 1.442695, %v1922_v5  ;;  %v2059_v17 = vmin.f32 %v6869_v36, 0.0  ;;  %v1541_v37 = vsel %vm1501_vm9, %v6445_v21, %v6694_v45  ;;  %v1543_v44 = vsel %vm1503_vm10, %v6507_v48, %v6704_v15  ;;  %v7788_v45 = vld [vmem:[#allocation27_spill] sm:$0xff] }
 0x1b5   :  { %4952 = vpow2.f32 %v1804_v62  ;;  %v4578_v0 = vpack.c.bf16 %v1543_v44, %v1541_v37  ;;  %v6897_v53 = vadd.f32 %v7787_v27, %v5574_v16  ;;  %v6901_v7 = vadd.f32 %v6292_v59, %v5574_v16  ;;  %4196 = vmatmul.mubr.msk.f32.vlgmr.msra.gmra.mrb[72].mxu0 %vm2261_vm2, %v6906_v39  ;;  %v4943_v21 = vpop.eup %4942  ;;  %v7789_v59 = vld [vmem:[#allocation21_spill] sm:$0xff] }
 0x1b6   :  { %vm1638_vm14 = vcmp.gt.f32.partialorder %v6615_v26, 0.0  ;;  %4954 = vpow2.f32 %v1929_v60  ;;  %v2070_v48 = vmul.f32 1.442695, %v2059_v17  ;;  %v6913_v15 = vadd.f32 %v7788_v45, %v5574_v16  ;;  %2755 = vmatprep.mubr.f32.mxu0 %v7713_v8  ;;  %v4945_v23 = vpop.eup %4944  ;;  %v7790_v17 = vld [vmem:[#allocation28_spill] sm:$0xff]  ;;  %v7791_v37 = vld [vmem:[#allocation13_spill] sm:$0xff] }
 0x1b7   :  { %v6917_v62 = vadd.f32 %v7789_v59, %v5574_v16  ;;  %vm1640_vm15 = vcmp.gt.f32.partialorder %v6647_v58, 0.0  ;;  %v6921_v5 = vadd.f32 -1.0, %v4939_v6  ;;  %vm2048_vm0 = vcmp.gt.f32.partialorder %v6801_v19, 0.0  ;;  %4579 = vmatprep.subr.bf16.mxu1 %v4578_v0  ;;  %v4947_v41 = vpop.eup %4946 }
 0x1b8   :  { %4956 = vpow2.f32 %v2066_v47  ;;  %v1923_v20 = vmin.f32 %v6897_v53, 0.0  ;;  %v6925_v32 = vadd.f32 -1.0, %v4941_v31  ;;  %vm1913_vm1 = vcmp.gt.f32.partialorder %v6834_v54, 0.0  ;;  %v6940_v31 = vld [vmem:[%s7621_s3 + $0x8] sm:$0xff] }
 0x1b9   :  { %4958 = vpow2.f32 %v1933_v29  ;;  %v2060_v60 = vmin.f32 %v6901_v7, 0.0  ;;  %v7792_v44 = vpack.c.bf16 %v7790_v17, %v7791_v37  ;;  %v4128_v6 = vadd.f32 -1.0, %v4943_v21  ;;  %4197 = vmatmul.mubr.msk.f32.gmra.mrb[74].mxu0 %vm2261_vm2, %v6940_v31 }
 0x1ba   :  { %v1935_v27 = vmul.f32 1.442695, %v1923_v20  ;;  %v1924_v45 = vmin.f32 %v6913_v15, 0.0  ;;  %v1545_v47 = vsel %vm1505_vm11, %v6540_v9, %v6805_v51  ;;  %v4140_v29 = vadd.f32 -1.0, %v4945_v23  ;;  %2761 = vmatprep.mubr.f32.mxu0 %v7713_v8  ;;  %v7793_v51 = vld [vmem:[#allocation50_spill] sm:$0xff]  ;;  %v7794_v23 = vld [vmem:[#allocation51_spill] sm:$0xff] }
 0x1bb   :  { %4581 = vmatpush1.bf16.msra.mxu1 %v7792_v44  ;;  %4960 = vpow2.f32 %v2070_v48  ;;  %v2072_v0 = vmul.f32 1.442695, %v2060_v60  ;;  %v2061_v21 = vmin.f32 %v6917_v62, 0.0  ;;  %v1547_v9 = vsel %vm1507_vm12, %v6608_v33, %v6807_v24 }
 0x1bc   :  { %4962 = vpow2.f32 %v1935_v27  ;;  %v1937_v59 = vmul.f32 1.442695, %v1924_v45  ;;  %v6952_v20 = vadd.f32 %v7793_v51, %v5591_v30  ;;  %v4949_v17 = vpop.eup %4948  ;;  %vm2050_vm3 = vcmp.gt.f32.partialorder %v6838_v49, 0.0  ;;  %v6968_v45 = vld [vmem:[%s7621_s3 + $0x10] sm:$0xff] }
 0x1bd   :  { %4964 = vpow2.f32 %v2072_v0  ;;  %v4582_v48 = vpack.c.bf16 %v1547_v9, %v1545_v47  ;;  %v6957_v60 = vadd.f32 %v7794_v23, %v5591_v30  ;;  %v4951_v37 = vpop.eup %4950  ;;  %v6959_v44 = vadd.f32 -1.0, %v4947_v41  ;;  %4198 = vmatmul.mubr.msk.f32.gmra.mrb[76].mxu0 %vm2261_vm2, %v6968_v45  ;;  %v7797_v23 = vld [vmem:[#allocation53_spill] sm:$0xff] }
 0x1be   :  { %v1951_v33 = vsel %vm1911_vm13, %v6784_v43, %v4128_v6  ;;  %v4130_v24 = vadd.f32 -1.0, %v4949_v17  ;;  %v1925_v27 = vmin.f32 %v6952_v20, 0.0  ;;  %v6975_v41 = vsel %vm2048_vm0, %v6801_v19, %v4140_v29  ;;  %2767 = vmatprep.mubr.f32.mxu0 %v7713_v8 }
 0x1bf   :  { %v4142_v47 = vadd.f32 -1.0, %v4951_v37  ;;  %v2074_v0 = vmul.f32 1.442695, %v2061_v21  ;;  %4583 = vmatprep.subr.bf16.mxu1 %v4582_v48  ;;  %v2062_v43 = vmin.f32 %v6957_v60, 0.0  ;;  %v4953_v6 = vpop.eup %4952  ;;  %4966 = vpow2.f32 %v1937_v59 }
 0x1c0   :  { %v1953_v9 = vsel %vm1913_vm1, %v6834_v54, %v4130_v24  ;;  %v1939_v51 = vmul.f32 1.442695, %v1925_v27  ;;  %v1678_v19 = vsel %vm1638_vm14, %v6615_v26, %v6813_v55  ;;  %4585 = vmatpush1.bf16.msra.mxu1 %v4584_v40  ;;  %v4955_v29 = vpop.eup %4954  ;;  %vm1642_vm4 = vcmp.gt.f32.partialorder %v6716_v38, 0.0  ;;  %v7795_v55 = vld [vmem:[#allocation52_spill] sm:$0xff] }
 0x1c1   :  { %vm1644_vm5 = vcmp.gt.f32.partialorder %v6770_v61, 0.0  ;;  %v6991_v21 = vpack.c.bf16 %v1953_v9, %v1951_v33  ;;  %v6996_v54 = vsel %vm2050_vm3, %v6838_v49, %v4142_v47  ;;  %v2076_v59 = vmul.f32 1.442695, %v2062_v43  ;;  %v7012_v49 = vld [vmem:[%s7621_s3 + $0x18] sm:$0xff]  ;;  %v7798_v33 = vld [vmem:[#allocation25_spill] sm:$0xff]  ;;  %v7799_v43 = vld [vmem:[#allocation54_spill] sm:$0xff] }
 0x1c2   :  { %v1680_v26 = vsel %vm1640_vm15, %v6647_v58, %v6826_v13  ;;  %v4957_v14 = vpop.eup %4956  ;;  %vm1775_vm6 = vcmp.gt.f32.partialorder %v6628_v46, 0.0  ;;  %4968 = vpow2.f32 %v1939_v51  ;;  %v7007_v17 = vadd.f32 %v7795_v55, %v5591_v30  ;;  %4199 = vmatmul.mubr.msk.f32.gmra.mrb[78].mxu0 %vm2261_vm2, %v7012_v49  ;;  %v7796_v13 = vld [vmem:[#allocation24_spill] sm:$0xff] }
 0x1c3   :  { %v4586_v40 = vpack.c.bf16 %v1680_v26, %v1678_v19  ;;  %v4959_v58 = vpop.eup %4958  ;;  %vm1777_vm7 = vcmp.gt.f32.partialorder %v6699_v18, 0.0  ;;  %4970 = vpow2.f32 %v2076_v59  ;;  %v7019_v48 = vadd.f32 %v7796_v13, %v5591_v30  ;;  %3023 = vmatprep.mubr.f32.mxu0 %v7713_v8 }
 0x1c4   :  { %v7023_v37 = vadd.f32 %v7797_v23, %v5559_v4  ;;  %v7027_v24 = vadd.f32 %v7798_v33, %v5559_v4  ;;  %v7030_v27 = vadd.f32 -1.0, %v4953_v6  ;;  %vm1915_vm8 = vcmp.gt.f32.partialorder %v6897_v53, 0.0 }
 0x1c5   :  { %4595 = vmatprep.subr.bf16.mxu0 %v4586_v40  ;;  %v1926_v47 = vmin.f32 %v7007_v17, 0.0  ;;  %4587 = vmatprep.subr.bf16.mxu1 %v4586_v40  ;;  %v7036_v9 = vadd.f32 %v7799_v43, %v5569_v10  ;;  %v4961_v51 = vpop.eup %4960  ;;  %v7038_v19 = vadd.f32 -1.0, %v4955_v29  ;;  %vm2052_vm9 = vcmp.gt.f32.partialorder %v6901_v7, 0.0 }
 0x1c6   :  { %v2063_v4 = vmin.f32 %v7019_v48, 0.0  ;;  %4597 = vmatpush1.bf16.msra.mxu0 %v6757_v22  ;;  %v2193_v6 = vmin.f32 %v7023_v37, 0.0  ;;  %4589 = vmatpush1.bf16.msra.mxu1 %v6757_v22  ;;  %v4963_v59 = vpop.eup %4962  ;;  %vm1779_vm10 = vcmp.gt.f32.partialorder %v6722_v50, 0.0  ;;  %v7046_v26 = vadd.f32 -1.0, %v4957_v14 }
 0x1c7   :  { %4972 = vpow2.f32 %v2074_v0  ;;  %v1941_v40 = vmul.f32 1.442695, %v1926_v47  ;;  %v2194_v29 = vmin.f32 %v7027_v24, 0.0  ;;  %v4965_v55 = vpop.eup %4964  ;;  %vm1781_vm11 = vcmp.gt.f32.partialorder %v6790_v28, 0.0 }
 0x1c8   :  { %v4132_v13 = vadd.f32 -1.0, %v4963_v59  ;;  %v2078_v23 = vmul.f32 1.442695, %v2063_v4  ;;  %v2201_v33 = vmul.f32 1.442695, %v2193_v6  ;;  %v2195_v43 = vmin.f32 %v7036_v9, 0.0 }
 0x1c9   :  { %v7051_v56 = vadd.f32 -1.0, %v4959_v58  ;;  %vm1917_vm12 = vcmp.gt.f32.partialorder %v6952_v20, 0.0  ;;  %vm2054_vm13 = vcmp.gt.f32.partialorder %v6957_v60, 0.0  ;;  %4974 = vpow2.f32 %v1941_v40  ;;  %v4967_v47 = vpop.eup %4966  ;;  %v7800_v40 = vld [vmem:[#allocation55_spill] sm:$0xff] }
 0x1ca   :  { %vm1912_vm14 = vcmp.gt.f32.partialorder %v6822_v1, 0.0  ;;  %vm1914_vm15 = vcmp.gt.f32.partialorder %v6845_v57, 0.0  ;;  %v7057_v22 = vadd.f32 -1.0, %v4961_v51  ;;  %4976 = vpow2.f32 %v2078_v23 }
 0x1cb   :  { %v2203_v0 = vmul.f32 1.442695, %v2194_v29  ;;  %v2205_v14 = vmul.f32 1.442695, %v2195_v43  ;;  %v4144_v4 = vadd.f32 -1.0, %v4965_v55  ;;  %4978 = vpow2.f32 %v2201_v33 }
 0x1cc   :  { %v1682_v58 = vsel %vm1642_vm4, %v6716_v38, %v6921_v5  ;;  %v1684_v6 = vsel %vm1644_vm5, %v6770_v61, %v6959_v44  ;;  %v1955_v51 = vsel %vm1915_vm8, %v6897_v53, %v4132_v13  ;;  %v7072_v29 = vadd.f32 %v7800_v40, %v5569_v10  ;;  %v4969_v38 = vpop.eup %4968  ;;  %v7801_v53 = vld [vmem:[#allocation56_spill] sm:$0xff]  ;;  %v7802_v5 = vld [vmem:[#allocation57_spill] sm:$0xff] }
 0x1cd   :  { %v4590_v59 = vpack.c.bf16 %v1684_v6, %v1682_v58  ;;  %v1815_v55 = vsel %vm1775_vm6, %v6628_v46, %v6815_v3  ;;  %vm1916_vm0 = vcmp.gt.f32.partialorder %v6913_v15, 0.0  ;;  %vm1918_vm1 = vcmp.gt.f32.partialorder %v7007_v17, 0.0  ;;  %v4971_v46 = vpop.eup %4970 }
 0x1ce   :  { %4980 = vpow2.f32 %v2205_v14  ;;  %v1817_v61 = vsel %vm1777_vm7, %v6699_v18, %v6881_v25  ;;  %v7086_v10 = vadd.f32 %v7801_v53, %v5574_v16  ;;  %v7090_v44 = vadd.f32 %v7802_v5, %v5574_v16 }
 0x1cf   :  { %v4134_v3 = vadd.f32 -1.0, %v4969_v38  ;;  %4982 = vpow2.f32 %v2203_v0  ;;  %4591 = vmatprep.subr.bf16.mxu1 %v4590_v59  ;;  %4599 = vmatprep.subr.bf16.mxu0 %v4590_v59  ;;  %v2196_v13 = vmin.f32 %v7072_v29, 0.0  ;;  %v4602_v23 = vpack.c.bf16 %v1817_v61, %v1815_v55 }
 0x1d0   :  { %vm2049_vm3 = vcmp.gt.f32.partialorder %v6830_v42, 0.0  ;;  %vm2051_vm4 = vcmp.gt.f32.partialorder %v6869_v36, 0.0  ;;  %v7098_v18 = vsel %vm2052_vm9, %v6901_v7, %v4144_v4  ;;  %v4133_v25 = vadd.f32 -1.0, %v4967_v47  ;;  %4593 = vmatpush1.bf16.msra.mxu1 %v6872_v63  ;;  %4601 = vmatpush1.bf16.msra.mxu0 %v6872_v63 }
 0x1d1   :  { %v4146_v16 = vadd.f32 -1.0, %v4971_v46  ;;  %v2197_v33 = vmin.f32 %v7086_v10, 0.0  ;;  %vm2053_vm5 = vcmp.gt.f32.partialorder %v6917_v62, 0.0  ;;  %v1957_v43 = vsel %vm1917_vm12, %v6952_v20, %v4134_v3  ;;  %4603 = vmatprep.subr.bf16.mxu0 %v4602_v23  ;;  %v4973_v47 = vpop.eup %4972 }
 0x1d2   :  { %v2207_v0 = vmul.f32 1.442695, %v2196_v13  ;;  %v2198_v14 = vmin.f32 %v7090_v44, 0.0  ;;  %v1819_v7 = vsel %vm1779_vm10, %v6722_v50, %v6925_v32  ;;  %v7112_v4 = vpack.c.bf16 %v1957_v43, %v1955_v51 }
 0x1d3   :  { %v7117_v63 = vsel %vm2054_vm13, %v6957_v60, %v4146_v16  ;;  %v2209_v58 = vmul.f32 1.442695, %v2197_v33  ;;  %v1821_v20 = vsel %vm1781_vm11, %v6790_v28, %v7030_v27  ;;  %4208 = vmatmul.mubr.msk.f32.vlgmr.msra.gmra.mrb[72].mxu1 %vm2261_vm2, %v6906_v39  ;;  %v4975_v51 = vpop.eup %4974  ;;  %vm2055_vm6 = vcmp.gt.f32.partialorder %v7019_v48, 0.0  ;;  %v7803_v28 = vld [vmem:[#allocation58_spill] sm:$0xff] }
 0x1d4   :  { %v4632_v6 = vpack.c.bf16 %v7117_v63, %v7098_v18  ;;  %4984 = vpow2.f32 %v2207_v0  ;;  %v2211_v50 = vmul.f32 1.442695, %v2198_v14  ;;  %v4606_v32 = vpack.c.bf16 %v1821_v20, %v1819_v7  ;;  %4605 = vmatpush1.bf16.msra.mxu0 %v4604_v35  ;;  %2892 = vmatprep.mubr.f32.mxu1 %v7713_v8  ;;  %v4977_v40 = vpop.eup %4976 }
 0x1d5   :  { %v7134_v60 = vadd.f32 %v7803_v28, %v5591_v30  ;;  %v1952_v27 = vsel %vm1912_vm14, %v6822_v1, %v7038_v19  ;;  %v1954_v59 = vsel %vm1914_vm15, %v6845_v57, %v7051_v56  ;;  %v4135_v55 = vadd.f32 -1.0, %v4975_v51  ;;  %v4979_v38 = vpop.eup %4978 }
 0x1d6   :  { %4986 = vpow2.f32 %v2209_v58  ;;  %4607 = vmatprep.subr.bf16.mxu0 %v4606_v32  ;;  %v4610_v52 = vpack.c.bf16 %v1954_v59, %v1952_v27  ;;  %v7146_v35 = vadd.f32 %v7804_v2, %v5591_v30  ;;  %v4145_v61 = vadd.f32 -1.0, %v4973_v47  ;;  %v7240_v32 = vpop.permute.xlu1 %2248 }
 0x1d7   :  { %v4147_v53 = vadd.f32 -1.0, %v4977_v40  ;;  %4988 = vpow2.f32 %v2211_v50  ;;  %v2199_v1 = vmin.f32 %v7134_v60, 0.0  ;;  %v4152_v19 = vadd.f32 -1.0, %v4979_v38  ;;  %4209 = vmatmul.mubr.msk.f32.gmra.mrb[74].mxu1 %vm2261_vm2, %v6940_v31 }
 0x1d8   :  { %4619 = vmatprep.subr.bf16.mxu1 %v4610_v52  ;;  %v2200_v57 = vmin.f32 %v7146_v35, 0.0  ;;  %v1956_v56 = vsel %vm1916_vm0, %v6913_v15, %v4133_v25  ;;  %v1958_v30 = vsel %vm1918_vm1, %v7007_v17, %v4135_v55  ;;  %v4981_v5 = vpop.eup %4980  ;;  %vm2185_vm7 = vcmp.gt.f32.partialorder %v7023_v37, 0.0  ;;  %4609 = vmatpush1.bf16.msra.mxu0 %v4608_v12 }
 0x1d9   :  { %vm2187_vm8 = vcmp.gt.f32.partialorder %v7036_v9, 0.0  ;;  %v2213_v46 = vmul.f32 1.442695, %v2199_v1  ;;  %4621 = vmatpush1.bf16.msra.mxu1 %v6991_v21  ;;  %v4614_v3 = vpack.c.bf16 %v1958_v30, %v1956_v56  ;;  %v4983_v13 = vpop.eup %4982  ;;  %v4154_v23 = vadd.f32 -1.0, %v4981_v5  ;;  %4611 = vmatprep.subr.bf16.mxu0 %v4610_v52 }
 0x1da   :  { %v2215_v15 = vmul.f32 1.442695, %v2200_v57  ;;  %2898 = vmatprep.mubr.f32.mxu1 %v7713_v8  ;;  %v2089_v17 = vsel %vm2049_vm3, %v6830_v42, %v7046_v26  ;;  %v2091_v11 = vsel %vm2051_vm4, %v6869_v36, %v7057_v22  ;;  %v2093_v12 = vsel %vm2053_vm5, %v6917_v62, %v4145_v61  ;;  %v7248_v57 = vpop.permute.xlu1 %2258 }
 0x1db   :  { %4990 = vpow2.f32 %v2213_v46  ;;  %4623 = vmatprep.subr.bf16.mxu1 %v4614_v3  ;;  %v4626_v34 = vpack.c.bf16 %v2091_v11, %v2089_v17  ;;  %v2095_v25 = vsel %vm2055_vm6, %v7019_v48, %v4147_v53  ;;  %v2225_v42 = vsel %vm2185_vm7, %v7023_v37, %v4152_v19  ;;  %4210 = vmatmul.mubr.msk.f32.gmra.mrb[76].mxu1 %vm2261_vm2, %v6968_v45 }
 0x1dc   :  { %v2227_v26 = vsel %vm2187_vm8, %v7036_v9, %v4154_v23  ;;  %4992 = vpow2.f32 %v2215_v15  ;;  %v4630_v36 = vpack.c.bf16 %v2095_v25, %v2093_v12  ;;  %v4153_v22 = vadd.f32 -1.0, %v4983_v13  ;;  %4613 = vmatpush1.bf16.msra.mxu0 %v6991_v21  ;;  %2904 = vmatprep.mubr.f32.mxu1 %v7713_v8 }
 0x1dd   :  { %v4636_v16 = vpack.c.bf16 %v2227_v26, %v2225_v42  ;;  %4615 = vmatprep.subr.bf16.mxu0 %v4614_v3  ;;  %4625 = vmatpush1.bf16.msra.mxu1 %v7112_v4  ;;  %vm2186_vm9 = vcmp.gt.f32.partialorder %v7027_v24, 0.0  ;;  %vm2188_vm10 = vcmp.gt.f32.partialorder %v7072_v29, 0.0  ;;  %v7805_v43 = vpack.c.bf16 %v6996_v54, %v6975_v41 }
 0x1de   :  { %v4985_v62 = vpop.eup %4984  ;;  %4627 = vmatprep.subr.bf16.mxu1 %v4626_v34  ;;  %v2226_v21 = vsel %vm2186_vm9, %v7027_v24, %v4153_v22  ;;  %vm2189_vm11 = vcmp.gt.f32.partialorder %v7086_v10, 0.0  ;;  %vm2191_vm12 = vcmp.gt.f32.partialorder %v7134_v60, 0.0  ;;  %vm2190_vm13 = vcmp.gt.f32.partialorder %v7090_v44, 0.0 }
 0x1df   :  { %v4155_v48 = vadd.f32 -1.0, %v4985_v62  ;;  %4211 = vmatmul.mubr.msk.f32.gmra.mrb[78].mxu1 %vm2261_vm2, %v7012_v49  ;;  %vm2192_vm14 = vcmp.gt.f32.partialorder %v7146_v35, 0.0 }
 0x1e0   :  { %v4987_v37 = vpop.eup %4986  ;;  %4617 = vmatpush1.bf16.msra.mxu0 %v7112_v4  ;;  %3160 = vmatprep.mubr.f32.mxu1 %v7713_v8 }
 0x1e1   :  { %v4989_v9 = vpop.eup %4988  ;;  %v2228_v33 = vsel %vm2188_vm10, %v7072_v29, %v4155_v48  ;;  %4629 = vmatpush1.bf16.msra.mxu1 %v7805_v43  ;;  %v4156_v14 = vadd.f32 -1.0, %v4987_v37 }
 0x1e2   :  { %v4634_v0 = vpack.c.bf16 %v2228_v33, %v2226_v21  ;;  %4631 = vmatprep.subr.bf16.mxu1 %v4630_v36  ;;  %v4157_v47 = vadd.f32 -1.0, %v4989_v9 }
 0x1e3   :  { %4220 = vmatmul.mubr.msk.f32.vlgmr.msra.gmra.mrb[80].mxu0 %vm2261_vm2, %v6906_v39  ;;  %v2229_v54 = vsel %vm2189_vm11, %v7086_v10, %v4156_v14 }
 0x1e4   :  { %3029 = vmatprep.mubr.f32.mxu0 %v7713_v8  ;;  %v2230_v18 = vsel %vm2190_vm13, %v7090_v44, %v4157_v47 }
 0x1e5   :  { %v4991_v7 = vpop.eup %4990  ;;  %4633 = vmatpush1.bf16.msra.mxu1 %v4632_v6 }
 0x1e6   :  { %v4993_v4 = vpop.eup %4992  ;;  %v4158_v24 = vadd.f32 -1.0, %v4991_v7  ;;  %4635 = vmatprep.subr.bf16.mxu1 %v4634_v0 }
 0x1e7   :  { %v4159_v41 = vadd.f32 -1.0, %v4993_v4  ;;  %4221 = vmatmul.mubr.msk.f32.gmra.mrb[82].mxu0 %vm2261_vm2, %v6940_v31 }
 0x1e8   :  { %v2231_v29 = vsel %vm2191_vm12, %v7134_v60, %v4158_v24  ;;  %3035 = vmatprep.mubr.f32.mxu0 %v7713_v8 }
 0x1e9   :  { %v4640_v58 = vpack.c.bf16 %v2231_v29, %v2229_v54  ;;  %v2232_v63 = vsel %vm2192_vm14, %v7146_v35, %v4159_v41  ;;  %4637 = vmatpush1.bf16.msra.mxu1 %v4636_v16 }
 0x1ea   :  { %v4638_v20 = vpack.c.bf16 %v2232_v63, %v2230_v18 }
 0x1eb   :  { %4222 = vmatmul.mubr.msk.f32.gmra.mrb[84].mxu0 %vm2261_vm2, %v6968_v45 }
 0x1ec   :  { %4639 = vmatprep.subr.bf16.mxu1 %v4638_v20  ;;  %3041 = vmatprep.mubr.f32.mxu0 %v7713_v8 }
 0x1ed   :  { %4641 = vmatpush1.bf16.msra.mxu1 %v4640_v58 }
 0x1ef   :  { %4223 = vmatmul.mubr.msk.f32.gmra.mrb[86].mxu0 %vm2261_vm2, %v7012_v49 }
 0x1f0   :  { %4232 = vmatmul.mubr.msk.f32.vlgmr.msra.gmra.mrb[80].mxu1 %vm2261_vm2, %v6906_v39  ;;  %3337 = vmatprep.mubr.f32.mxu0 %v7713_v8  ;;  %v7236_v39 = vpop.permute.xlu0 %2243 }
 0x1f1   :  { %3166 = vmatprep.mubr.f32.mxu1 %v7713_v8 }
 0x1f4   :  { %4233 = vmatmul.mubr.msk.f32.gmra.mrb[82].mxu1 %vm2261_vm2, %v6940_v31  ;;  %v7244_v55 = vpop.permute.xlu0 %2253 }
 0x1f5   :  { %3172 = vmatprep.mubr.f32.mxu1 %v7713_v8 }
 0x1f8   :  { %4234 = vmatmul.mubr.msk.f32.gmra.mrb[84].mxu1 %vm2261_vm2, %v6968_v45 }
 0x1f9   :  { %3178 = vmatprep.mubr.f32.mxu1 %v7713_v8 }
 0x1fc   :  { %4235 = vmatmul.mubr.msk.f32.gmra.mrb[86].mxu1 %vm2261_vm2, %v7012_v49 }
 0x1fd   :  { %3474 = vmatprep.mubr.f32.mxu1 %v7713_v8 }
 0x22a   :  { %v2340_v10 = vpop.f32.mrb[56].mxu1 }
 0x22b   :  { %v2341_v44 = vadd.f32 %v2340_v10, %v7236_v39  ;;  %v2342_v6 = vpop.f32.mrb[57].mxu1 }
 0x22c   :  { %v2343_v31 = vadd.f32 %v2342_v6, %v7236_v39 }
 0x22d   :  { %v2371_v50 = vmin.f32 %v2341_v44, 0.0  ;;  %vm2363_vm15 = vcmp.gt.f32.partialorder %v2341_v44, 0.0 }
 0x22e   :  { %v2372_v51 = vmin.f32 %v2343_v31, 0.0  ;;  %v2346_v45 = vpop.f32.mrb[58].mxu1  ;;  %vm2364_vm1 = vcmp.gt.f32.partialorder %v2343_v31, 0.0 }
 0x22f   :  { %v2379_v28 = vmul.f32 1.442695, %v2371_v50  ;;  %v2347_v60 = vadd.f32 %v2346_v45, %v7240_v32  ;;  %v2348_v27 = vpop.f32.mrb[59].mxu1 }
 0x230   :  { %v2381_v49 = vmul.f32 1.442695, %v2372_v51  ;;  %v2349_v59 = vadd.f32 %v2348_v27, %v7240_v32 }
 0x231   :  { %4994 = vpow2.f32 %v2379_v28  ;;  %v2373_v40 = vmin.f32 %v2347_v60, 0.0  ;;  %vm2365_vm0 = vcmp.gt.f32.partialorder %v2347_v60, 0.0 }
 0x232   :  { %4996 = vpow2.f32 %v2381_v49  ;;  %v2374_v52 = vmin.f32 %v2349_v59, 0.0  ;;  %v2352_v2 = vpop.f32.mrb[60].mxu1  ;;  %vm2366_vm3 = vcmp.gt.f32.partialorder %v2349_v59, 0.0 }
 0x233   :  { %v2383_v35 = vmul.f32 1.442695, %v2373_v40  ;;  %v2353_v38 = vadd.f32 %v2352_v2, %v7244_v55  ;;  %v2354_v61 = vpop.f32.mrb[61].mxu1 }
 0x234   :  { %v2385_v53 = vmul.f32 1.442695, %v2374_v52  ;;  %v2355_v1 = vadd.f32 %v2354_v61, %v7244_v55 }
 0x235   :  { %4998 = vpow2.f32 %v2383_v35  ;;  %v2375_v19 = vmin.f32 %v2353_v38, 0.0  ;;  %vm2367_vm4 = vcmp.gt.f32.partialorder %v2353_v38, 0.0 }
 0x236   :  { %5000 = vpow2.f32 %v2385_v53  ;;  %v2376_v56 = vmin.f32 %v2355_v1, 0.0  ;;  %v2358_v30 = vpop.f32.mrb[62].mxu1  ;;  %vm2368_vm5 = vcmp.gt.f32.partialorder %v2355_v1, 0.0 }
 0x237   :  { %v2387_v5 = vmul.f32 1.442695, %v2375_v19  ;;  %v2359_v46 = vadd.f32 %v2358_v30, %v7248_v57  ;;  %v2360_v3 = vpop.f32.mrb[63].mxu1 }
 0x238   :  { %v2389_v13 = vmul.f32 1.442695, %v2376_v56  ;;  %v2361_v23 = vadd.f32 %v2360_v3, %v7248_v57 }
 0x239   :  { %5002 = vpow2.f32 %v2387_v5  ;;  %v2377_v15 = vmin.f32 %v2359_v46, 0.0  ;;  %vm2369_vm6 = vcmp.gt.f32.partialorder %v2359_v46, 0.0 }
 0x23a   :  { %5004 = vpow2.f32 %v2389_v13  ;;  %v2378_v17 = vmin.f32 %v2361_v23, 0.0  ;;  %vm2370_vm7 = vcmp.gt.f32.partialorder %v2361_v23, 0.0 }
 0x23b   :  { %v4995_v11 = vpop.eup %4994  ;;  %v2391_v34 = vmul.f32 1.442695, %v2377_v15 }
 0x23c   :  { %v4997_v12 = vpop.eup %4996  ;;  %v2393_v25 = vmul.f32 1.442695, %v2378_v17  ;;  %v4164_v42 = vadd.f32 -1.0, %v4995_v11 }
 0x23d   :  { %5006 = vpow2.f32 %v2391_v34  ;;  %v4165_v36 = vadd.f32 -1.0, %v4997_v12 }
 0x23e   :  { %5008 = vpow2.f32 %v2393_v25  ;;  %v2403_v48 = vsel %vm2363_vm15, %v2341_v44, %v4164_v42 }
 0x23f   :  { %v4999_v26 = vpop.eup %4998  ;;  %v2404_v33 = vsel %vm2364_vm1, %v2343_v31, %v4165_v36 }
 0x240   :  { %v5001_v22 = vpop.eup %5000  ;;  %v4166_v16 = vadd.f32 -1.0, %v4999_v26 }
 0x241   :  { %v4167_v62 = vadd.f32 -1.0, %v5001_v22 }
 0x242   :  { %v2405_v37 = vsel %vm2365_vm0, %v2347_v60, %v4166_v16 }
 0x243   :  { %v5003_v9 = vpop.eup %5002  ;;  %v4644_v21 = vpack.c.bf16 %v2405_v37, %v2403_v48  ;;  %v2406_v43 = vsel %vm2366_vm3, %v2349_v59, %v4167_v62 }
 0x244   :  { %v5005_v0 = vpop.eup %5004  ;;  %v4642_v14 = vpack.c.bf16 %v2406_v43, %v2404_v33  ;;  %v4168_v7 = vadd.f32 -1.0, %v5003_v9 }
 0x245   :  { %v4169_v4 = vadd.f32 -1.0, %v5005_v0 }
 0x246   :  { %4643 = vmatprep.subr.bf16.mxu0 %v4642_v14  ;;  %v2407_v63 = vsel %vm2367_vm4, %v2353_v38, %v4168_v7 }
 0x247   :  { %v5007_v47 = vpop.eup %5006  ;;  %4645 = vmatpush1.bf16.msra.mxu0 %v4644_v21  ;;  %v2477_v54 = vpop.f32.mrb[64].mxu0  ;;  %v2408_v31 = vsel %vm2368_vm5, %v2355_v1, %v4169_v4 }
 0x248   :  { %v5009_v24 = vpop.eup %5008  ;;  %v4170_v41 = vadd.f32 -1.0, %v5007_v47  ;;  %v2478_v58 = vadd.f32 %v2477_v54, %v7236_v39  ;;  %v2479_v18 = vpop.f32.mrb[65].mxu0 }
 0x249   :  { %v4171_v29 = vadd.f32 -1.0, %v5009_v24  ;;  %v2480_v10 = vadd.f32 %v2479_v18, %v7236_v39 }
 0x24a   :  { %v2409_v20 = vsel %vm2369_vm6, %v2359_v46, %v4170_v41  ;;  %v2508_v6 = vmin.f32 %v2478_v58, 0.0  ;;  %vm2500_vm8 = vcmp.gt.f32.partialorder %v2478_v58, 0.0 }
 0x24b   :  { %v4648_v44 = vpack.c.bf16 %v2409_v20, %v2407_v63  ;;  %v2410_v50 = vsel %vm2370_vm7, %v2361_v23, %v4171_v29  ;;  %v2509_v51 = vmin.f32 %v2480_v10, 0.0  ;;  %v2483_v45 = vpop.f32.mrb[66].mxu0  ;;  %vm2501_vm10 = vcmp.gt.f32.partialorder %v2480_v10, 0.0 }
 0x24c   :  { %v4646_v28 = vpack.c.bf16 %v2410_v50, %v2408_v31  ;;  %v2516_v60 = vmul.f32 1.442695, %v2508_v6  ;;  %v2484_v27 = vadd.f32 %v2483_v45, %v7240_v32  ;;  %v2485_v49 = vpop.f32.mrb[67].mxu0 }
 0x24d   :  { %v2518_v59 = vmul.f32 1.442695, %v2509_v51  ;;  %v2486_v40 = vadd.f32 %v2485_v49, %v7240_v32 }
 0x24e   :  { %4647 = vmatprep.subr.bf16.mxu0 %v4646_v28  ;;  %5010 = vpow2.f32 %v2516_v60  ;;  %v2510_v52 = vmin.f32 %v2484_v27, 0.0  ;;  %vm2502_vm9 = vcmp.gt.f32.partialorder %v2484_v27, 0.0 }
 0x24f   :  { %4649 = vmatpush1.bf16.msra.mxu0 %v4648_v44  ;;  %5012 = vpow2.f32 %v2518_v59  ;;  %v2511_v2 = vmin.f32 %v2486_v40, 0.0  ;;  %v2489_v35 = vpop.f32.mrb[68].mxu0  ;;  %vm2503_vm11 = vcmp.gt.f32.partialorder %v2486_v40, 0.0 }
 0x250   :  { %v2520_v38 = vmul.f32 1.442695, %v2510_v52  ;;  %v2490_v61 = vadd.f32 %v2489_v35, %v7244_v55  ;;  %v2491_v53 = vpop.f32.mrb[69].mxu0 }
 0x251   :  { %v2522_v1 = vmul.f32 1.442695, %v2511_v2  ;;  %v2492_v19 = vadd.f32 %v2491_v53, %v7244_v55 }
 0x252   :  { %5014 = vpow2.f32 %v2520_v38  ;;  %v2512_v56 = vmin.f32 %v2490_v61, 0.0  ;;  %vm2504_vm12 = vcmp.gt.f32.partialorder %v2490_v61, 0.0 }
 0x253   :  { %5016 = vpow2.f32 %v2522_v1  ;;  %v2513_v30 = vmin.f32 %v2492_v19, 0.0  ;;  %v2495_v5 = vpop.f32.mrb[70].mxu0  ;;  %vm2505_vm13 = vcmp.gt.f32.partialorder %v2492_v19, 0.0 }
 0x254   :  { %v2524_v46 = vmul.f32 1.442695, %v2512_v56  ;;  %v2496_v3 = vadd.f32 %v2495_v5, %v7248_v57  ;;  %v2497_v13 = vpop.f32.mrb[71].mxu0 }
 0x255   :  { %v2526_v23 = vmul.f32 1.442695, %v2513_v30  ;;  %v2498_v15 = vadd.f32 %v2497_v13, %v7248_v57 }
 0x256   :  { %5018 = vpow2.f32 %v2524_v46  ;;  %v2514_v17 = vmin.f32 %v2496_v3, 0.0  ;;  %vm2506_vm14 = vcmp.gt.f32.partialorder %v2496_v3, 0.0 }
 0x257   :  { %5020 = vpow2.f32 %v2526_v23  ;;  %v2515_v11 = vmin.f32 %v2498_v15, 0.0  ;;  %vm2507_vm15 = vcmp.gt.f32.partialorder %v2498_v15, 0.0 }
 0x258   :  { %v5011_v34 = vpop.eup %5010  ;;  %v2528_v12 = vmul.f32 1.442695, %v2514_v17 }
 0x259   :  { %v5013_v25 = vpop.eup %5012  ;;  %v2530_v42 = vmul.f32 1.442695, %v2515_v11  ;;  %v4176_v26 = vadd.f32 -1.0, %v5011_v34 }
 0x25a   :  { %5022 = vpow2.f32 %v2528_v12  ;;  %v4177_v22 = vadd.f32 -1.0, %v5013_v25 }
 0x25b   :  { %5024 = vpow2.f32 %v2530_v42  ;;  %v2540_v37 = vsel %vm2500_vm8, %v2478_v58, %v4176_v26 }
 0x25c   :  { %v5015_v36 = vpop.eup %5014  ;;  %v2541_v43 = vsel %vm2501_vm10, %v2480_v10, %v4177_v22 }
 0x25d   :  { %v5017_v16 = vpop.eup %5016  ;;  %v4178_v62 = vadd.f32 -1.0, %v5015_v36 }
 0x25e   :  { %v4179_v48 = vadd.f32 -1.0, %v5017_v16 }
 0x25f   :  { %v2542_v9 = vsel %vm2502_vm9, %v2484_v27, %v4178_v62 }
 0x260   :  { %v5019_v21 = vpop.eup %5018  ;;  %v4652_v33 = vpack.c.bf16 %v2542_v9, %v2540_v37  ;;  %v2543_v0 = vsel %vm2503_vm11, %v2486_v40, %v4179_v48 }
 0x261   :  { %v5021_v14 = vpop.eup %5020  ;;  %v4650_v7 = vpack.c.bf16 %v2543_v0, %v2541_v43  ;;  %v4180_v47 = vadd.f32 -1.0, %v5019_v21 }
 0x262   :  { %v4181_v24 = vadd.f32 -1.0, %v5021_v14 }
 0x263   :  { %4651 = vmatprep.subr.bf16.mxu0 %v4650_v7  ;;  %v2544_v18 = vsel %vm2504_vm12, %v2490_v61, %v4180_v47 }
 0x264   :  { %v5023_v4 = vpop.eup %5022  ;;  %4653 = vmatpush1.bf16.msra.mxu0 %v4652_v33  ;;  %v2545_v31 = vsel %vm2505_vm13, %v2492_v19, %v4181_v24 }
 0x265   :  { %v5025_v41 = vpop.eup %5024  ;;  %v4182_v54 = vadd.f32 -1.0, %v5023_v4 }
 0x266   :  { %v4183_v29 = vadd.f32 -1.0, %v5025_v41 }
 0x267   :  { %v2546_v63 = vsel %vm2506_vm14, %v2496_v3, %v4182_v54 }
 0x268   :  { %v2614_v58 = vpop.f32.mrb[64].mxu1  ;;  %v4656_v44 = vpack.c.bf16 %v2546_v63, %v2544_v18  ;;  %v2547_v50 = vsel %vm2507_vm15, %v2498_v15, %v4183_v29 }
 0x269   :  { %v2615_v20 = vadd.f32 %v2614_v58, %v7236_v39  ;;  %v2616_v10 = vpop.f32.mrb[65].mxu1  ;;  %v4654_v45 = vpack.c.bf16 %v2547_v50, %v2545_v31 }
 0x26a   :  { %v2617_v6 = vadd.f32 %v2616_v10, %v7236_v39 }
 0x26b   :  { %v2645_v51 = vmin.f32 %v2615_v20, 0.0  ;;  %4655 = vmatprep.subr.bf16.mxu0 %v4654_v45  ;;  %vm2637_vm0 = vcmp.gt.f32.partialorder %v2615_v20, 0.0 }
 0x26c   :  { %v2646_v28 = vmin.f32 %v2617_v6, 0.0  ;;  %v2620_v60 = vpop.f32.mrb[66].mxu1  ;;  %4657 = vmatpush1.bf16.msra.mxu0 %v4656_v44  ;;  %vm2638_vm3 = vcmp.gt.f32.partialorder %v2617_v6, 0.0 }
 0x26d   :  { %v2653_v27 = vmul.f32 1.442695, %v2645_v51  ;;  %v2621_v49 = vadd.f32 %v2620_v60, %v7240_v32  ;;  %v2622_v59 = vpop.f32.mrb[67].mxu1 }
 0x26e   :  { %v2655_v40 = vmul.f32 1.442695, %v2646_v28  ;;  %v2623_v52 = vadd.f32 %v2622_v59, %v7240_v32 }
 0x26f   :  { %5026 = vpow2.f32 %v2653_v27  ;;  %v2647_v2 = vmin.f32 %v2621_v49, 0.0  ;;  %vm2639_vm1 = vcmp.gt.f32.partialorder %v2621_v49, 0.0 }
 0x270   :  { %5028 = vpow2.f32 %v2655_v40  ;;  %v2648_v35 = vmin.f32 %v2623_v52, 0.0  ;;  %v2626_v38 = vpop.f32.mrb[68].mxu1  ;;  %vm2640_vm4 = vcmp.gt.f32.partialorder %v2623_v52, 0.0 }
 0x271   :  { %v2657_v61 = vmul.f32 1.442695, %v2647_v2  ;;  %v2627_v53 = vadd.f32 %v2626_v38, %v7244_v55  ;;  %v2628_v1 = vpop.f32.mrb[69].mxu1 }
 0x272   :  { %v2659_v19 = vmul.f32 1.442695, %v2648_v35  ;;  %v7266_v56 = vadd.f32 %v2628_v1, %v7244_v55 }
 0x273   :  { %5030 = vpow2.f32 %v2657_v61  ;;  %v2649_v30 = vmin.f32 %v2627_v53, 0.0  ;;  %vm2641_vm5 = vcmp.gt.f32.partialorder %v2627_v53, 0.0 }
 0x274   :  { %5032 = vpow2.f32 %v2659_v19  ;;  %v2650_v5 = vmin.f32 %v7266_v56, 0.0  ;;  %v2632_v13 = vpop.f32.mrb[70].mxu1  ;;  %vm2642_vm6 = vcmp.gt.f32.partialorder %v7266_v56, 0.0 }
 0x275   :  { %v2661_v46 = vmul.f32 1.442695, %v2649_v30  ;;  %v2633_v23 = vadd.f32 %v2632_v13, %v7248_v57  ;;  %v2634_v15 = vpop.f32.mrb[71].mxu1 }
 0x276   :  { %v2663_v3 = vmul.f32 1.442695, %v2650_v5  ;;  %v2635_v17 = vadd.f32 %v2634_v15, %v7248_v57  ;;  %v7298_v5 = vld [vmem:[%s7623_s5] sm:$0xff] }
 0x277   :  { %5034 = vpow2.f32 %v2661_v46  ;;  %v2651_v34 = vmin.f32 %v2633_v23, 0.0  ;;  %vm2643_vm7 = vcmp.gt.f32.partialorder %v2633_v23, 0.0 }
 0x278   :  { %5036 = vpow2.f32 %v2663_v3  ;;  %v2652_v25 = vmin.f32 %v2635_v17, 0.0  ;;  %vm2644_vm8 = vcmp.gt.f32.partialorder %v2635_v17, 0.0 }
 0x279   :  { %v5027_v11 = vpop.eup %5026  ;;  %v2665_v42 = vmul.f32 1.442695, %v2651_v34 }
 0x27a   :  { %v5029_v12 = vpop.eup %5028  ;;  %v4188_v26 = vadd.f32 -1.0, %v5027_v11  ;;  %v2667_v36 = vmul.f32 1.442695, %v2652_v25 }
 0x27b   :  { %v4189_v16 = vadd.f32 -1.0, %v5029_v12  ;;  %5038 = vpow2.f32 %v2665_v42  ;;  %v7314_v12 = vld [vmem:[%s7623_s5 + $0x8] sm:$0xff] }
 0x27c   :  { %5040 = vpow2.f32 %v2667_v36  ;;  %v2677_v9 = vsel %vm2637_vm0, %v2615_v20, %v4188_v26 }
 0x27d   :  { %v5031_v22 = vpop.eup %5030  ;;  %v2678_v43 = vsel %vm2638_vm3, %v2617_v6, %v4189_v16 }
 0x27e   :  { %v5033_v62 = vpop.eup %5032  ;;  %v4190_v48 = vadd.f32 -1.0, %v5031_v22 }
 0x27f   :  { %v4191_v37 = vadd.f32 -1.0, %v5033_v62  ;;  %v7324_v62 = vld [vmem:[%s7623_s5 + $0x10] sm:$0xff] }
 0x280   :  { %v2679_v21 = vsel %vm2639_vm1, %v2621_v49, %v4190_v48 }
 0x281   :  { %v4660_v33 = vpack.c.bf16 %v2679_v21, %v2677_v9  ;;  %v2680_v0 = vsel %vm2640_vm4, %v2623_v52, %v4191_v37  ;;  %v5035_v14 = vpop.eup %5034 }
 0x282   :  { %v4658_v7 = vpack.c.bf16 %v2680_v0, %v2678_v43  ;;  %v5037_v47 = vpop.eup %5036  ;;  %v4192_v4 = vadd.f32 -1.0, %v5035_v14  ;;  %v7332_v43 = vld [vmem:[%s7623_s5 + $0x18] sm:$0xff] }
 0x283   :  { %v4193_v41 = vadd.f32 -1.0, %v5037_v47 }
 0x284   :  { %4659 = vmatprep.subr.bf16.mxu0 %v4658_v7  ;;  %4667 = vmatprep.subr.bf16.mxu1 %v4658_v7  ;;  %v2681_v44 = vsel %vm2641_vm5, %v2627_v53, %v4192_v4 }
 0x285   :  { %4661 = vmatpush1.bf16.msra.mxu0 %v4660_v33  ;;  %4669 = vmatpush1.bf16.msra.mxu1 %v4660_v33  ;;  %v5039_v58 = vpop.eup %5038  ;;  %v2682_v27 = vsel %vm2642_vm6, %v7266_v56, %v4193_v41 }
 0x286   :  { %v5041_v63 = vpop.eup %5040  ;;  %v4194_v20 = vadd.f32 -1.0, %v5039_v58 }
 0x287   :  { %v4195_v6 = vadd.f32 -1.0, %v5041_v63 }
 0x288   :  { %v2751_v24 = vpop.f32.mrb[72].mxu0  ;;  %v2683_v51 = vsel %vm2643_vm7, %v2633_v23, %v4194_v20 }
 0x289   :  { %v7272_v54 = vadd.f32 %v2751_v24, %v7236_v39  ;;  %v2753_v29 = vpop.f32.mrb[73].mxu0  ;;  %v4664_v49 = vpack.c.bf16 %v2683_v51, %v2681_v44  ;;  %v2684_v52 = vsel %vm2644_vm8, %v2635_v17, %v4195_v6 }
 0x28a   :  { %v7275_v18 = vadd.f32 %v2753_v29, %v7236_v39  ;;  %v4662_v35 = vpack.c.bf16 %v2684_v52, %v2682_v27 }
 0x28b   :  { %v2782_v10 = vmin.f32 %v7272_v54, 0.0  ;;  %vm2774_vm9 = vcmp.gt.f32.partialorder %v7272_v54, 0.0 }
 0x28c   :  { %v2783_v31 = vmin.f32 %v7275_v18, 0.0  ;;  %v2757_v50 = vpop.f32.mrb[74].mxu0  ;;  %4663 = vmatprep.subr.bf16.mxu0 %v4662_v35  ;;  %4671 = vmatprep.subr.bf16.mxu1 %v4662_v35  ;;  %vm2775_vm11 = vcmp.gt.f32.partialorder %v7275_v18, 0.0 }
 0x28d   :  { %v2790_v45 = vmul.f32 1.442695, %v2782_v10  ;;  %v7281_v28 = vadd.f32 %v2757_v50, %v7240_v32  ;;  %v2759_v60 = vpop.f32.mrb[75].mxu0  ;;  %4665 = vmatpush1.bf16.msra.mxu0 %v4664_v49  ;;  %4673 = vmatpush1.bf16.msra.mxu1 %v4664_v49 }
 0x28e   :  { %v2792_v59 = vmul.f32 1.442695, %v2783_v31  ;;  %v7285_v40 = vadd.f32 %v2759_v60, %v7240_v32 }
 0x28f   :  { %5042 = vpow2.f32 %v2790_v45  ;;  %v2784_v2 = vmin.f32 %v7281_v28, 0.0  ;;  %vm2776_vm10 = vcmp.gt.f32.partialorder %v7281_v28, 0.0 }
 0x290   :  { %5044 = vpow2.f32 %v2792_v59  ;;  %v2785_v38 = vmin.f32 %v7285_v40, 0.0  ;;  %v2763_v61 = vpop.f32.mrb[76].mxu0  ;;  %4244 = vmatmul.mubr.msk.f32.vlgmr.msra.gmra.mrb[88].mxu0 %vm2261_vm2, %v7298_v5  ;;  %vm2777_vm12 = vcmp.gt.f32.partialorder %v7285_v40, 0.0 }
 0x291   :  { %v2794_v53 = vmul.f32 1.442695, %v2784_v2  ;;  %v7290_v1 = vadd.f32 %v2763_v61, %v7244_v55  ;;  %v2765_v19 = vpop.f32.mrb[77].mxu0  ;;  %3343 = vmatprep.mubr.f32.mxu0 %v7713_v8 }
 0x292   :  { %v2796_v56 = vmul.f32 1.442695, %v2785_v38  ;;  %v7293_v30 = vadd.f32 %v2765_v19, %v7244_v55 }
 0x293   :  { %5046 = vpow2.f32 %v2794_v53  ;;  %v2786_v46 = vmin.f32 %v7290_v1, 0.0  ;;  %vm2778_vm13 = vcmp.gt.f32.partialorder %v7290_v1, 0.0 }
 0x294   :  { %5048 = vpow2.f32 %v2796_v56  ;;  %v2787_v3 = vmin.f32 %v7293_v30, 0.0  ;;  %4245 = vmatmul.mubr.msk.f32.gmra.mrb[90].mxu0 %vm2261_vm2, %v7314_v12  ;;  %vm2779_vm14 = vcmp.gt.f32.partialorder %v7293_v30, 0.0 }
 0x295   :  { %v2769_v13 = vpop.f32.mrb[78].mxu0  ;;  %v2798_v23 = vmul.f32 1.442695, %v2786_v46  ;;  %3349 = vmatprep.mubr.f32.mxu0 %v7713_v8 }
 0x296   :  { %v7303_v15 = vadd.f32 %v2769_v13, %v7248_v57  ;;  %v2771_v17 = vpop.f32.mrb[79].mxu0  ;;  %v2800_v11 = vmul.f32 1.442695, %v2787_v3 }
 0x297   :  { %v7308_v34 = vadd.f32 %v2771_v17, %v7248_v57  ;;  %5050 = vpow2.f32 %v2798_v23 }
 0x298   :  { %v2788_v25 = vmin.f32 %v7303_v15, 0.0  ;;  %5052 = vpow2.f32 %v2800_v11  ;;  %4246 = vmatmul.mubr.msk.f32.gmra.mrb[92].mxu0 %vm2261_vm2, %v7324_v62  ;;  %vm2780_vm15 = vcmp.gt.f32.partialorder %v7303_v15, 0.0 }
 0x299   :  { %v2789_v42 = vmin.f32 %v7308_v34, 0.0  ;;  %v5043_v26 = vpop.eup %5042  ;;  %3355 = vmatprep.mubr.f32.mxu0 %v7713_v8  ;;  %vm2781_vm0 = vcmp.gt.f32.partialorder %v7308_v34, 0.0 }
 0x29a   :  { %v2802_v36 = vmul.f32 1.442695, %v2788_v25  ;;  %v5045_v22 = vpop.eup %5044  ;;  %v4200_v48 = vadd.f32 -1.0, %v5043_v26 }
 0x29b   :  { %v2804_v16 = vmul.f32 1.442695, %v2789_v42  ;;  %v4201_v9 = vadd.f32 -1.0, %v5045_v22 }
 0x29c   :  { %5054 = vpow2.f32 %v2802_v36  ;;  %v2814_v14 = vsel %vm2774_vm9, %v7272_v54, %v4200_v48  ;;  %4247 = vmatmul.mubr.msk.f32.gmra.mrb[94].mxu0 %vm2261_vm2, %v7332_v43 }
 0x29d   :  { %5056 = vpow2.f32 %v2804_v16  ;;  %v5047_v37 = vpop.eup %5046  ;;  %v2815_v24 = vsel %vm2775_vm11, %v7275_v18, %v4201_v9  ;;  %3611 = vmatprep.mubr.f32.mxu0 %v7713_v8 }
 0x29e   :  { %v5049_v21 = vpop.eup %5048  ;;  %v4202_v33 = vadd.f32 -1.0, %v5047_v37 }
 0x29f   :  { %v4203_v0 = vadd.f32 -1.0, %v5049_v21 }
 0x2a0   :  { %v2816_v7 = vsel %vm2776_vm10, %v7281_v28, %v4202_v33 }
 0x2a1   :  { %v5051_v47 = vpop.eup %5050  ;;  %v4676_v4 = vpack.c.bf16 %v2816_v7, %v2814_v14  ;;  %v2817_v41 = vsel %vm2777_vm12, %v7285_v40, %v4203_v0 }
 0x2a2   :  { %v5053_v29 = vpop.eup %5052  ;;  %v4674_v58 = vpack.c.bf16 %v2817_v41, %v2815_v24  ;;  %v4204_v54 = vadd.f32 -1.0, %v5051_v47 }
 0x2a3   :  { %v4205_v20 = vadd.f32 -1.0, %v5053_v29 }
 0x2a4   :  { %4675 = vmatprep.subr.bf16.mxu1 %v4674_v58  ;;  %v2818_v45 = vsel %vm2778_vm13, %v7290_v1, %v4204_v54 }
 0x2a5   :  { %4677 = vmatpush1.bf16.msra.mxu1 %v4676_v4  ;;  %v2819_v2 = vsel %vm2779_vm14, %v7293_v30, %v4205_v20 }
 0x2a6   :  { %v2888_v63 = vpop.f32.mrb[72].mxu1  ;;  %v5055_v6 = vpop.eup %5054 }
 0x2a7   :  { %v7346_v10 = vadd.f32 %v2888_v63, %v7236_v39  ;;  %v2890_v44 = vpop.f32.mrb[73].mxu1  ;;  %v5057_v31 = vpop.eup %5056  ;;  %v4206_v50 = vadd.f32 -1.0, %v5055_v6 }
 0x2a8   :  { %v7350_v18 = vadd.f32 %v2890_v44, %v7236_v39  ;;  %v4207_v28 = vadd.f32 -1.0, %v5057_v31 }
 0x2a9   :  { %v2919_v51 = vmin.f32 %v7346_v10, 0.0  ;;  %v2820_v49 = vsel %vm2780_vm15, %v7303_v15, %v4206_v50  ;;  %vm2911_vm1 = vcmp.gt.f32.partialorder %v7346_v10, 0.0 }
 0x2aa   :  { %v2920_v60 = vmin.f32 %v7350_v18, 0.0  ;;  %v2894_v27 = vpop.f32.mrb[74].mxu1  ;;  %v4680_v35 = vpack.c.bf16 %v2820_v49, %v2818_v45  ;;  %v2821_v53 = vsel %vm2781_vm0, %v7308_v34, %v4207_v28  ;;  %vm2912_vm3 = vcmp.gt.f32.partialorder %v7350_v18, 0.0 }
 0x2ab   :  { %v2927_v59 = vmul.f32 1.442695, %v2919_v51  ;;  %v7360_v40 = vadd.f32 %v2894_v27, %v7240_v32  ;;  %v2896_v52 = vpop.f32.mrb[75].mxu1  ;;  %v4678_v19 = vpack.c.bf16 %v2821_v53, %v2819_v2 }
 0x2ac   :  { %v2929_v38 = vmul.f32 1.442695, %v2920_v60  ;;  %v7364_v61 = vadd.f32 %v2896_v52, %v7240_v32 }
 0x2ad   :  { %5058 = vpow2.f32 %v2927_v59  ;;  %v2921_v1 = vmin.f32 %v7360_v40, 0.0  ;;  %4679 = vmatprep.subr.bf16.mxu1 %v4678_v19  ;;  %vm2913_vm4 = vcmp.gt.f32.partialorder %v7360_v40, 0.0 }
 0x2ae   :  { %5060 = vpow2.f32 %v2929_v38  ;;  %v2922_v56 = vmin.f32 %v7364_v61, 0.0  ;;  %v2900_v46 = vpop.f32.mrb[76].mxu1  ;;  %4681 = vmatpush1.bf16.msra.mxu1 %v4680_v35  ;;  %vm2914_vm5 = vcmp.gt.f32.partialorder %v7364_v61, 0.0 }
 0x2af   :  { %v2931_v3 = vmul.f32 1.442695, %v2921_v1  ;;  %v7370_v13 = vadd.f32 %v2900_v46, %v7244_v55  ;;  %v2902_v30 = vpop.f32.mrb[77].mxu1 }
 0x2b0   :  { %v2933_v23 = vmul.f32 1.442695, %v2922_v56  ;;  %v7373_v15 = vadd.f32 %v2902_v30, %v7244_v55 }
 0x2b1   :  { %5062 = vpow2.f32 %v2931_v3  ;;  %v2923_v17 = vmin.f32 %v7370_v13, 0.0  ;;  %vm2915_vm6 = vcmp.gt.f32.partialorder %v7370_v13, 0.0 }
 0x2b2   :  { %5064 = vpow2.f32 %v2933_v23  ;;  %v2924_v11 = vmin.f32 %v7373_v15, 0.0  ;;  %v2906_v34 = vpop.f32.mrb[78].mxu1  ;;  %vm2916_vm8 = vcmp.gt.f32.partialorder %v7373_v15, 0.0 }
 0x2b3   :  { %v2935_v25 = vmul.f32 1.442695, %v2923_v17  ;;  %v7378_v42 = vadd.f32 %v2906_v34, %v7248_v57  ;;  %v2908_v26 = vpop.f32.mrb[79].mxu1 }
 0x2b4   :  { %v2937_v36 = vmul.f32 1.442695, %v2924_v11  ;;  %v7381_v22 = vadd.f32 %v2908_v26, %v7248_v57 }
 0x2b5   :  { %5066 = vpow2.f32 %v2935_v25  ;;  %v2925_v16 = vmin.f32 %v7378_v42, 0.0  ;;  %vm2917_vm7 = vcmp.gt.f32.partialorder %v7378_v42, 0.0 }
 0x2b6   :  { %v2926_v48 = vmin.f32 %v7381_v22, 0.0  ;;  %v3025_v37 = vpop.f32.mrb[80].mxu0  ;;  %5068 = vpow2.f32 %v2937_v36  ;;  %vm2918_vm9 = vcmp.gt.f32.partialorder %v7381_v22, 0.0 }
 0x2b7   :  { %v5059_v9 = vpop.eup %5058  ;;  %v2939_v21 = vmul.f32 1.442695, %v2925_v16  ;;  %v7386_v33 = vadd.f32 %v3025_v37, %v7236_v39  ;;  %v3027_v0 = vpop.f32.mrb[81].mxu0 }
 0x2b8   :  { %v5061_v14 = vpop.eup %5060  ;;  %v2941_v7 = vmul.f32 1.442695, %v2926_v48  ;;  %v7389_v47 = vadd.f32 %v3027_v0, %v7236_v39  ;;  %v4212_v4 = vadd.f32 -1.0, %v5059_v9 }
 0x2b9   :  { %5070 = vpow2.f32 %v2939_v21  ;;  %v3056_v24 = vmin.f32 %v7386_v33, 0.0  ;;  %v4213_v41 = vadd.f32 -1.0, %v5061_v14  ;;  %vm3048_vm10 = vcmp.gt.f32.partialorder %v7386_v33, 0.0 }
 0x2ba   :  { %5072 = vpow2.f32 %v2941_v7  ;;  %v3057_v29 = vmin.f32 %v7389_v47, 0.0  ;;  %v3031_v58 = vpop.f32.mrb[82].mxu0  ;;  %v2951_v45 = vsel %vm2911_vm1, %v7346_v10, %v4212_v4  ;;  %vm3049_vm12 = vcmp.gt.f32.partialorder %v7389_v47, 0.0 }
 0x2bb   :  { %v5063_v54 = vpop.eup %5062  ;;  %v3064_v63 = vmul.f32 1.442695, %v3056_v24  ;;  %v7397_v20 = vadd.f32 %v3031_v58, %v7240_v32  ;;  %v3033_v44 = vpop.f32.mrb[83].mxu0  ;;  %v2952_v52 = vsel %vm2912_vm3, %v7350_v18, %v4213_v41 }
 0x2bc   :  { %v5065_v6 = vpop.eup %5064  ;;  %v4214_v31 = vadd.f32 -1.0, %v5063_v54  ;;  %v3066_v50 = vmul.f32 1.442695, %v3057_v29  ;;  %v7401_v51 = vadd.f32 %v3033_v44, %v7240_v32 }
 0x2bd   :  { %v4215_v28 = vadd.f32 -1.0, %v5065_v6  ;;  %5074 = vpow2.f32 %v3064_v63  ;;  %v3058_v60 = vmin.f32 %v7397_v20, 0.0  ;;  %vm3050_vm11 = vcmp.gt.f32.partialorder %v7397_v20, 0.0 }
 0x2be   :  { %v2953_v27 = vsel %vm2913_vm4, %v7360_v40, %v4214_v31  ;;  %5076 = vpow2.f32 %v3066_v50  ;;  %v3059_v49 = vmin.f32 %v7401_v51, 0.0  ;;  %v3037_v59 = vpop.f32.mrb[84].mxu0  ;;  %vm3051_vm13 = vcmp.gt.f32.partialorder %v7401_v51, 0.0 }
 0x2bf   :  { %v5067_v2 = vpop.eup %5066  ;;  %v4684_v35 = vpack.c.bf16 %v2953_v27, %v2951_v45  ;;  %v3068_v38 = vmul.f32 1.442695, %v3058_v60  ;;  %v7413_v53 = vadd.f32 %v3037_v59, %v7244_v55  ;;  %v3039_v10 = vpop.f32.mrb[85].mxu0  ;;  %v2954_v1 = vsel %vm2914_vm5, %v7364_v61, %v4215_v28 }
 0x2c0   :  { %v3070_v40 = vmul.f32 1.442695, %v3059_v49  ;;  %v7419_v19 = vadd.f32 %v3039_v10, %v7244_v55  ;;  %v4682_v56 = vpack.c.bf16 %v2954_v1, %v2952_v52  ;;  %v5069_v18 = vpop.eup %5068  ;;  %v4216_v3 = vadd.f32 -1.0, %v5067_v2 }
 0x2c1   :  { %5078 = vpow2.f32 %v3068_v38  ;;  %v3060_v46 = vmin.f32 %v7413_v53, 0.0  ;;  %v4217_v21 = vadd.f32 -1.0, %v5069_v18  ;;  %vm3052_vm14 = vcmp.gt.f32.partialorder %v7413_v53, 0.0 }
 0x2c2   :  { %5080 = vpow2.f32 %v3070_v40  ;;  %v3061_v30 = vmin.f32 %v7419_v19, 0.0  ;;  %v3043_v23 = vpop.f32.mrb[86].mxu0  ;;  %4683 = vmatprep.subr.bf16.mxu1 %v4682_v56  ;;  %4691 = vmatprep.subr.bf16.mxu0 %v4682_v56  ;;  %v2955_v7 = vsel %vm2915_vm6, %v7370_v13, %v4216_v3  ;;  %vm3053_vm15 = vcmp.gt.f32.partialorder %v7419_v19, 0.0 }
 0x2c3   :  { %v5071_v17 = vpop.eup %5070  ;;  %v3072_v61 = vmul.f32 1.442695, %v3060_v46  ;;  %v7426_v11 = vadd.f32 %v3043_v23, %v7248_v57  ;;  %v3045_v34 = vpop.f32.mrb[87].mxu0  ;;  %4685 = vmatpush1.bf16.msra.mxu1 %v4684_v35  ;;  %4693 = vmatpush1.bf16.msra.mxu0 %v4684_v35  ;;  %v2956_v27 = vsel %vm2916_vm8, %v7373_v15, %v4217_v21 }
 0x2c4   :  { %v3162_v25 = vpop.f32.mrb[80].mxu1  ;;  %v5073_v26 = vpop.eup %5072  ;;  %v4218_v36 = vadd.f32 -1.0, %v5071_v17  ;;  %v3074_v16 = vmul.f32 1.442695, %v3061_v30  ;;  %v7429_v48 = vadd.f32 %v3045_v34, %v7248_v57 }
 0x2c5   :  { %v7432_v37 = vadd.f32 %v3162_v25, %v7236_v39  ;;  %v3164_v9 = vpop.f32.mrb[81].mxu1  ;;  %v4219_v0 = vadd.f32 -1.0, %v5073_v26  ;;  %5082 = vpow2.f32 %v3072_v61  ;;  %v3062_v14 = vmin.f32 %v7426_v11, 0.0 }
 0x2c6   :  { %v2957_v4 = vsel %vm2917_vm7, %v7378_v42, %v4218_v36  ;;  %5084 = vpow2.f32 %v3074_v16  ;;  %v3063_v24 = vmin.f32 %v7429_v48, 0.0  ;;  %v7446_v13 = vadd.f32 %v3164_v9, %v7236_v39 }
 0x2c7   :  { %v5075_v41 = vpop.eup %5074  ;;  %v4688_v29 = vpack.c.bf16 %v2957_v4, %v2955_v7  ;;  %v3076_v58 = vmul.f32 1.442695, %v3062_v14  ;;  %v3193_v54 = vmin.f32 %v7432_v37, 0.0  ;;  %v3168_v63 = vpop.f32.mrb[82].mxu1  ;;  %v2958_v45 = vsel %vm2918_vm9, %v7381_v22, %v4219_v0 }
 0x2c8   :  { %v5077_v44 = vpop.eup %5076  ;;  %v3078_v6 = vmul.f32 1.442695, %v3063_v24  ;;  %v7449_v42 = vadd.f32 %v3168_v63, %v7240_v32  ;;  %v3170_v31 = vpop.f32.mrb[83].mxu1  ;;  %v4224_v28 = vadd.f32 -1.0, %v5075_v41  ;;  %v3194_v60 = vmin.f32 %v7446_v13, 0.0 }
 0x2c9   :  { %5086 = vpow2.f32 %v3076_v58  ;;  %v3201_v50 = vmul.f32 1.442695, %v3193_v54  ;;  %v4225_v49 = vadd.f32 -1.0, %v5077_v44  ;;  %v4686_v52 = vpack.c.bf16 %v2958_v45, %v2956_v27 }
 0x2ca   :  { %5088 = vpow2.f32 %v3078_v6  ;;  %v3195_v59 = vmin.f32 %v7449_v42, 0.0  ;;  %v3203_v10 = vmul.f32 1.442695, %v3194_v60  ;;  %v7459_v22 = vadd.f32 %v3170_v31, %v7240_v32 }
 0x2cb   :  { %v5079_v39 = vpop.eup %5078  ;;  %5090 = vpow2.f32 %v3201_v50  ;;  %v3174_v2 = vpop.f32.mrb[84].mxu1  ;;  %4687 = vmatprep.subr.bf16.mxu1 %v4686_v52  ;;  %4695 = vmatprep.subr.bf16.mxu0 %v4686_v52  ;;  %v3088_v18 = vsel %vm3048_vm10, %v7386_v33, %v4224_v28  ;;  %vm3054_vm0 = vcmp.gt.f32.partialorder %v7426_v11, 0.0  ;;  %vm3055_vm1 = vcmp.gt.f32.partialorder %v7429_v48, 0.0 }
 0x2cc   :  { %v5081_v35 = vpop.eup %5080  ;;  %v4226_v38 = vadd.f32 -1.0, %v5079_v39  ;;  %v7462_v1 = vadd.f32 %v3174_v2, %v7244_v55  ;;  %v3176_v40 = vpop.f32.mrb[85].mxu1  ;;  %v3205_v56 = vmul.f32 1.442695, %v3195_v59  ;;  %5092 = vpow2.f32 %v3203_v10  ;;  %4689 = vmatpush1.bf16.msra.mxu1 %v4688_v29  ;;  %4697 = vmatpush1.bf16.msra.mxu0 %v4688_v29 }
 0x2cd   :  { %v4227_v15 = vadd.f32 -1.0, %v5081_v35  ;;  %v7466_v46 = vadd.f32 %v3176_v40, %v7244_v55  ;;  %v3196_v3 = vmin.f32 %v7459_v22, 0.0  ;;  %vm3185_vm3 = vcmp.gt.f32.partialorder %v7432_v37, 0.0 }
 0x2ce   :  { %v3090_v32 = vsel %vm3050_vm11, %v7397_v20, %v4226_v38  ;;  %5094 = vpow2.f32 %v3205_v56  ;;  %v3197_v17 = vmin.f32 %v7462_v1, 0.0  ;;  %v3089_v20 = vsel %vm3049_vm12, %v7389_v47, %v4225_v49 }
 0x2cf   :  { %v5083_v30 = vpop.eup %5082  ;;  %v4700_v23 = vpack.c.bf16 %v3090_v32, %v3088_v18  ;;  %v3180_v55 = vpop.f32.mrb[86].mxu1  ;;  %v3207_v34 = vmul.f32 1.442695, %v3196_v3  ;;  %v3198_v33 = vmin.f32 %v7466_v46, 0.0  ;;  %4256 = vmatmul.mubr.msk.f32.vlgmr.msra.gmra.mrb[88].mxu1 %vm2261_vm2, %v7298_v5  ;;  %v3091_v9 = vsel %vm3051_vm13, %v7401_v51, %v4227_v15 }
 0x2d0   :  { %v5085_v61 = vpop.eup %5084  ;;  %v3182_v25 = vpop.f32.mrb[87].mxu1  ;;  %v4228_v26 = vadd.f32 -1.0, %v5083_v30  ;;  %v3209_v36 = vmul.f32 1.442695, %v3197_v17  ;;  %v7481_v16 = vadd.f32 %v3180_v55, %v7248_v57  ;;  %3480 = vmatprep.mubr.f32.mxu1 %v7713_v8  ;;  %v4698_v14 = vpack.c.bf16 %v3091_v9, %v3089_v20 }
 0x2d1   :  { %v4229_v21 = vadd.f32 -1.0, %v5085_v61  ;;  %5096 = vpow2.f32 %v3207_v34  ;;  %v3211_v0 = vmul.f32 1.442695, %v3198_v33  ;;  %v7487_v4 = vadd.f32 %v3182_v25, %v7248_v57  ;;  %v7539_v61 = vpop.permute.xlu1 %3248 }
 0x2d2   :  { %5098 = vpow2.f32 %v3209_v36  ;;  %v3199_v47 = vmin.f32 %v7481_v16, 0.0  ;;  %4699 = vmatprep.subr.bf16.mxu0 %v4698_v14  ;;  %v3092_v57 = vsel %vm3052_vm14, %v7413_v53, %v4228_v26  ;;  %vm3187_vm4 = vcmp.gt.f32.partialorder %v7449_v42, 0.0 }
 0x2d3   :  { %v5087_v7 = vpop.eup %5086  ;;  %5100 = vpow2.f32 %v3211_v0  ;;  %4257 = vmatmul.mubr.msk.f32.gmra.mrb[90].mxu1 %vm2261_vm2, %v7314_v12  ;;  %v3200_v54 = vmin.f32 %v7487_v4, 0.0  ;;  %4701 = vmatpush1.bf16.msra.mxu0 %v4700_v23  ;;  %v3093_v44 = vsel %vm3053_vm15, %v7419_v19, %v4229_v21  ;;  %vm3186_vm5 = vcmp.gt.f32.partialorder %v7446_v13, 0.0 }
 0x2d4   :  { %v5089_v24 = vpop.eup %5088  ;;  %v4230_v51 = vadd.f32 -1.0, %v5087_v7  ;;  %v3213_v58 = vmul.f32 1.442695, %v3199_v47  ;;  %3486 = vmatprep.mubr.f32.mxu1 %v7713_v8  ;;  %vm3188_vm6 = vcmp.gt.f32.partialorder %v7459_v22, 0.0  ;;  %vm3189_vm7 = vcmp.gt.f32.partialorder %v7462_v1, 0.0 }
 0x2d5   :  { %v5091_v41 = vpop.eup %5090  ;;  %v4231_v29 = vadd.f32 -1.0, %v5089_v24  ;;  %v3215_v31 = vmul.f32 1.442695, %v3200_v54  ;;  %vm3191_vm8 = vcmp.gt.f32.partialorder %v7481_v16, 0.0  ;;  %vm3190_vm9 = vcmp.gt.f32.partialorder %v7466_v46, 0.0 }
 0x2d6   :  { %v3094_v63 = vsel %vm3054_vm0, %v7426_v11, %v4230_v51  ;;  %5102 = vpow2.f32 %v3213_v58  ;;  %v5093_v45 = vpop.eup %5092  ;;  %v4236_v28 = vadd.f32 -1.0, %v5091_v41  ;;  %vm3192_vm10 = vcmp.gt.f32.partialorder %v7487_v4, 0.0  ;;  %v7547_v51 = vpop.permute.xlu1 %3258 }
 0x2d7   :  { %v4704_v6 = vpack.c.bf16 %v3094_v63, %v3092_v57  ;;  %v3095_v50 = vsel %vm3055_vm1, %v7429_v48, %v4231_v29  ;;  %5104 = vpow2.f32 %v3215_v31  ;;  %4258 = vmatmul.mubr.msk.f32.gmra.mrb[92].mxu1 %vm2261_vm2, %v7324_v62  ;;  %v4237_v19 = vadd.f32 -1.0, %v5093_v45 }
 0x2d8   :  { %v4702_v60 = vpack.c.bf16 %v3095_v50, %v3093_v44  ;;  %v5095_v27 = vpop.eup %5094  ;;  %3492 = vmatprep.mubr.f32.mxu1 %v7713_v8  ;;  %v3225_v48 = vsel %vm3185_vm3, %v7432_v37, %v4236_v28 }
 0x2d9   :  { %v4238_v53 = vadd.f32 -1.0, %v5095_v27  ;;  %v3226_v35 = vsel %vm3186_vm5, %v7446_v13, %v4237_v19 }
 0x2da   :  { %4703 = vmatprep.subr.bf16.mxu0 %v4702_v60 }
 0x2db   :  { %4705 = vmatpush1.bf16.msra.mxu0 %v4704_v6  ;;  %v5097_v11 = vpop.eup %5096  ;;  %v3227_v39 = vsel %vm3187_vm4, %v7449_v42, %v4238_v53  ;;  %4259 = vmatmul.mubr.msk.f32.gmra.mrb[94].mxu1 %vm2261_vm2, %v7332_v43 }
 0x2dc   :  { %v5099_v49 = vpop.eup %5098  ;;  %v4708_v59 = vpack.c.bf16 %v3227_v39, %v3225_v48  ;;  %v4239_v52 = vadd.f32 -1.0, %v5097_v11  ;;  %3788 = vmatprep.mubr.f32.mxu1 %v7713_v8 }
 0x2dd   :  { %v5101_v2 = vpop.eup %5100  ;;  %v4240_v37 = vadd.f32 -1.0, %v5099_v49 }
 0x2de   :  { %v3228_v38 = vsel %vm3188_vm6, %v7459_v22, %v4239_v52  ;;  %v4241_v40 = vadd.f32 -1.0, %v5101_v2 }
 0x2df   :  { %v4706_v10 = vpack.c.bf16 %v3228_v38, %v3226_v35  ;;  %v3229_v18 = vsel %vm3189_vm7, %v7462_v1, %v4240_v37  ;;  %v7535_v1 = vpop.permute.xlu0 %3243 }
 0x2e0   :  { %v5103_v42 = vpop.eup %5102  ;;  %v3230_v22 = vsel %vm3190_vm9, %v7466_v46, %v4241_v40 }
 0x2e1   :  { %v4242_v15 = vadd.f32 -1.0, %v5103_v42  ;;  %4707 = vmatprep.subr.bf16.mxu0 %v4706_v10  ;;  %v5105_v56 = vpop.eup %5104 }
 0x2e2   :  { %4709 = vmatpush1.bf16.msra.mxu0 %v4708_v59  ;;  %v4243_v3 = vadd.f32 -1.0, %v5105_v56 }
 0x2e3   :  { %v3231_v32 = vsel %vm3191_vm8, %v7481_v16, %v4242_v15  ;;  %v7543_v16 = vpop.permute.xlu0 %3253 }
 0x2e4   :  { %v4712_v13 = vpack.c.bf16 %v3231_v32, %v3229_v18  ;;  %v3232_v30 = vsel %vm3192_vm10, %v7487_v4, %v4243_v3 }
 0x2e5   :  { %v4710_v23 = vpack.c.bf16 %v3232_v30, %v3230_v22 }
 0x2e7   :  { %4711 = vmatprep.subr.bf16.mxu0 %v4710_v23 }
 0x2e8   :  { %4713 = vmatpush1.bf16.msra.mxu0 %v4712_v13 }
 0x2eb   :  { %4268 = vmatmul.mubr.msk.f32.vlgmr.msra.gmra.mrb[96].mxu0 %vm2261_vm2, %v7298_v5 }
 0x2ec   :  { %3617 = vmatprep.mubr.f32.mxu0 %v7713_v8 }
 0x2ef   :  { %4269 = vmatmul.mubr.msk.f32.gmra.mrb[98].mxu0 %vm2261_vm2, %v7314_v12 }
 0x2f0   :  { %3623 = vmatprep.mubr.f32.mxu0 %v7713_v8 }
 0x2f3   :  { %4270 = vmatmul.mubr.msk.f32.gmra.mrb[100].mxu0 %vm2261_vm2, %v7324_v62 }
 0x2f4   :  { %3629 = vmatprep.mubr.f32.mxu0 %v7713_v8 }
 0x2f7   :  { %4271 = vmatmul.mubr.msk.f32.gmra.mrb[102].mxu0 %vm2261_vm2, %v7332_v43 }
 0x2f8   :  { %3946 = vmatprep.mubr.f32.mxu0 %v7713_v8 }
 0x363   :  { %v3339_v5 = vpop.f32.mrb[88].mxu0 }
 0x364   :  { %v3340_v46 = vadd.f32 %v3339_v5, %v7535_v1  ;;  %v3341_v17 = vpop.f32.mrb[89].mxu0 }
 0x365   :  { %v3342_v12 = vadd.f32 %v3341_v17, %v7535_v1 }
 0x366   :  { %v3370_v55 = vmin.f32 %v3340_v46, 0.0  ;;  %vm3362_vm11 = vcmp.gt.f32.partialorder %v3340_v46, 0.0 }
 0x367   :  { %v3371_v34 = vmin.f32 %v3342_v12, 0.0  ;;  %v3345_v62 = vpop.f32.mrb[90].mxu0  ;;  %vm3363_vm13 = vcmp.gt.f32.partialorder %v3342_v12, 0.0 }
 0x368   :  { %v3378_v33 = vmul.f32 1.442695, %v3370_v55  ;;  %v3346_v20 = vadd.f32 %v3345_v62, %v7539_v61  ;;  %v3347_v25 = vpop.f32.mrb[91].mxu0 }
 0x369   :  { %v3380_v43 = vmul.f32 1.442695, %v3371_v34  ;;  %v3348_v26 = vadd.f32 %v3347_v25, %v7539_v61 }
 0x36a   :  { %5106 = vpow2.f32 %v3378_v33  ;;  %v3372_v36 = vmin.f32 %v3346_v20, 0.0  ;;  %vm3364_vm12 = vcmp.gt.f32.partialorder %v3346_v20, 0.0 }
 0x36b   :  { %5108 = vpow2.f32 %v3380_v43  ;;  %v3373_v9 = vmin.f32 %v3348_v26, 0.0  ;;  %v3351_v21 = vpop.f32.mrb[92].mxu0  ;;  %vm3365_vm14 = vcmp.gt.f32.partialorder %v3348_v26, 0.0 }
 0x36c   :  { %v3382_v0 = vmul.f32 1.442695, %v3372_v36  ;;  %v3352_v14 = vadd.f32 %v3351_v21, %v7543_v16  ;;  %v3353_v7 = vpop.f32.mrb[93].mxu0 }
 0x36d   :  { %v3384_v47 = vmul.f32 1.442695, %v3373_v9  ;;  %v3354_v4 = vadd.f32 %v3353_v7, %v7543_v16 }
 0x36e   :  { %5110 = vpow2.f32 %v3382_v0  ;;  %v3374_v24 = vmin.f32 %v3352_v14, 0.0  ;;  %vm3366_vm15 = vcmp.gt.f32.partialorder %v3352_v14, 0.0 }
 0x36f   :  { %5112 = vpow2.f32 %v3384_v47  ;;  %v3375_v41 = vmin.f32 %v3354_v4, 0.0  ;;  %v3357_v29 = vpop.f32.mrb[94].mxu0  ;;  %vm3367_vm1 = vcmp.gt.f32.partialorder %v3354_v4, 0.0 }
 0x370   :  { %v3386_v58 = vmul.f32 1.442695, %v3374_v24  ;;  %v3358_v54 = vadd.f32 %v3357_v29, %v7547_v51  ;;  %v3359_v57 = vpop.f32.mrb[95].mxu0 }
 0x371   :  { %v3388_v63 = vmul.f32 1.442695, %v3375_v41  ;;  %v3360_v44 = vadd.f32 %v3359_v57, %v7547_v51 }
 0x372   :  { %5114 = vpow2.f32 %v3386_v58  ;;  %v3376_v6 = vmin.f32 %v3358_v54, 0.0  ;;  %vm3368_vm0 = vcmp.gt.f32.partialorder %v3358_v54, 0.0 }
 0x373   :  { %5116 = vpow2.f32 %v3388_v63  ;;  %v3377_v31 = vmin.f32 %v3360_v44, 0.0  ;;  %vm3369_vm3 = vcmp.gt.f32.partialorder %v3360_v44, 0.0 }
 0x374   :  { %v5107_v50 = vpop.eup %5106  ;;  %v3390_v45 = vmul.f32 1.442695, %v3376_v6 }
 0x375   :  { %v5109_v28 = vpop.eup %5108  ;;  %v3392_v60 = vmul.f32 1.442695, %v3377_v31  ;;  %v4248_v27 = vadd.f32 -1.0, %v5107_v50 }
 0x376   :  { %5118 = vpow2.f32 %v3390_v45  ;;  %v4249_v19 = vadd.f32 -1.0, %v5109_v28 }
 0x377   :  { %5120 = vpow2.f32 %v3392_v60  ;;  %v3402_v49 = vsel %vm3362_vm11, %v3340_v46, %v4248_v27 }
 0x378   :  { %v5111_v53 = vpop.eup %5110  ;;  %v3403_v35 = vsel %vm3363_vm13, %v3342_v12, %v4249_v19 }
 0x379   :  { %v5113_v11 = vpop.eup %5112  ;;  %v4250_v48 = vadd.f32 -1.0, %v5111_v53 }
 0x37a   :  { %v4251_v39 = vadd.f32 -1.0, %v5113_v11 }
 0x37b   :  { %v3404_v59 = vsel %vm3364_vm12, %v3346_v20, %v4250_v48 }
 0x37c   :  { %v5115_v52 = vpop.eup %5114  ;;  %v4716_v2 = vpack.c.bf16 %v3404_v59, %v3402_v49  ;;  %v3405_v38 = vsel %vm3365_vm14, %v3348_v26, %v4251_v39 }
 0x37d   :  { %v5117_v37 = vpop.eup %5116  ;;  %v4714_v10 = vpack.c.bf16 %v3405_v38, %v3403_v35  ;;  %v4252_v42 = vadd.f32 -1.0, %v5115_v52 }
 0x37e   :  { %v4253_v15 = vadd.f32 -1.0, %v5117_v37 }
 0x37f   :  { %4715 = vmatprep.subr.bf16.mxu1 %v4714_v10  ;;  %v3406_v3 = vsel %vm3366_vm15, %v3352_v14, %v4252_v42 }
 0x380   :  { %v5119_v40 = vpop.eup %5118  ;;  %4717 = vmatpush1.bf16.msra.mxu1 %v4716_v2  ;;  %v3407_v30 = vsel %vm3367_vm1, %v3354_v4, %v4253_v15 }
 0x381   :  { %v5121_v56 = vpop.eup %5120  ;;  %v4254_v18 = vadd.f32 -1.0, %v5119_v40 }
 0x382   :  { %v4255_v32 = vadd.f32 -1.0, %v5121_v56 }
 0x383   :  { %v3408_v13 = vsel %vm3368_vm0, %v3358_v54, %v4254_v18 }
 0x384   :  { %v4720_v22 = vpack.c.bf16 %v3408_v13, %v3406_v3  ;;  %v3409_v23 = vsel %vm3369_vm3, %v3360_v44, %v4255_v32 }
 0x385   :  { %v4718_v5 = vpack.c.bf16 %v3409_v23, %v3407_v30 }
 0x387   :  { %4719 = vmatprep.subr.bf16.mxu1 %v4718_v5 }
 0x388   :  { %4721 = vmatpush1.bf16.msra.mxu1 %v4720_v22 }
 0x3a2   :  { %v3476_v46 = vpop.f32.mrb[88].mxu1 }
 0x3a3   :  { %v3477_v17 = vadd.f32 %v3476_v46, %v7535_v1  ;;  %v3478_v12 = vpop.f32.mrb[89].mxu1 }
 0x3a4   :  { %v3479_v55 = vadd.f32 %v3478_v12, %v7535_v1 }
 0x3a5   :  { %v3507_v34 = vmin.f32 %v3477_v17, 0.0  ;;  %vm3499_vm4 = vcmp.gt.f32.partialorder %v3477_v17, 0.0 }
 0x3a6   :  { %v3508_v62 = vmin.f32 %v3479_v55, 0.0  ;;  %v3482_v33 = vpop.f32.mrb[90].mxu1  ;;  %vm3500_vm6 = vcmp.gt.f32.partialorder %v3479_v55, 0.0 }
 0x3a7   :  { %v3515_v20 = vmul.f32 1.442695, %v3507_v34  ;;  %v3483_v25 = vadd.f32 %v3482_v33, %v7539_v61  ;;  %v3484_v43 = vpop.f32.mrb[91].mxu1 }
 0x3a8   :  { %v3517_v26 = vmul.f32 1.442695, %v3508_v62  ;;  %v3485_v36 = vadd.f32 %v3484_v43, %v7539_v61 }
 0x3a9   :  { %5122 = vpow2.f32 %v3515_v20  ;;  %v3509_v9 = vmin.f32 %v3483_v25, 0.0  ;;  %vm3501_vm5 = vcmp.gt.f32.partialorder %v3483_v25, 0.0 }
 0x3aa   :  { %5124 = vpow2.f32 %v3517_v26  ;;  %v3510_v21 = vmin.f32 %v3485_v36, 0.0  ;;  %v3488_v0 = vpop.f32.mrb[92].mxu1  ;;  %vm3502_vm7 = vcmp.gt.f32.partialorder %v3485_v36, 0.0 }
 0x3ab   :  { %v3519_v14 = vmul.f32 1.442695, %v3509_v9  ;;  %v3489_v7 = vadd.f32 %v3488_v0, %v7543_v16  ;;  %v3490_v47 = vpop.f32.mrb[93].mxu1 }
 0x3ac   :  { %v3521_v4 = vmul.f32 1.442695, %v3510_v21  ;;  %v3491_v24 = vadd.f32 %v3490_v47, %v7543_v16 }
 0x3ad   :  { %5126 = vpow2.f32 %v3519_v14  ;;  %v3511_v41 = vmin.f32 %v3489_v7, 0.0  ;;  %vm3503_vm8 = vcmp.gt.f32.partialorder %v3489_v7, 0.0 }
 0x3ae   :  { %5128 = vpow2.f32 %v3521_v4  ;;  %v3512_v29 = vmin.f32 %v3491_v24, 0.0  ;;  %v3494_v58 = vpop.f32.mrb[94].mxu1  ;;  %vm3504_vm9 = vcmp.gt.f32.partialorder %v3491_v24, 0.0 }
 0x3af   :  { %v3523_v54 = vmul.f32 1.442695, %v3511_v41  ;;  %v3495_v57 = vadd.f32 %v3494_v58, %v7547_v51  ;;  %v3496_v63 = vpop.f32.mrb[95].mxu1 }
 0x3b0   :  { %v3525_v44 = vmul.f32 1.442695, %v3512_v29  ;;  %v3497_v6 = vadd.f32 %v3496_v63, %v7547_v51 }
 0x3b1   :  { %5130 = vpow2.f32 %v3523_v54  ;;  %v3513_v31 = vmin.f32 %v3495_v57, 0.0  ;;  %vm3505_vm10 = vcmp.gt.f32.partialorder %v3495_v57, 0.0 }
 0x3b2   :  { %5132 = vpow2.f32 %v3525_v44  ;;  %v3514_v50 = vmin.f32 %v3497_v6, 0.0  ;;  %vm3506_vm11 = vcmp.gt.f32.partialorder %v3497_v6, 0.0 }
 0x3b3   :  { %v5123_v45 = vpop.eup %5122  ;;  %v3527_v28 = vmul.f32 1.442695, %v3513_v31 }
 0x3b4   :  { %v5125_v60 = vpop.eup %5124  ;;  %v3529_v27 = vmul.f32 1.442695, %v3514_v50  ;;  %v4260_v53 = vadd.f32 -1.0, %v5123_v45 }
 0x3b5   :  { %5134 = vpow2.f32 %v3527_v28  ;;  %v4261_v11 = vadd.f32 -1.0, %v5125_v60 }
 0x3b6   :  { %5136 = vpow2.f32 %v3529_v27  ;;  %v3539_v59 = vsel %vm3499_vm4, %v3477_v17, %v4260_v53 }
 0x3b7   :  { %v5127_v19 = vpop.eup %5126  ;;  %v3540_v38 = vsel %vm3500_vm6, %v3479_v55, %v4261_v11 }
 0x3b8   :  { %v5129_v48 = vpop.eup %5128  ;;  %v4262_v39 = vadd.f32 -1.0, %v5127_v19 }
 0x3b9   :  { %v4263_v49 = vadd.f32 -1.0, %v5129_v48 }
 0x3ba   :  { %v3541_v52 = vsel %vm3501_vm5, %v3483_v25, %v4262_v39 }
 0x3bb   :  { %v5131_v2 = vpop.eup %5130  ;;  %v4724_v35 = vpack.c.bf16 %v3541_v52, %v3539_v59  ;;  %v3542_v37 = vsel %vm3502_vm7, %v3485_v36, %v4263_v49 }
 0x3bc   :  { %v5133_v10 = vpop.eup %5132  ;;  %v4722_v42 = vpack.c.bf16 %v3542_v37, %v3540_v38  ;;  %v4264_v40 = vadd.f32 -1.0, %v5131_v2 }
 0x3bd   :  { %v4265_v15 = vadd.f32 -1.0, %v5133_v10 }
 0x3be   :  { %4723 = vmatprep.subr.bf16.mxu1 %v4722_v42  ;;  %v3613_v56 = vpop.f32.mrb[96].mxu0  ;;  %v3543_v46 = vsel %vm3503_vm8, %v3489_v7, %v4264_v40 }
 0x3bf   :  { %v5135_v18 = vpop.eup %5134  ;;  %4725 = vmatpush1.bf16.msra.mxu1 %v4724_v35  ;;  %v7560_v32 = vadd.f32 %v3613_v56, %v7535_v1  ;;  %v3615_v3 = vpop.f32.mrb[97].mxu0  ;;  %v3544_v34 = vsel %vm3504_vm9, %v3491_v24, %v4265_v15 }
 0x3c0   :  { %v5137_v13 = vpop.eup %5136  ;;  %v4266_v22 = vadd.f32 -1.0, %v5135_v18  ;;  %v7563_v30 = vadd.f32 %v3615_v3, %v7535_v1 }
 0x3c1   :  { %v4267_v23 = vadd.f32 -1.0, %v5137_v13  ;;  %v3644_v5 = vmin.f32 %v7560_v32, 0.0  ;;  %vm3636_vm12 = vcmp.gt.f32.partialorder %v7560_v32, 0.0 }
 0x3c2   :  { %v3545_v17 = vsel %vm3505_vm10, %v3495_v57, %v4266_v22  ;;  %v3645_v12 = vmin.f32 %v7563_v30, 0.0  ;;  %v3619_v55 = vpop.f32.mrb[98].mxu0  ;;  %vm3637_vm14 = vcmp.gt.f32.partialorder %v7563_v30, 0.0 }
 0x3c3   :  { %v4728_v62 = vpack.c.bf16 %v3545_v17, %v3543_v46  ;;  %v3652_v33 = vmul.f32 1.442695, %v3644_v5  ;;  %v3620_v20 = vadd.f32 %v3619_v55, %v7539_v61  ;;  %v3546_v25 = vsel %vm3506_vm11, %v3497_v6, %v4267_v23  ;;  %v3621_v43 = vpop.f32.mrb[99].mxu0  ;;  %v3684_v23 = vld [vmem:[%s7625_s7] sm:$0xff]  ;;  %v3685_v5 = vld [vmem:[%s7625_s7 + $0x8] sm:$0xff]  ;;  %v3686_v46 = vld [vmem:[%s7625_s7 + $0x10] sm:$0xff] }
 0x3c4   :  { %v3654_v26 = vmul.f32 1.442695, %v3645_v12  ;;  %v4726_v1 = vpack.c.bf16 %v3546_v25, %v3544_v34  ;;  %v3622_v36 = vadd.f32 %v3621_v43, %v7539_v61  ;;  %v3687_v17 = vld [vmem:[%s7625_s7 + $0x18] sm:$0xff]  ;;  %v3695_v12 = vpop.permute.xlu0 %3694  ;;  %v3700_v25 = vpop.permute.xlu1 %3699 }
 0x3c5   :  { %5138 = vpow2.f32 %v3652_v33  ;;  %v3646_v9 = vmin.f32 %v3620_v20, 0.0  ;;  %vm3638_vm13 = vcmp.gt.f32.partialorder %v3620_v20, 0.0 }
 0x3c6   :  { %5140 = vpow2.f32 %v3654_v26  ;;  %4727 = vmatprep.subr.bf16.mxu1 %v4726_v1  ;;  %v3647_v21 = vmin.f32 %v3622_v36, 0.0  ;;  %v3625_v0 = vpop.f32.mrb[100].mxu0  ;;  %vm3639_vm15 = vcmp.gt.f32.partialorder %v3622_v36, 0.0 }
 0x3c7   :  { %v3656_v14 = vmul.f32 1.442695, %v3646_v9  ;;  %4729 = vmatpush1.bf16.msra.mxu1 %v4728_v62  ;;  %v3626_v7 = vadd.f32 %v3625_v0, %v7543_v16  ;;  %v3627_v47 = vpop.f32.mrb[101].mxu0 }
 0x3c8   :  { %v3658_v4 = vmul.f32 1.442695, %v3647_v21  ;;  %v3628_v24 = vadd.f32 %v3627_v47, %v7543_v16 }
 0x3c9   :  { %5142 = vpow2.f32 %v3656_v14  ;;  %v3648_v41 = vmin.f32 %v3626_v7, 0.0  ;;  %vm3640_vm0 = vcmp.gt.f32.partialorder %v3626_v7, 0.0 }
 0x3ca   :  { %5144 = vpow2.f32 %v3658_v4  ;;  %v3649_v29 = vmin.f32 %v3628_v24, 0.0  ;;  %v3631_v58 = vpop.f32.mrb[102].mxu0  ;;  %vm3641_vm3 = vcmp.gt.f32.partialorder %v3628_v24, 0.0 }
 0x3cb   :  { %v3660_v61 = vmul.f32 1.442695, %v3648_v41  ;;  %v3632_v54 = vadd.f32 %v3631_v58, %v7547_v51  ;;  %v3633_v57 = vpop.f32.mrb[103].mxu0 }
 0x3cc   :  { %v3662_v63 = vmul.f32 1.442695, %v3649_v29  ;;  %v3634_v44 = vadd.f32 %v3633_v57, %v7547_v51  ;;  %v3710_v57 = vpop.permute.xlu1 %3709 }
 0x3cd   :  { %5146 = vpow2.f32 %v3660_v61  ;;  %v3650_v6 = vmin.f32 %v3632_v54, 0.0  ;;  %vm3642_vm1 = vcmp.gt.f32.partialorder %v3632_v54, 0.0 }
 0x3ce   :  { %5148 = vpow2.f32 %v3662_v63  ;;  %v3651_v31 = vmin.f32 %v3634_v44, 0.0  ;;  %vm3643_vm4 = vcmp.gt.f32.partialorder %v3634_v44, 0.0 }
 0x3cf   :  { %v5139_v50 = vpop.eup %5138  ;;  %v3664_v45 = vmul.f32 1.442695, %v3650_v6 }
 0x3d0   :  { %v5141_v28 = vpop.eup %5140  ;;  %v3666_v16 = vmul.f32 1.442695, %v3651_v31  ;;  %v4272_v60 = vadd.f32 -1.0, %v5139_v50 }
 0x3d1   :  { %5150 = vpow2.f32 %v3664_v45  ;;  %v4273_v53 = vadd.f32 -1.0, %v5141_v28 }
 0x3d2   :  { %5152 = vpow2.f32 %v3666_v16  ;;  %v3676_v51 = vsel %vm3636_vm12, %v7560_v32, %v4272_v60  ;;  %vm3875_vm12 = vcmask 261120  }
 0x3d3   :  { %v5143_v27 = vpop.eup %5142  ;;  %v3677_v52 = vsel %vm3637_vm14, %v7563_v30, %v4273_v53 }
 0x3d4   :  { %v5145_v19 = vpop.eup %5144  ;;  %v4274_v11 = vadd.f32 -1.0, %v5143_v27 }
 0x3d5   :  { %v4275_v48 = vadd.f32 -1.0, %v5145_v19 }
 0x3d6   :  { %v3678_v39 = vsel %vm3638_vm13, %v3620_v20, %v4274_v11 }
 0x3d7   :  { %v5147_v49 = vpop.eup %5146  ;;  %v4732_v59 = vpack.c.bf16 %v3678_v39, %v3676_v51  ;;  %v3679_v2 = vsel %vm3639_vm15, %v3622_v36, %v4275_v48 }
 0x3d8   :  { %v5149_v35 = vpop.eup %5148  ;;  %v4730_v38 = vpack.c.bf16 %v3679_v2, %v3677_v52  ;;  %v4276_v37 = vadd.f32 -1.0, %v5147_v49 }
 0x3d9   :  { %v4277_v42 = vadd.f32 -1.0, %v5149_v35 }
 0x3da   :  { %4731 = vmatprep.subr.bf16.mxu1 %v4730_v38  ;;  %v3680_v18 = vsel %vm3640_vm0, %v3626_v7, %v4276_v37  ;;  %v3705_v7 = vpop.permute.xlu0 %3704 }
 0x3db   :  { %v5151_v10 = vpop.eup %5150  ;;  %4733 = vmatpush1.bf16.msra.mxu1 %v4732_v59  ;;  %v3681_v13 = vsel %vm3641_vm3, %v3628_v24, %v4277_v42 }
 0x3dc   :  { %v5153_v40 = vpop.eup %5152  ;;  %v4278_v15 = vadd.f32 -1.0, %v5151_v10 }
 0x3dd   :  { %v4279_v56 = vadd.f32 -1.0, %v5153_v40 }
 0x3de   :  { %v3682_v32 = vsel %vm3642_vm1, %v3632_v54, %v4278_v15 }
 0x3df   :  { %v4736_v3 = vpack.c.bf16 %v3682_v32, %v3680_v18  ;;  %v3683_v22 = vsel %vm3643_vm4, %v3634_v44, %v4279_v56 }
 0x3e0   :  { %v4734_v30 = vpack.c.bf16 %v3683_v22, %v3681_v13 }
 0x3e2   :  { %4735 = vmatprep.subr.bf16.mxu1 %v4734_v30 }
 0x3e3   :  { %4737 = vmatpush1.bf16.msra.mxu1 %v4736_v3 }
 0x3e6   :  { %4280 = vmatmul.mubr.msk.f32.vlgmr.msra.gmra.mrb[96].mxu1 %vm2261_vm2, %v3684_v23 }
 0x3e7   :  { %3794 = vmatprep.mubr.f32.mxu1 %v7713_v8 }
 0x3ea   :  { %4281 = vmatmul.mubr.msk.f32.gmra.mrb[98].mxu1 %vm2261_vm2, %v3685_v5 }
 0x3eb   :  { %3800 = vmatprep.mubr.f32.mxu1 %v7713_v8 }
 0x3ee   :  { %4282 = vmatmul.mubr.msk.f32.gmra.mrb[100].mxu1 %vm2261_vm2, %v3686_v46 }
 0x3ef   :  { %3806 = vmatprep.mubr.f32.mxu1 %v7713_v8 }
 0x3f2   :  { %4283 = vmatmul.mubr.msk.f32.gmra.mrb[102].mxu1 %vm2261_vm2, %v3687_v17 }
 0x4b9   :  { %v3790_v55 = vpop.f32.mrb[96].mxu1 }
 0x4ba   :  { %v3791_v34 = vadd.f32 %v3790_v55, %v3695_v12  ;;  %v3792_v62 = vpop.f32.mrb[97].mxu1  ;;  %v3861_v55 = vld [vmem:[%s7627_s9] sm:$0xff] }
 0x4bb   :  { %v3793_v33 = vadd.f32 %v3792_v62, %v3695_v12  ;;  %v3868_v62 = vpop.permute.xlu0 %3867 }
 0x4bc   :  { %v3821_v20 = vmin.f32 %v3791_v34, 0.0  ;;  %vm3813_vm2 = vcmp.gt.f32.partialorder %v3791_v34, 0.0 }
 0x4bd   :  { %v3822_v43 = vmin.f32 %v3793_v33, 0.0  ;;  %v3796_v26 = vpop.f32.mrb[98].mxu1  ;;  %vm3814_vm6 = vcmp.gt.f32.partialorder %v3793_v33, 0.0 }
 0x4be   :  { %v3829_v1 = vmul.f32 1.442695, %v3821_v20  ;;  %v3797_v36 = vadd.f32 %v3796_v26, %v3700_v25  ;;  %v3798_v9 = vpop.f32.mrb[99].mxu1  ;;  %v3873_v26 = vpop.permute.xlu1 %3872 }
 0x4bf   :  { %v3831_v21 = vmul.f32 1.442695, %v3822_v43  ;;  %v3799_v0 = vadd.f32 %v3798_v9, %v3700_v25 }
 0x4c0   :  { %5154 = vpow2.f32 %v3829_v1  ;;  %v3823_v14 = vmin.f32 %v3797_v36, 0.0  ;;  %vm3815_vm5 = vcmp.gt.f32.partialorder %v3797_v36, 0.0 }
 0x4c1   :  { %5156 = vpow2.f32 %v3831_v21  ;;  %v3824_v47 = vmin.f32 %v3799_v0, 0.0  ;;  %v3802_v4 = vpop.f32.mrb[100].mxu1  ;;  %vm3816_vm7 = vcmp.gt.f32.partialorder %v3799_v0, 0.0 }
 0x4c2   :  { %v3833_v24 = vmul.f32 1.442695, %v3823_v14  ;;  %v3803_v41 = vadd.f32 %v3802_v4, %v3705_v7  ;;  %v3804_v29 = vpop.f32.mrb[101].mxu1 }
 0x4c3   :  { %v3835_v58 = vmul.f32 1.442695, %v3824_v47  ;;  %v3805_v61 = vadd.f32 %v3804_v29, %v3705_v7 }
 0x4c4   :  { %5158 = vpow2.f32 %v3833_v24  ;;  %v3825_v54 = vmin.f32 %v3803_v41, 0.0  ;;  %vm3817_vm8 = vcmp.gt.f32.partialorder %v3803_v41, 0.0 }
 0x4c5   :  { %5160 = vpow2.f32 %v3835_v58  ;;  %v3826_v63 = vmin.f32 %v3805_v61, 0.0  ;;  %v3808_v44 = vpop.f32.mrb[102].mxu1  ;;  %vm3818_vm10 = vcmp.gt.f32.partialorder %v3805_v61, 0.0 }
 0x4c6   :  { %v3837_v6 = vmul.f32 1.442695, %v3825_v54  ;;  %v3809_v31 = vadd.f32 %v3808_v44, %v3710_v57  ;;  %v3810_v50 = vpop.f32.mrb[103].mxu1 }
 0x4c7   :  { %v3839_v45 = vmul.f32 1.442695, %v3826_v63  ;;  %v3811_v28 = vadd.f32 %v3810_v50, %v3710_v57 }
 0x4c8   :  { %5162 = vpow2.f32 %v3837_v6  ;;  %v3827_v16 = vmin.f32 %v3809_v31, 0.0  ;;  %vm3819_vm9 = vcmp.gt.f32.partialorder %v3809_v31, 0.0 }
 0x4c9   :  { %5164 = vpow2.f32 %v3839_v45  ;;  %v3828_v60 = vmin.f32 %v3811_v28, 0.0  ;;  %vm3820_vm11 = vcmp.gt.f32.partialorder %v3811_v28, 0.0 }
 0x4ca   :  { %v5155_v27 = vpop.eup %5154  ;;  %v3841_v53 = vmul.f32 1.442695, %v3827_v16 }
 0x4cb   :  { %v5157_v19 = vpop.eup %5156  ;;  %v3843_v11 = vmul.f32 1.442695, %v3828_v60  ;;  %v4284_v48 = vadd.f32 -1.0, %v5155_v27 }
 0x4cc   :  { %5166 = vpow2.f32 %v3841_v53  ;;  %v4285_v39 = vadd.f32 -1.0, %v5157_v19 }
 0x4cd   :  { %5168 = vpow2.f32 %v3843_v11  ;;  %v3853_v2 = vsel %vm3813_vm2, %v3791_v34, %v4284_v48  ;;  %v3862_v34 = vld [vmem:[%s7627_s9 + $0x8] sm:$0xff] }
 0x4ce   :  { %v5159_v51 = vpop.eup %5158  ;;  %v3854_v10 = vsel %vm3814_vm6, %v3793_v33, %v4285_v39 }
 0x4cf   :  { %v5161_v49 = vpop.eup %5160  ;;  %v4286_v59 = vadd.f32 -1.0, %v5159_v51 }
 0x4d0   :  { %v4287_v52 = vadd.f32 -1.0, %v5161_v49 }
 0x4d1   :  { %v3855_v35 = vsel %vm3815_vm5, %v3797_v36, %v4286_v59 }
 0x4d2   :  { %v5163_v38 = vpop.eup %5162  ;;  %v4740_v37 = vpack.c.bf16 %v3855_v35, %v3853_v2  ;;  %v3856_v42 = vsel %vm3816_vm7, %v3799_v0, %v4287_v52 }
 0x4d3   :  { %v5165_v40 = vpop.eup %5164  ;;  %v4738_v15 = vpack.c.bf16 %v3856_v42, %v3854_v10  ;;  %v4288_v56 = vadd.f32 -1.0, %v5163_v38 }
 0x4d4   :  { %v4289_v32 = vadd.f32 -1.0, %v5165_v40 }
 0x4d5   :  { %4739 = vmatprep.subr.bf16.mxu0 %v4738_v15  ;;  %v3857_v30 = vsel %vm3817_vm8, %v3803_v41, %v4288_v56 }
 0x4d6   :  { %v5167_v18 = vpop.eup %5166  ;;  %4741 = vmatpush1.bf16.msra.mxu0 %v4740_v37  ;;  %v3858_v46 = vsel %vm3818_vm10, %v3805_v61, %v4289_v32 }
 0x4d7   :  { %v5169_v3 = vpop.eup %5168  ;;  %v4290_v13 = vadd.f32 -1.0, %v5167_v18 }
 0x4d8   :  { %v4291_v22 = vadd.f32 -1.0, %v5169_v3 }
 0x4d9   :  { %v3859_v23 = vsel %vm3819_vm9, %v3809_v31, %v4290_v13 }
 0x4da   :  { %v4744_v5 = vpack.c.bf16 %v3859_v23, %v3857_v30  ;;  %v3860_v17 = vsel %vm3820_vm11, %v3811_v28, %v4291_v22 }
 0x4db   :  { %v4742_v12 = vpack.c.bf16 %v3860_v17, %v3858_v46 }
 0x4dd   :  { %4743 = vmatprep.subr.bf16.mxu0 %v4742_v12 }
 0x4de   :  { %4745 = vmatpush1.bf16.msra.mxu0 %v4744_v5 }
 0x4e1   :  { %4292 = vmatmul.mubr.msk.f32.vlgmr.msra.gmra.mrb[104].mxu0 %vm3875_vm12, %v3861_v55 }
 0x4e2   :  { %3952 = vmatprep.mubr.f32.mxu0 %v7713_v8 }
 0x4e5   :  { %4293 = vmatmul.mubr.msk.f32.gmra.mrb[106].mxu0 %vm3875_vm12, %v3862_v34 }
 0x5b4   :  { %v3948_v33 = vpop.f32.mrb[104].mxu0 }
 0x5b5   :  { %v3949_v20 = vadd.f32 %v3948_v33, %v3868_v62  ;;  %v3950_v25 = vpop.f32.mrb[105].mxu0 }
 0x5b6   :  { %v3951_v43 = vadd.f32 %v3950_v25, %v3868_v62 }
 0x5b7   :  { %3959 = vst [vmem:[#allocation5] sm:$0xff] %v3949_v20 }
 0x5b8   :  { %3960 = vst [vmem:[#allocation5 + $0x8] sm:$0xff] %v3951_v43  ;;  %v3954_v1 = vpop.f32.mrb[106].mxu0 }
 0x5b9   :  { %v3955_v36 = vadd.f32 %v3954_v1, %v3873_v26  ;;  %v3956_v9 = vpop.f32.mrb[107].mxu0 }
 0x5ba   :  { %v3957_v21 = vadd.f32 %v3956_v9, %v3873_v26 }
 0x5bb   :  { %3961 = vst [vmem:[#allocation5 + $0x10] sm:$0xff] %v3955_v36 }
 0x5bc   :  { %3962 = vst [vmem:[#allocation5 + $0x18] sm:$0xff] %v3957_v21 }
 0x5bd   :  { %5207 = shalt.err (!%p5204_p12)
}
 0x5be   :  { %s5208_s1 = scalar_lea.hbm %s7629_s11, 512 }
 0x5bf   :  { %p5209_p13 = scmp.ne.s32.totalorder %s7629_s11, %s5208_s1  ;;  %p5212_p0 = scmp.lt.u32.totalorder %s5208_s1, %s7629_s11 }
 0x5c1   :  { %p5214_p1 = pnand %p5212_p0, %p5209_p13 }
 0x5c3   :  { %5217 = shalt.err (!%p5214_p1)
}
 0x5c4   :  { %3974 = dma.vmem_to_hbm [thread:$0]  %s3969_s20, 512, %s7629_s11, [#allocation4], %s5223_s27, %s5223_s27, %s5224_s28  }
 0x5c5   :  { %5220 = dma.done.wait [#allocation4], 512  }
 0x5c6   :  { %5221 = vsyncadd [#allocation4], 4294966784 }
 0x5c7   :  { %3978 = vsyncpa [#allocation3], 1 }
 0x5c8   :  { %3979 = vsyncpa [#allocation4], 1 }

</bundles_post_ra>
